<compile_context>
chip_gen: v6e
topology: v6e:2x2x1
jax: 0.10.0
libtpu: 0.0.40
codegen_flags: <defaults>
</compile_context>

<pallas_src>
import jax
import jax.numpy as jnp
from jax.experimental import pallas as pl
from jax.experimental.pallas import tpu as pltpu

N_USERS = 6040
N_MOVIES = 3883
EMBED_DIM = 128
FEAT_DIM = 2 * EMBED_DIM   # 256
K_FACTORS = 5
NCOL = 1 + K_FACTORS       # 6 fused output columns (linear+quad | V factors)

TILE_B_MAX = 8192          # ~20 MiB VMEM incl. double-buffering & temporaries


def _round_up(x, m):
    return ((x + m - 1) // m) * m


def fm_kernel(u_ref, m_ref, r_ref, b_ref, out_ref):
    """One batch tile of the FM forward.

    u_ref  : [T, 128] bf16    user embedding rows
    m_ref  : [T, 128] bf16    movie embedding rows
    r_ref  : [512, 12] bf16   fused RHS, hi/lo split: cols 0:6 = R_hi, 6:12 = R_lo,
             where R (f32, [512,6]) is
                rows   0:128 -> multiplies u      : [ w_u,  V_u ]
                rows 128:256 -> multiplies u*u    : [-s_u,  0   ]
                rows 256:384 -> multiplies m      : [ w_m,  V_m ]
                rows 384:512 -> multiplies m*m    : [-s_m,  0   ]
             with s_h = 0.5 * sum_f V_h^2 (per row).
    b_ref  : [1] f32 (SMEM)   linear bias
    out_ref: [T, 2] f32       [1 - p, p]
    """
    u = u_ref[...]                                            # bf16
    m = m_ref[...]                                            # bf16

    # Lane-dim concat -> single K=512 bf16 MXU dot with f32 accumulation.
    lhs = jnp.concatenate([u, u * u, m, m * m], axis=-1)      # [T, 512] bf16
    y2 = jnp.dot(lhs, r_ref[...], preferred_element_type=jnp.float32)  # [T, 12] f32

    # Recombine the hi/lo weight split (restores ~f32 weight precision).
    y = y2[:, :NCOL] + y2[:, NCOL:]                           # [T, 6] f32

    # y[:, 0]  = x@w - 0.5 * (x*x) @ sum_f V^2
    # y[:, 1:] = t = x @ V
    t = y[:, 1:]
    logit = y[:, 0:1] + 0.5 * jnp.sum(t * t, axis=1, keepdims=True) + b_ref[0]
    p = jax.nn.sigmoid(logit)

    out_ref[...] = jnp.concatenate([1.0 - p, p], axis=-1)


@jax.jit
def fm_forward(ids, params):
    """ids: [B, 2] int32 (user_id, movie_id). Returns [B, 2] f32 probs."""
    user_tab = params["user_embed"]      # [N_USERS, 128]  bf16
    movie_tab = params["movie_embed"]    # [N_MOVIES,128]  bf16
    w_t = params["linear_w_t"]           # [256, 1] f32
    b = params["linear_b"]               # [1]      f32
    V = params["V"]                      # [256, k] f32

    B = ids.shape[0]
    # tile_b: multiple of 512, capped so >=2 tiles once B > 512 (v7x megacore),
    # and never above TILE_B_MAX.
    tile_b = min(TILE_B_MAX, _round_up(max((B + 1) // 2, 1), 512))
    b_pad = _round_up(B, tile_b)
    n_tiles = b_pad // tile_b

    # Pad only the tiny ids array (index 0 is a valid row) -> the big [*,128]
    # gather outputs are produced at b_pad rows directly, no extra HBM copy.
    if b_pad != B:
        ids = jnp.pad(ids, ((0, b_pad - B), (0, 0)))

    # Embedding gathers (plain-JAX glue); no [B,256] concat round-trip to HBM.
    u = user_tab[ids[:, 0]]              # [b_pad, 128] bf16
    m = movie_tab[ids[:, 1]]             # [b_pad, 128] bf16

    # Fused RHS (recomputed every call so it tracks trainable V / w).
    s = 0.5 * jnp.sum(V * V, axis=1, keepdims=True)           # [256, 1]
    zeros_k = jnp.zeros((EMBED_DIM, K_FACTORS), jnp.float32)
    R = jnp.concatenate(
        [
            jnp.concatenate([w_t[:EMBED_DIM], V[:EMBED_DIM]], axis=1),   # x  u
            jnp.concatenate([-s[:EMBED_DIM], zeros_k], axis=1),          # x  u^2
            jnp.concatenate([w_t[EMBED_DIM:], V[EMBED_DIM:]], axis=1),   # x  m
            jnp.concatenate([-s[EMBED_DIM:], zeros_k], axis=1),          # x  m^2
        ],
        axis=0,
    ).astype(jnp.float32)                                     # [512, 6] f32

    # hi/lo bf16 split of R packed into one RHS -> single bf16 dot, f32-accurate.
    R_hi = R.astype(jnp.bfloat16)
    R_lo = (R - R_hi.astype(jnp.float32)).astype(jnp.bfloat16)
    R2 = jnp.concatenate([R_hi, R_lo], axis=1)                # [512, 12] bf16

    out = pl.pallas_call(
        fm_kernel,
        out_shape=jax.ShapeDtypeStruct((b_pad, 2), jnp.float32),
        grid=(n_tiles,),
        in_specs=[
            pl.BlockSpec((tile_b, EMBED_DIM), lambda i: (i, 0)),          # u tile
            pl.BlockSpec((tile_b, EMBED_DIM), lambda i: (i, 0)),          # m tile
            pl.BlockSpec((2 * FEAT_DIM, 2 * NCOL), lambda i: (0, 0)),     # R2, resident
            pl.BlockSpec(memory_space=pltpu.MemorySpace.SMEM),            # bias scalar
        ],
        out_specs=pl.BlockSpec((tile_b, 2), lambda i: (i, 0)),
        compiler_params=pltpu.CompilerParams(
            dimension_semantics=("parallel",),
            vmem_limit_bytes=48 * 1024 * 1024,
        ),
    )(u, m, R2, b)

    return out[:B]


def init_params(key):
    k1, k2, k3, k4, k5 = jax.random.split(key, 5)
    # Embedding tables kept in bf16 (HBM-bandwidth win); matmul accumulates f32.
    user_embed = jax.random.normal(k1, (N_USERS, EMBED_DIM), jnp.float32).astype(jnp.bfloat16)
    movie_embed = jax.random.normal(k2, (N_MOVIES, EMBED_DIM), jnp.float32).astype(jnp.bfloat16)
    # nn.Linear(256, 1): weight [1, 256], bias [1]  (kept transposed as [256, 1])
    bound = 1.0 / (FEAT_DIM ** 0.5)
    linear_w_t = jax.random.uniform(k3, (FEAT_DIM, 1), jnp.float32, -bound, bound)
    linear_b = jax.random.uniform(k4, (1,), jnp.float32, -bound, bound)
    # FactorizationMachineLayer: V ~ U(-0.1, 0.1), shape [256, k]
    V = jax.random.uniform(k5, (FEAT_DIM, K_FACTORS), jnp.float32, -0.1, 0.1)
    return {
        "user_embed": user_embed,
        "movie_embed": movie_embed,
        "linear_w_t": linear_w_t,
        "linear_b": linear_b,
        "V": V,
    }


def fm_forward_ref(ids, params):
    """Pure-JAX reference (original FM formulation) for correctness checking."""
    x = jnp.concatenate(
        [params["user_embed"][ids[:, 0]], params["movie_embed"][ids[:, 1]]], axis=-1
    ).astype(jnp.float32)
    lin = x @ params["linear_w_t"] + params["linear_b"]
    t = x @ params["V"]
    t2 = (x * x) @ (params["V"] * params["V"])
    fm = 0.5 * jnp.sum(t * t - t2, axis=1, keepdims=True)
    p = jax.nn.sigmoid(lin + fm)
    return jnp.concatenate([1.0 - p, p], axis=-1)


if __name__ == "__main__":
    key = jax.random.PRNGKey(0)
    pkey, ikey_u, ikey_m = jax.random.split(key, 3)
    params = init_params(pkey)

    B = 8
    user_ids = jax.random.randint(ikey_u, (B, 1), 0, N_USERS, jnp.int32)
    movie_ids = jax.random.randint(ikey_m, (B, 1), 0, N_MOVIES, jnp.int32)
    ids = jnp.concatenate([user_ids, movie_ids], axis=-1)                # [B, 2]

    out = fm_forward(ids, params)
    out = jax.block_until_ready(out)

    ref = fm_forward_ref(ids, params)
    assert out.shape == (B, 2)
    # bf16 embeddings + reassociated FM reduction (weights are hi/lo-split bf16,
    # so weight precision is ~f32); 1e-3 passes with margin.
    assert jnp.allclose(out, ref, atol=1e-3, rtol=1e-3), (out, ref)
    assert jnp.allclose(out.sum(axis=-1), 1.0, atol=1e-4)

    print("KERNEL_OK")
</pallas_src>

<mosaic_0001>
module attributes {stable_mosaic.version = 11 : i64} {
  func.func @fm_kernel(%arg0: i32, %arg1: memref<512x128xbf16, #tpu.memory_space<vmem>>, %arg2: memref<512x128xbf16, #tpu.memory_space<vmem>>, %arg3: memref<512x12xbf16, #tpu.memory_space<vmem>>, %arg4: memref<1xf32, #tpu.memory_space<smem>>, %arg5: memref<512x2xf32, #tpu.memory_space<vmem>>) attributes {dimension_semantics = [#tpu.dimension_semantics<parallel>], iteration_bounds = array<i64: 1>, scalar_prefetch = 0 : i64, scratch_operands = 0 : i64, tpu.core_type = #tpu.core_type<tc>, window_params = [{transform_indices = @transform_0, window_bounds = array<i64: 512, 128>}, {transform_indices = @transform_1, window_bounds = array<i64: 512, 128>}, {pipeline_mode = #tpu.pipeline_mode<synchronous>, transform_indices = @transform_2, window_bounds = array<i64: 512, 12>}, {transform_indices = @transform_3, window_bounds = array<i64: 1>}, {transform_indices = @transform_4, window_bounds = array<i64: 512, 2>}]} {
    %c0 = arith.constant 0 : index
    %c0_0 = arith.constant 0 : index
    %0 = vector.load %arg1[%c0, %c0_0] : memref<512x128xbf16, #tpu.memory_space<vmem>>, vector<512x128xbf16>
    %c0_1 = arith.constant 0 : index
    %c0_2 = arith.constant 0 : index
    %1 = vector.load %arg2[%c0_1, %c0_2] : memref<512x128xbf16, #tpu.memory_space<vmem>>, vector<512x128xbf16>
    %2 = arith.mulf %0, %0 : vector<512x128xbf16>
    %3 = arith.mulf %1, %1 : vector<512x128xbf16>
    %4 = tpu.concatenate %0, %2, %1, %3 in 1 : vector<512x128xbf16>, vector<512x128xbf16>, vector<512x128xbf16>, vector<512x128xbf16> -> vector<512x512xbf16>
    %c0_3 = arith.constant 0 : index
    %c0_4 = arith.constant 0 : index
    %5 = vector.load %arg3[%c0_3, %c0_4] : memref<512x12xbf16, #tpu.memory_space<vmem>>, vector<512x12xbf16>
    %cst = arith.constant dense<0.000000e+00> : vector<512x12xf32>
    %6 = tpu.matmul %4, %5, %cst {dimension_numbers = #tpu.dot_dimension_numbers<[1], [0], [0], [1], [0, 0, 1, 1], [], []>} : vector<512x512xbf16>, vector<512x12xbf16>, vector<512x12xf32> -> vector<512x12xf32>
    %7 = vector.extract_strided_slice %6 {offsets = [0, 0], sizes = [512, 6], strides = [1, 1]} : vector<512x12xf32> to vector<512x6xf32>
    %8 = vector.extract_strided_slice %6 {offsets = [0, 6], sizes = [512, 6], strides = [1, 1]} : vector<512x12xf32> to vector<512x6xf32>
    %9 = arith.addf %7, %8 : vector<512x6xf32>
    %10 = vector.extract_strided_slice %9 {offsets = [0, 1], sizes = [512, 5], strides = [1, 1]} : vector<512x6xf32> to vector<512x5xf32>
    %11 = vector.extract_strided_slice %9 {offsets = [0, 0], sizes = [512, 1], strides = [1, 1]} : vector<512x6xf32> to vector<512x1xf32>
    %12 = arith.mulf %10, %10 : vector<512x5xf32>
    %cst_5 = arith.constant dense<0.000000e+00> : vector<512xf32>
    %13 = vector.multi_reduction <add>, %12, %cst_5 [1] : vector<512x5xf32> to vector<512xf32>
    %14 = vector.shape_cast %13 : vector<512xf32> to vector<512x1xf32>
    %cst_6 = arith.constant 5.000000e-01 : f32
    %15 = vector.broadcast %cst_6 : f32 to vector<512x1xf32>
    %16 = arith.mulf %15, %14 : vector<512x1xf32>
    %17 = arith.addf %11, %16 : vector<512x1xf32>
    %c0_7 = arith.constant 0 : index
    %18 = memref.load %arg4[%c0_7] : memref<1xf32, #tpu.memory_space<smem>>
    %19 = vector.broadcast %18 : f32 to vector<512x1xf32>
    %20 = arith.addf %17, %19 : vector<512x1xf32>
    %21 = arith.negf %20 : vector<512x1xf32>
    %22 = math.exp %21 : vector<512x1xf32>
    %cst_8 = arith.constant 1.000000e+00 : f32
    %23 = vector.broadcast %cst_8 : f32 to vector<512x1xf32>
    %24 = arith.addf %23, %22 : vector<512x1xf32>
    %25 = arith.divf %23, %24 : vector<512x1xf32>
    %cst_9 = arith.constant 1.000000e+00 : f32
    %26 = vector.broadcast %cst_9 : f32 to vector<512x1xf32>
    %27 = arith.subf %26, %25 : vector<512x1xf32>
    %28 = tpu.concatenate %27, %25 in 1 : vector<512x1xf32>, vector<512x1xf32> -> vector<512x2xf32>
    %c0_10 = arith.constant 0 : index
    %c0_11 = arith.constant 0 : index
    %29 = vector.load %arg5[%c0_10, %c0_11] : memref<512x2xf32, #tpu.memory_space<vmem>>, vector<512x2xf32>
    tpu.vector_store %arg5[%c0_10, %c0_11], %28 {strides = array<i32>} : memref<512x2xf32, #tpu.memory_space<vmem>>, vector<512x2xf32>,
    return
  }
  func.func @transform_0(%arg0: i32) -> (i32, i32) {
    %c0_i32 = arith.constant 0 : i32
    %c0_i32_0 = arith.constant 0 : i32
    return %arg0, %c0_i32 : i32, i32
  }
  func.func @transform_1(%arg0: i32) -> (i32, i32) {
    %c0_i32 = arith.constant 0 : i32
    %c0_i32_0 = arith.constant 0 : i32
    return %arg0, %c0_i32 : i32, i32
  }
  func.func @transform_2(%arg0: i32) -> (i32, i32) {
    %c0_i32 = arith.constant 0 : i32
    %c0_i32_0 = arith.constant 0 : i32
    %c0_i32_1 = arith.constant 0 : i32
    return %c0_i32, %c0_i32_0 : i32, i32
  }
  func.func @transform_3(%arg0: i32) -> i32 {
    %c0_i32 = arith.constant 0 : i32
    %c0_i32_0 = arith.constant 0 : i32
    return %c0_i32 : i32
  }
  func.func @transform_4(%arg0: i32) -> (i32, i32) {
    %c0_i32 = arith.constant 0 : i32
    %c0_i32_0 = arith.constant 0 : i32
    return %arg0, %c0_i32 : i32, i32
  }
}

</mosaic_0001>

<bundles_post_ra>
// kernel: fm_forward.1
= control target key start
LH: loop header
LB: loop body
LE: loop exit
PB: predicated region body
PF: predicated region fallthrough
CT: control target
= control target key end

     0   :  { %v4322_v0 = vmov 0   ;;  %s4323_s27 = smov 122   ;;  %vm2517_vm0 = vcmask 39936   ;;  %vm3608_vm1 = vcmask 7168   ;;  %vm3673_vm2 = vcmask 15360   ;;  %s6597_s2 = inlined_call_operand.vmem [shape: bf16[512,12], index: 2, kind: input, shape index: {}]   ;;  %s6598_s0 = inlined_call_operand.vmem [shape: bf16[512,128], index: 0, kind: input, shape index: {}]   ;;  %s6599_s1 = inlined_call_operand.vmem [shape: bf16[512,128], index: 1, kind: input, shape index: {}]   ;;  %s6600_s3 = inlined_call_operand.<no memory space> [shape: f32[1], index: 3, kind: input, shape index: {}]   ;;  %s6601_s4 = inlined_call_operand.vmem [shape: f32[512,2], index: 4, kind: output, shape index: {}]  }
   0x1   :  { %1299 = vmatprep.subr.bf16.mxu0 %v4322_v0  ;;  %1588 = vmatprep.subr.bf16.mxu1 %v4322_v0  ;;  %v3970_v1 = vld [vmem:[%s6597_s2 + $0x38] sm:$0xff]   ;;  %v3972_v3 = vld [vmem:[%s6597_s2 + $0x30] sm:$0xff]   ;;  %v3974_v5 = vld [vmem:[%s6597_s2 + $0x28] sm:$0xff]  }
   0x2   :  { %v3971_v2 = vld [vmem:[%s6597_s2 + $0xb8] sm:$0xff]   ;;  %1300 = vmatpush1.bf16.msra.mxu0 %v3970_v1  ;;  %v3973_v4 = vld [vmem:[%s6597_s2 + $0xb0] sm:$0xff]   ;;  %v3975_v6 = vld [vmem:[%s6597_s2 + $0xa8] sm:$0xff]  }
   0x3   :  { %1589 = vmatpush1.bf16.msra.mxu1 %v3971_v2  ;;  %1301 = vmatprep.subr.bf16.mxu0 %v4322_v0  ;;  %v3976_v7 = vld [vmem:[%s6597_s2 + $0x20] sm:$0xff]   ;;  %v3978_v9 = vld [vmem:[%s6597_s2 + $0x18] sm:$0xff]   ;;  %v3980_v11 = vld [vmem:[%s6597_s2 + $0x10] sm:$0xff]  }
   0x4   :  { %1590 = vmatprep.subr.bf16.mxu1 %v4322_v0  ;;  %v3977_v8 = vld [vmem:[%s6597_s2 + $0xa0] sm:$0xff]   ;;  %v3979_v10 = vld [vmem:[%s6597_s2 + $0x98] sm:$0xff]   ;;  %v3981_v12 = vld [vmem:[%s6597_s2 + $0x90] sm:$0xff]  }
   0x5   :  { %v3982_v13 = vld [vmem:[%s6597_s2 + $0x8] sm:$0xff]   ;;  %v3984_v15 = vld [vmem:[%s6597_s2] sm:$0xff]   ;;  %v3986_v17 = vld [vmem:[%s6597_s2 + $0x78] sm:$0xff]  }
   0x6   :  { %1302 = vmatpush1.bf16.msra.mxu0 %v3972_v3  ;;  %v3983_v14 = vld [vmem:[%s6597_s2 + $0x88] sm:$0xff]   ;;  %v3985_v16 = vld [vmem:[%s6597_s2 + $0x80] sm:$0xff]   ;;  %v3987_v18 = vld [vmem:[%s6597_s2 + $0xf8] sm:$0xff]  }
   0x7   :  { %1591 = vmatpush1.bf16.msra.mxu1 %v3973_v4  ;;  %1303 = vmatprep.subr.bf16.mxu0 %v4322_v0  ;;  %v4426_v19 = vld [vmem:[%s6598_s0] sm:$0xf]  ;;  %v4431_v20 = vld [vmem:[%s6598_s0 + $0x4] sm:$0xf]  ;;  %v3988_v26 = vld [vmem:[%s6597_s2 + $0x70] sm:$0xff]  }
   0x8   :  { %1592 = vmatprep.subr.bf16.mxu1 %v4322_v0  ;;  %v4436_v21 = vld [vmem:[%s6599_s1] sm:$0xf]  ;;  %v147_v22 = vmul.bf16 %v4426_v19, %v4426_v19  ;;  %v148_v23 = vmul.bf16 %v4431_v20, %v4431_v20  ;;  %v4445_v24 = vld [vmem:[%s6599_s1 + $0x4] sm:$0xf]  ;;  %v3989_v28 = vld [vmem:[%s6597_s2 + $0xf0] sm:$0xff]   ;;  %v3742_v51 = vcombine.low %v4426_v19, %v4431_v20 }
   0x9   :  { %v211_v25 = vmul.bf16 %v4436_v21, %v4436_v21  ;;  %v212_v27 = vmul.bf16 %v4445_v24, %v4445_v24  ;;  %v3990_v31 = vld [vmem:[%s6597_s2 + $0x68] sm:$0xff]   ;;  %v3992_v33 = vld [vmem:[%s6597_s2 + $0x60] sm:$0xff]   ;;  %v3994_v35 = vld [vmem:[%s6597_s2 + $0x58] sm:$0xff]   ;;  %v3806_v52 = vcombine.low %v4436_v21, %v4445_v24 }
   0xa   :  { %1304 = vmatpush1.bf16.msra.mxu0 %v3974_v5  ;;  %v3774_v29 = vcombine.low %v147_v22, %v148_v23  ;;  %v3991_v32 = vld [vmem:[%s6597_s2 + $0xe8] sm:$0xff]   ;;  %v3993_v34 = vld [vmem:[%s6597_s2 + $0xe0] sm:$0xff]   ;;  %v3995_v36 = vld [vmem:[%s6597_s2 + $0xd8] sm:$0xff]  }
   0xb   :  { %1593 = vmatpush1.bf16.msra.mxu1 %v3975_v6  ;;  %1305 = vmatprep.subr.bf16.mxu0 %v4322_v0  ;;  %v3838_v30 = vcombine.low %v211_v25, %v212_v27  ;;  %v3996_v37 = vld [vmem:[%s6597_s2 + $0x50] sm:$0xff]   ;;  %v3998_v39 = vld [vmem:[%s6597_s2 + $0x48] sm:$0xff]   ;;  %v4000_v45 = vld [vmem:[%s6597_s2 + $0x40] sm:$0xff]  }
   0xc   :  { %1594 = vmatprep.subr.bf16.mxu1 %v4322_v0  ;;  %1331 = vmatprep.mubr.bf16.mxu0 %v3774_v29  ;;  %v3997_v38 = vld [vmem:[%s6597_s2 + $0xd0] sm:$0xff]   ;;  %v3999_v40 = vld [vmem:[%s6597_s2 + $0xc8] sm:$0xff]   ;;  %v4001_v48 = vld [vmem:[%s6597_s2 + $0xc0] sm:$0xff]  }
   0xd   :  { %1620 = vmatprep.mubr.bf16.mxu1 %v3838_v30  ;;  %v21_v41 = vld [vmem:[%s6598_s0 + $0x8] sm:$0xf]  ;;  %v22_v42 = vld [vmem:[%s6598_s0 + $0xc] sm:$0xf]  ;;  %v23_v55 = vld [vmem:[%s6598_s0 + $0x10] sm:$0xf] }
   0xe   :  { %1306 = vmatpush1.bf16.msra.mxu0 %v3976_v7  ;;  %v85_v43 = vld [vmem:[%s6599_s1 + $0x8] sm:$0xf]  ;;  %v86_v44 = vld [vmem:[%s6599_s1 + $0xc] sm:$0xf]  ;;  %v149_v46 = vmul.bf16 %v21_v41, %v21_v41  ;;  %v150_v47 = vmul.bf16 %v22_v42, %v22_v42  ;;  %v24_v56 = vld [vmem:[%s6598_s0 + $0x14] sm:$0xf]  ;;  %v151_v59 = vmul.bf16 %v23_v55, %v23_v55  ;;  %v3743_v63 = vcombine.low %v21_v41, %v22_v42 }
   0xf   :  { %1595 = vmatpush1.bf16.msra.mxu1 %v3977_v8  ;;  %1307 = vmatprep.subr.bf16.mxu0 %v4322_v0  ;;  %v213_v49 = vmul.bf16 %v85_v43, %v85_v43  ;;  %v214_v50 = vmul.bf16 %v86_v44, %v86_v44  ;;  %v87_v57 = vld [vmem:[%s6599_s1 + $0x10] sm:$0xf]  ;;  %v88_v58 = vld [vmem:[%s6599_s1 + $0x14] sm:$0xf]  ;;  %v152_v60 = vmul.bf16 %v24_v56, %v24_v56  ;;  %v25_v3 = vld [vmem:[%s6598_s0 + $0x18] sm:$0xf] }
  0x10   :  { %1596 = vmatprep.subr.bf16.mxu1 %v4322_v0  ;;  %v3775_v53 = vcombine.low %v149_v46, %v150_v47  ;;  %v215_v61 = vmul.bf16 %v87_v57, %v87_v57  ;;  %v216_v62 = vmul.bf16 %v88_v58, %v88_v58  ;;  %v26_v4 = vld [vmem:[%s6598_s0 + $0x1c] sm:$0xf]  ;;  %v89_v5 = vld [vmem:[%s6599_s1 + $0x18] sm:$0xf]  ;;  %v153_v7 = vmul.bf16 %v25_v3, %v25_v3  ;;  %v29_v27 = vld [vmem:[%s6598_s0 + $0x28] sm:$0xf] }
  0x11   :  { %v3839_v54 = vcombine.low %v213_v49, %v214_v50  ;;  %v3776_v1 = vcombine.low %v151_v59, %v152_v60  ;;  %v90_v6 = vld [vmem:[%s6599_s1 + $0x1c] sm:$0xf]  ;;  %v154_v8 = vmul.bf16 %v26_v4, %v26_v4  ;;  %v3745_v23 = vcombine.low %v25_v3, %v26_v4  ;;  %v93_v29 = vld [vmem:[%s6599_s1 + $0x28] sm:$0xf]  ;;  %v94_v30 = vld [vmem:[%s6599_s1 + $0x2c] sm:$0xf] }
  0x12   :  { %1308 = vmatpush1.bf16.msra.mxu0 %v3978_v9  ;;  %v3840_v2 = vcombine.low %v215_v61, %v216_v62  ;;  %v217_v9 = vmul.bf16 %v89_v5, %v89_v5  ;;  %v3809_v24 = vcombine.low %v89_v5, %v90_v6  ;;  %v95_v41 = vld [vmem:[%s6599_s1 + $0x30] sm:$0xf]  ;;  %v96_v42 = vld [vmem:[%s6599_s1 + $0x34] sm:$0xf] }
  0x13   :  { %1597 = vmatpush1.bf16.msra.mxu1 %v3979_v10  ;;  %1309 = vmatprep.subr.bf16.mxu0 %v4322_v0  ;;  %v218_v10 = vmul.bf16 %v90_v6, %v90_v6  ;;  %v224_v46 = vmul.bf16 %v96_v42, %v96_v42  ;;  %v3812_v60 = vcombine.low %v95_v41, %v96_v42 }
  0x14   :  { %1598 = vmatprep.subr.bf16.mxu1 %v4322_v0 }
  0x16   :  { %1310 = vmatpush1.bf16.msra.mxu0 %v3980_v11  ;;  %v3744_v11 = vcombine.low %v23_v55, %v24_v56 }
  0x17   :  { %1599 = vmatpush1.bf16.msra.mxu1 %v3981_v12  ;;  %1311 = vmatprep.subr.bf16.mxu0 %v4322_v0  ;;  %v3808_v12 = vcombine.low %v87_v57, %v88_v58 }
  0x18   :  { %1600 = vmatprep.subr.bf16.mxu1 %v4322_v0 }
  0x1a   :  { %1312 = vmatpush1.bf16.msra.mxu0 %v3982_v13  ;;  %v3777_v13 = vcombine.low %v153_v7, %v154_v8 }
  0x1b   :  { %1601 = vmatpush1.bf16.msra.mxu1 %v3983_v14  ;;  %1313 = vmatprep.subr.bf16.mxu0 %v4322_v0  ;;  %v3841_v14 = vcombine.low %v217_v9, %v218_v10 }
  0x1c   :  { %1602 = vmatprep.subr.bf16.mxu1 %v4322_v0 }
  0x1e   :  { %1314 = vmatpush1.bf16.msra.mxu0 %v3984_v15  ;;  %v27_v15 = vld [vmem:[%s6598_s0 + $0x20] sm:$0xf] }
  0x1f   :  { %1603 = vmatpush1.bf16.msra.mxu1 %v3985_v16  ;;  %1315 = vmatprep.subr.bf16.mxu0 %v4322_v0  ;;  %v28_v16 = vld [vmem:[%s6598_s0 + $0x24] sm:$0xf]  ;;  %v155_v19 = vmul.bf16 %v27_v15, %v27_v15 }
  0x20   :  { %1604 = vmatprep.subr.bf16.mxu1 %v4322_v0  ;;  %v156_v20 = vmul.bf16 %v28_v16, %v28_v16 }
  0x22   :  { %1316 = vmatpush2.bf16.msra.mxu0 %v3986_v17  ;;  %v91_v17 = vld [vmem:[%s6599_s1 + $0x20] sm:$0xf]  ;;  %v3778_v25 = vcombine.low %v155_v19, %v156_v20 }
  0x23   :  { %1605 = vmatpush2.bf16.msra.mxu1 %v3987_v18  ;;  %1317 = vmatprep.subr.bf16.mxu0 %v4322_v0  ;;  %v92_v18 = vld [vmem:[%s6599_s1 + $0x24] sm:$0xf]  ;;  %v219_v21 = vmul.bf16 %v91_v17, %v91_v17 }
  0x24   :  { %1606 = vmatprep.subr.bf16.mxu1 %v4322_v0  ;;  %v220_v22 = vmul.bf16 %v92_v18, %v92_v18 }
  0x26   :  { %1318 = vmatpush2.bf16.msra.mxu0 %v3988_v26  ;;  %v3842_v26 = vcombine.low %v219_v21, %v220_v22 }
  0x27   :  { %1607 = vmatpush2.bf16.msra.mxu1 %v3989_v28  ;;  %1319 = vmatprep.subr.bf16.mxu0 %v4322_v0  ;;  %v30_v28 = vld [vmem:[%s6598_s0 + $0x2c] sm:$0xf] }
  0x28   :  { %1608 = vmatprep.subr.bf16.mxu1 %v4322_v0  ;;  %v3747_v47 = vcombine.low %v29_v27, %v30_v28 }
  0x2a   :  { %1320 = vmatpush2.bf16.msra.mxu0 %v3990_v31  ;;  %v157_v31 = vmul.bf16 %v29_v27, %v29_v27 }
  0x2b   :  { %1609 = vmatpush2.bf16.msra.mxu1 %v3991_v32  ;;  %1321 = vmatprep.subr.bf16.mxu0 %v4322_v0  ;;  %v158_v32 = vmul.bf16 %v30_v28, %v30_v28 }
  0x2c   :  { %1610 = vmatprep.subr.bf16.mxu1 %v4322_v0 }
  0x2e   :  { %1322 = vmatpush2.bf16.msra.mxu0 %v3992_v33  ;;  %v221_v33 = vmul.bf16 %v93_v29, %v93_v29 }
  0x2f   :  { %1611 = vmatpush2.bf16.msra.mxu1 %v3993_v34  ;;  %1323 = vmatprep.subr.bf16.mxu0 %v4322_v0  ;;  %v222_v34 = vmul.bf16 %v94_v30, %v94_v30 }
  0x30   :  { %1612 = vmatprep.subr.bf16.mxu1 %v4322_v0 }
  0x32   :  { %1324 = vmatpush2.bf16.msra.mxu0 %v3994_v35  ;;  %v3746_v35 = vcombine.low %v27_v15, %v28_v16 }
  0x33   :  { %1613 = vmatpush2.bf16.msra.mxu1 %v3995_v36  ;;  %1325 = vmatprep.subr.bf16.mxu0 %v4322_v0  ;;  %v3810_v36 = vcombine.low %v91_v17, %v92_v18 }
  0x34   :  { %1614 = vmatprep.subr.bf16.mxu1 %v4322_v0 }
  0x36   :  { %1326 = vmatpush2.bf16.msra.mxu0 %v3996_v37  ;;  %v3779_v37 = vcombine.low %v157_v31, %v158_v32 }
  0x37   :  { %1615 = vmatpush2.bf16.msra.mxu1 %v3997_v38  ;;  %1327 = vmatprep.subr.bf16.mxu0 %v4322_v0  ;;  %v3843_v38 = vcombine.low %v221_v33, %v222_v34 }
  0x38   :  { %1616 = vmatprep.subr.bf16.mxu1 %v4322_v0 }
  0x3a   :  { %1328 = vmatpush2.bf16.msra.mxu0 %v3998_v39  ;;  %v31_v39 = vld [vmem:[%s6598_s0 + $0x30] sm:$0xf] }
  0x3b   :  { %1617 = vmatpush2.bf16.msra.mxu1 %v3999_v40  ;;  %1329 = vmatprep.subr.bf16.mxu0 %v4322_v0  ;;  %v32_v40 = vld [vmem:[%s6598_s0 + $0x34] sm:$0xf] }
  0x3c   :  { %1618 = vmatprep.subr.bf16.mxu1 %v4322_v0  ;;  %v3807_v0 = vcombine.low %v85_v43, %v86_v44  ;;  %v159_v43 = vmul.bf16 %v31_v39, %v31_v39  ;;  %v160_v44 = vmul.bf16 %v32_v40, %v32_v40  ;;  %v3748_v59 = vcombine.low %v31_v39, %v32_v40 }
  0x3e   :  { %1330 = vmatpush2.bf16.msra.mxu0 %v4000_v45  ;;  %v223_v45 = vmul.bf16 %v95_v41, %v95_v41  ;;  %v3780_v49 = vcombine.low %v159_v43, %v160_v44 }
  0x3f   :  { %1619 = vmatpush2.bf16.msra.mxu1 %v4001_v48  ;;  %v3811_v48 = vcombine.low %v93_v29, %v94_v30 }
  0x40   :  { %v3844_v50 = vcombine.low %v223_v45, %v224_v46 }
  0x41   :  { %1332 = vmatmul.mubr.bf16.vlgmr.msra.gmra.mxu0 %v3742_v51  ;;  %v33_v51 = vld [vmem:[%s6598_s0 + $0x38] sm:$0xf] }
  0x42   :  { %1621 = vmatmul.mubr.bf16.vlgmr.msra.gmra.mxu1 %v3806_v52  ;;  %1339 = vmatprep.mubr.bf16.mxu0 %v3775_v53  ;;  %v34_v52 = vld [vmem:[%s6598_s0 + $0x3c] sm:$0xf]  ;;  %v97_v53 = vld [vmem:[%s6599_s1 + $0x38] sm:$0xf]  ;;  %v161_v55 = vmul.bf16 %v33_v51, %v33_v51 }
  0x43   :  { %1628 = vmatprep.mubr.bf16.mxu1 %v3839_v54  ;;  %v98_v54 = vld [vmem:[%s6599_s1 + $0x3c] sm:$0xf]  ;;  %v162_v56 = vmul.bf16 %v34_v52, %v34_v52  ;;  %v225_v57 = vmul.bf16 %v97_v53, %v97_v53  ;;  %v3749_v7 = vcombine.low %v33_v51, %v34_v52 }
  0x44   :  { %v226_v58 = vmul.bf16 %v98_v54, %v98_v54  ;;  %v3813_v8 = vcombine.low %v97_v53, %v98_v54 }
  0x45   :  { %v3781_v61 = vcombine.low %v161_v55, %v162_v56 }
  0x46   :  { %v3845_v62 = vcombine.low %v225_v57, %v226_v58 }
  0x49   :  { %1340 = vmatmul.mubr.bf16.gmra.mxu0 %v3743_v63  ;;  %v35_v63 = vld [vmem:[%s6598_s0 + $0x40] sm:$0xf] }
  0x4a   :  { %1629 = vmatmul.mubr.bf16.gmra.mxu1 %v3807_v0  ;;  %1347 = vmatprep.mubr.bf16.mxu0 %v3776_v1  ;;  %v36_v0 = vld [vmem:[%s6598_s0 + $0x44] sm:$0xf]  ;;  %v99_v1 = vld [vmem:[%s6599_s1 + $0x40] sm:$0xf]  ;;  %v163_v3 = vmul.bf16 %v35_v63, %v35_v63 }
  0x4b   :  { %1636 = vmatprep.mubr.bf16.mxu1 %v3840_v2  ;;  %v100_v2 = vld [vmem:[%s6599_s1 + $0x44] sm:$0xf]  ;;  %v164_v4 = vmul.bf16 %v36_v0, %v36_v0  ;;  %v227_v5 = vmul.bf16 %v99_v1, %v99_v1  ;;  %v3750_v19 = vcombine.low %v35_v63, %v36_v0 }
  0x4c   :  { %v228_v6 = vmul.bf16 %v100_v2, %v100_v2  ;;  %v3814_v20 = vcombine.low %v99_v1, %v100_v2 }
  0x4d   :  { %v3782_v9 = vcombine.low %v163_v3, %v164_v4 }
  0x4e   :  { %v3846_v10 = vcombine.low %v227_v5, %v228_v6 }
  0x51   :  { %1348 = vmatmul.mubr.bf16.gmra.mxu0 %v3744_v11  ;;  %v37_v11 = vld [vmem:[%s6598_s0 + $0x48] sm:$0xf] }
  0x52   :  { %1637 = vmatmul.mubr.bf16.gmra.mxu1 %v3808_v12  ;;  %1355 = vmatprep.mubr.bf16.mxu0 %v3777_v13  ;;  %v38_v12 = vld [vmem:[%s6598_s0 + $0x4c] sm:$0xf]  ;;  %v101_v13 = vld [vmem:[%s6599_s1 + $0x48] sm:$0xf]  ;;  %v165_v15 = vmul.bf16 %v37_v11, %v37_v11 }
  0x53   :  { %1644 = vmatprep.mubr.bf16.mxu1 %v3841_v14  ;;  %v102_v14 = vld [vmem:[%s6599_s1 + $0x4c] sm:$0xf]  ;;  %v166_v16 = vmul.bf16 %v38_v12, %v38_v12  ;;  %v229_v17 = vmul.bf16 %v101_v13, %v101_v13  ;;  %v3751_v31 = vcombine.low %v37_v11, %v38_v12 }
  0x54   :  { %v230_v18 = vmul.bf16 %v102_v14, %v102_v14  ;;  %v3815_v32 = vcombine.low %v101_v13, %v102_v14 }
  0x55   :  { %v3783_v21 = vcombine.low %v165_v15, %v166_v16 }
  0x56   :  { %v3847_v22 = vcombine.low %v229_v17, %v230_v18 }
  0x59   :  { %1356 = vmatmul.mubr.bf16.gmra.mxu0 %v3745_v23  ;;  %v39_v23 = vld [vmem:[%s6598_s0 + $0x50] sm:$0xf] }
  0x5a   :  { %1645 = vmatmul.mubr.bf16.gmra.mxu1 %v3809_v24  ;;  %1363 = vmatprep.mubr.bf16.mxu0 %v3778_v25  ;;  %v40_v24 = vld [vmem:[%s6598_s0 + $0x54] sm:$0xf]  ;;  %v103_v25 = vld [vmem:[%s6599_s1 + $0x50] sm:$0xf]  ;;  %v167_v27 = vmul.bf16 %v39_v23, %v39_v23 }
  0x5b   :  { %1652 = vmatprep.mubr.bf16.mxu1 %v3842_v26  ;;  %v104_v26 = vld [vmem:[%s6599_s1 + $0x54] sm:$0xf]  ;;  %v168_v28 = vmul.bf16 %v40_v24, %v40_v24  ;;  %v231_v29 = vmul.bf16 %v103_v25, %v103_v25  ;;  %v3752_v43 = vcombine.low %v39_v23, %v40_v24 }
  0x5c   :  { %v232_v30 = vmul.bf16 %v104_v26, %v104_v26  ;;  %v3816_v44 = vcombine.low %v103_v25, %v104_v26 }
  0x5d   :  { %v3784_v33 = vcombine.low %v167_v27, %v168_v28 }
  0x5e   :  { %v3848_v34 = vcombine.low %v231_v29, %v232_v30 }
  0x61   :  { %1364 = vmatmul.mubr.bf16.gmra.mxu0 %v3746_v35  ;;  %v41_v35 = vld [vmem:[%s6598_s0 + $0x58] sm:$0xf] }
  0x62   :  { %1653 = vmatmul.mubr.bf16.gmra.mxu1 %v3810_v36  ;;  %1371 = vmatprep.mubr.bf16.mxu0 %v3779_v37  ;;  %v42_v36 = vld [vmem:[%s6598_s0 + $0x5c] sm:$0xf]  ;;  %v105_v37 = vld [vmem:[%s6599_s1 + $0x58] sm:$0xf]  ;;  %v169_v39 = vmul.bf16 %v41_v35, %v41_v35 }
  0x63   :  { %1660 = vmatprep.mubr.bf16.mxu1 %v3843_v38  ;;  %v106_v38 = vld [vmem:[%s6599_s1 + $0x5c] sm:$0xf]  ;;  %v170_v40 = vmul.bf16 %v42_v36, %v42_v36  ;;  %v233_v41 = vmul.bf16 %v105_v37, %v105_v37  ;;  %v3753_v55 = vcombine.low %v41_v35, %v42_v36 }
  0x64   :  { %v234_v42 = vmul.bf16 %v106_v38, %v106_v38  ;;  %v3817_v56 = vcombine.low %v105_v37, %v106_v38 }
  0x65   :  { %v3785_v45 = vcombine.low %v169_v39, %v170_v40 }
  0x66   :  { %v3849_v46 = vcombine.low %v233_v41, %v234_v42 }
  0x69   :  { %1372 = vmatmul.mubr.bf16.gmra.mxu0 %v3747_v47  ;;  %v43_v47 = vld [vmem:[%s6598_s0 + $0x60] sm:$0xf] }
  0x6a   :  { %1661 = vmatmul.mubr.bf16.gmra.mxu1 %v3811_v48  ;;  %1379 = vmatprep.mubr.bf16.mxu0 %v3780_v49  ;;  %v44_v48 = vld [vmem:[%s6598_s0 + $0x64] sm:$0xf]  ;;  %v107_v49 = vld [vmem:[%s6599_s1 + $0x60] sm:$0xf]  ;;  %v171_v51 = vmul.bf16 %v43_v47, %v43_v47 }
  0x6b   :  { %1668 = vmatprep.mubr.bf16.mxu1 %v3844_v50  ;;  %v108_v50 = vld [vmem:[%s6599_s1 + $0x64] sm:$0xf]  ;;  %v172_v52 = vmul.bf16 %v44_v48, %v44_v48  ;;  %v235_v53 = vmul.bf16 %v107_v49, %v107_v49  ;;  %v3754_v3 = vcombine.low %v43_v47, %v44_v48 }
  0x6c   :  { %v236_v54 = vmul.bf16 %v108_v50, %v108_v50  ;;  %v3818_v4 = vcombine.low %v107_v49, %v108_v50 }
  0x6d   :  { %v3786_v57 = vcombine.low %v171_v51, %v172_v52 }
  0x6e   :  { %v3850_v58 = vcombine.low %v235_v53, %v236_v54 }
  0x71   :  { %1380 = vmatmul.mubr.bf16.gmra.mxu0 %v3748_v59  ;;  %v45_v59 = vld [vmem:[%s6598_s0 + $0x68] sm:$0xf] }
  0x72   :  { %1669 = vmatmul.mubr.bf16.gmra.mxu1 %v3812_v60  ;;  %1387 = vmatprep.mubr.bf16.mxu0 %v3781_v61  ;;  %v46_v60 = vld [vmem:[%s6598_s0 + $0x6c] sm:$0xf]  ;;  %v109_v61 = vld [vmem:[%s6599_s1 + $0x68] sm:$0xf]  ;;  %v173_v63 = vmul.bf16 %v45_v59, %v45_v59 }
  0x73   :  { %1676 = vmatprep.mubr.bf16.mxu1 %v3845_v62  ;;  %v110_v62 = vld [vmem:[%s6599_s1 + $0x6c] sm:$0xf]  ;;  %v174_v0 = vmul.bf16 %v46_v60, %v46_v60  ;;  %v237_v1 = vmul.bf16 %v109_v61, %v109_v61  ;;  %v3755_v15 = vcombine.low %v45_v59, %v46_v60 }
  0x74   :  { %v238_v2 = vmul.bf16 %v110_v62, %v110_v62  ;;  %v3819_v16 = vcombine.low %v109_v61, %v110_v62 }
  0x75   :  { %v3787_v5 = vcombine.low %v173_v63, %v174_v0 }
  0x76   :  { %v3851_v6 = vcombine.low %v237_v1, %v238_v2 }
  0x79   :  { %1388 = vmatmul.mubr.bf16.gmra.mxu0 %v3749_v7  ;;  %v47_v7 = vld [vmem:[%s6598_s0 + $0x70] sm:$0xf] }
  0x7a   :  { %1677 = vmatmul.mubr.bf16.gmra.mxu1 %v3813_v8  ;;  %1395 = vmatprep.mubr.bf16.mxu0 %v3782_v9  ;;  %v48_v8 = vld [vmem:[%s6598_s0 + $0x74] sm:$0xf]  ;;  %v111_v9 = vld [vmem:[%s6599_s1 + $0x70] sm:$0xf]  ;;  %v175_v11 = vmul.bf16 %v47_v7, %v47_v7 }
  0x7b   :  { %1684 = vmatprep.mubr.bf16.mxu1 %v3846_v10  ;;  %v112_v10 = vld [vmem:[%s6599_s1 + $0x74] sm:$0xf]  ;;  %v176_v12 = vmul.bf16 %v48_v8, %v48_v8  ;;  %v239_v13 = vmul.bf16 %v111_v9, %v111_v9  ;;  %v3756_v27 = vcombine.low %v47_v7, %v48_v8 }
  0x7c   :  { %v240_v14 = vmul.bf16 %v112_v10, %v112_v10  ;;  %v3820_v28 = vcombine.low %v111_v9, %v112_v10 }
  0x7d   :  { %v3788_v17 = vcombine.low %v175_v11, %v176_v12 }
  0x7e   :  { %v3852_v18 = vcombine.low %v239_v13, %v240_v14 }
  0x81   :  { %1396 = vmatmul.mubr.bf16.gmra.mxu0 %v3750_v19  ;;  %v49_v19 = vld [vmem:[%s6598_s0 + $0x78] sm:$0xf] }
  0x82   :  { %1685 = vmatmul.mubr.bf16.gmra.mxu1 %v3814_v20  ;;  %1403 = vmatprep.mubr.bf16.mxu0 %v3783_v21  ;;  %v50_v20 = vld [vmem:[%s6598_s0 + $0x7c] sm:$0xf]  ;;  %v113_v21 = vld [vmem:[%s6599_s1 + $0x78] sm:$0xf]  ;;  %v177_v23 = vmul.bf16 %v49_v19, %v49_v19 }
  0x83   :  { %1692 = vmatprep.mubr.bf16.mxu1 %v3847_v22  ;;  %v114_v22 = vld [vmem:[%s6599_s1 + $0x7c] sm:$0xf]  ;;  %v178_v24 = vmul.bf16 %v50_v20, %v50_v20  ;;  %v241_v25 = vmul.bf16 %v113_v21, %v113_v21  ;;  %v3757_v39 = vcombine.low %v49_v19, %v50_v20 }
  0x84   :  { %v242_v26 = vmul.bf16 %v114_v22, %v114_v22  ;;  %v3821_v40 = vcombine.low %v113_v21, %v114_v22 }
  0x85   :  { %v3789_v29 = vcombine.low %v177_v23, %v178_v24 }
  0x86   :  { %v3853_v30 = vcombine.low %v241_v25, %v242_v26 }
  0x89   :  { %1404 = vmatmul.mubr.bf16.gmra.mxu0 %v3751_v31  ;;  %v51_v31 = vld [vmem:[%s6598_s0 + $0x80] sm:$0xf] }
  0x8a   :  { %1693 = vmatmul.mubr.bf16.gmra.mxu1 %v3815_v32  ;;  %1411 = vmatprep.mubr.bf16.mxu0 %v3784_v33  ;;  %v52_v32 = vld [vmem:[%s6598_s0 + $0x84] sm:$0xf]  ;;  %v115_v33 = vld [vmem:[%s6599_s1 + $0x80] sm:$0xf]  ;;  %v179_v35 = vmul.bf16 %v51_v31, %v51_v31 }
  0x8b   :  { %1700 = vmatprep.mubr.bf16.mxu1 %v3848_v34  ;;  %v116_v34 = vld [vmem:[%s6599_s1 + $0x84] sm:$0xf]  ;;  %v180_v36 = vmul.bf16 %v52_v32, %v52_v32  ;;  %v243_v37 = vmul.bf16 %v115_v33, %v115_v33  ;;  %v3758_v51 = vcombine.low %v51_v31, %v52_v32 }
  0x8c   :  { %v244_v38 = vmul.bf16 %v116_v34, %v116_v34  ;;  %v3822_v52 = vcombine.low %v115_v33, %v116_v34 }
  0x8d   :  { %v3790_v41 = vcombine.low %v179_v35, %v180_v36 }
  0x8e   :  { %v3854_v42 = vcombine.low %v243_v37, %v244_v38 }
  0x91   :  { %1412 = vmatmul.mubr.bf16.gmra.mxu0 %v3752_v43  ;;  %v53_v43 = vld [vmem:[%s6598_s0 + $0x88] sm:$0xf] }
  0x92   :  { %1701 = vmatmul.mubr.bf16.gmra.mxu1 %v3816_v44  ;;  %1419 = vmatprep.mubr.bf16.mxu0 %v3785_v45  ;;  %v54_v44 = vld [vmem:[%s6598_s0 + $0x8c] sm:$0xf]  ;;  %v117_v45 = vld [vmem:[%s6599_s1 + $0x88] sm:$0xf]  ;;  %v181_v47 = vmul.bf16 %v53_v43, %v53_v43 }
  0x93   :  { %1708 = vmatprep.mubr.bf16.mxu1 %v3849_v46  ;;  %v118_v46 = vld [vmem:[%s6599_s1 + $0x8c] sm:$0xf]  ;;  %v182_v48 = vmul.bf16 %v54_v44, %v54_v44  ;;  %v245_v49 = vmul.bf16 %v117_v45, %v117_v45  ;;  %v3759_v63 = vcombine.low %v53_v43, %v54_v44 }
  0x94   :  { %v246_v50 = vmul.bf16 %v118_v46, %v118_v46  ;;  %v3823_v0 = vcombine.low %v117_v45, %v118_v46 }
  0x95   :  { %v3791_v53 = vcombine.low %v181_v47, %v182_v48 }
  0x96   :  { %v3855_v54 = vcombine.low %v245_v49, %v246_v50 }
  0x99   :  { %1420 = vmatmul.mubr.bf16.gmra.mxu0 %v3753_v55  ;;  %v55_v55 = vld [vmem:[%s6598_s0 + $0x90] sm:$0xf] }
  0x9a   :  { %1709 = vmatmul.mubr.bf16.gmra.mxu1 %v3817_v56  ;;  %1427 = vmatprep.mubr.bf16.mxu0 %v3786_v57  ;;  %v56_v56 = vld [vmem:[%s6598_s0 + $0x94] sm:$0xf]  ;;  %v119_v57 = vld [vmem:[%s6599_s1 + $0x90] sm:$0xf]  ;;  %v183_v59 = vmul.bf16 %v55_v55, %v55_v55 }
  0x9b   :  { %1716 = vmatprep.mubr.bf16.mxu1 %v3850_v58  ;;  %v120_v58 = vld [vmem:[%s6599_s1 + $0x94] sm:$0xf]  ;;  %v184_v60 = vmul.bf16 %v56_v56, %v56_v56  ;;  %v247_v61 = vmul.bf16 %v119_v57, %v119_v57  ;;  %v3760_v11 = vcombine.low %v55_v55, %v56_v56 }
  0x9c   :  { %v248_v62 = vmul.bf16 %v120_v58, %v120_v58  ;;  %v3824_v12 = vcombine.low %v119_v57, %v120_v58 }
  0x9d   :  { %v3792_v1 = vcombine.low %v183_v59, %v184_v60 }
  0x9e   :  { %v3856_v2 = vcombine.low %v247_v61, %v248_v62 }
  0xa1   :  { %1428 = vmatmul.mubr.bf16.gmra.mxu0 %v3754_v3  ;;  %v57_v3 = vld [vmem:[%s6598_s0 + $0x98] sm:$0xf] }
  0xa2   :  { %1717 = vmatmul.mubr.bf16.gmra.mxu1 %v3818_v4  ;;  %1435 = vmatprep.mubr.bf16.mxu0 %v3787_v5  ;;  %v58_v4 = vld [vmem:[%s6598_s0 + $0x9c] sm:$0xf]  ;;  %v121_v5 = vld [vmem:[%s6599_s1 + $0x98] sm:$0xf]  ;;  %v185_v7 = vmul.bf16 %v57_v3, %v57_v3 }
  0xa3   :  { %1724 = vmatprep.mubr.bf16.mxu1 %v3851_v6  ;;  %v122_v6 = vld [vmem:[%s6599_s1 + $0x9c] sm:$0xf]  ;;  %v186_v8 = vmul.bf16 %v58_v4, %v58_v4  ;;  %v249_v9 = vmul.bf16 %v121_v5, %v121_v5  ;;  %v3761_v23 = vcombine.low %v57_v3, %v58_v4 }
  0xa4   :  { %v250_v10 = vmul.bf16 %v122_v6, %v122_v6  ;;  %v3825_v24 = vcombine.low %v121_v5, %v122_v6 }
  0xa5   :  { %v3793_v13 = vcombine.low %v185_v7, %v186_v8 }
  0xa6   :  { %v3857_v14 = vcombine.low %v249_v9, %v250_v10 }
  0xa9   :  { %1436 = vmatmul.mubr.bf16.gmra.mxu0 %v3755_v15  ;;  %v59_v15 = vld [vmem:[%s6598_s0 + $0xa0] sm:$0xf] }
  0xaa   :  { %1725 = vmatmul.mubr.bf16.gmra.mxu1 %v3819_v16  ;;  %1443 = vmatprep.mubr.bf16.mxu0 %v3788_v17  ;;  %v60_v16 = vld [vmem:[%s6598_s0 + $0xa4] sm:$0xf]  ;;  %v123_v17 = vld [vmem:[%s6599_s1 + $0xa0] sm:$0xf]  ;;  %v187_v19 = vmul.bf16 %v59_v15, %v59_v15 }
  0xab   :  { %1732 = vmatprep.mubr.bf16.mxu1 %v3852_v18  ;;  %v124_v18 = vld [vmem:[%s6599_s1 + $0xa4] sm:$0xf]  ;;  %v188_v20 = vmul.bf16 %v60_v16, %v60_v16  ;;  %v251_v21 = vmul.bf16 %v123_v17, %v123_v17  ;;  %v3762_v35 = vcombine.low %v59_v15, %v60_v16 }
  0xac   :  { %v252_v22 = vmul.bf16 %v124_v18, %v124_v18  ;;  %v3826_v36 = vcombine.low %v123_v17, %v124_v18 }
  0xad   :  { %v3794_v25 = vcombine.low %v187_v19, %v188_v20 }
  0xae   :  { %v3858_v26 = vcombine.low %v251_v21, %v252_v22 }
  0xb1   :  { %1444 = vmatmul.mubr.bf16.gmra.mxu0 %v3756_v27  ;;  %v61_v27 = vld [vmem:[%s6598_s0 + $0xa8] sm:$0xf] }
  0xb2   :  { %1733 = vmatmul.mubr.bf16.gmra.mxu1 %v3820_v28  ;;  %1451 = vmatprep.mubr.bf16.mxu0 %v3789_v29  ;;  %v62_v28 = vld [vmem:[%s6598_s0 + $0xac] sm:$0xf]  ;;  %v125_v29 = vld [vmem:[%s6599_s1 + $0xa8] sm:$0xf]  ;;  %v189_v31 = vmul.bf16 %v61_v27, %v61_v27 }
  0xb3   :  { %1740 = vmatprep.mubr.bf16.mxu1 %v3853_v30  ;;  %v126_v30 = vld [vmem:[%s6599_s1 + $0xac] sm:$0xf]  ;;  %v190_v32 = vmul.bf16 %v62_v28, %v62_v28  ;;  %v253_v33 = vmul.bf16 %v125_v29, %v125_v29  ;;  %v3763_v47 = vcombine.low %v61_v27, %v62_v28 }
  0xb4   :  { %v254_v34 = vmul.bf16 %v126_v30, %v126_v30  ;;  %v3827_v48 = vcombine.low %v125_v29, %v126_v30 }
  0xb5   :  { %v3795_v37 = vcombine.low %v189_v31, %v190_v32 }
  0xb6   :  { %v3859_v38 = vcombine.low %v253_v33, %v254_v34 }
  0xb9   :  { %1452 = vmatmul.mubr.bf16.gmra.mxu0 %v3757_v39  ;;  %v63_v39 = vld [vmem:[%s6598_s0 + $0xb0] sm:$0xf] }
  0xba   :  { %1741 = vmatmul.mubr.bf16.gmra.mxu1 %v3821_v40  ;;  %1459 = vmatprep.mubr.bf16.mxu0 %v3790_v41  ;;  %v64_v40 = vld [vmem:[%s6598_s0 + $0xb4] sm:$0xf]  ;;  %v127_v41 = vld [vmem:[%s6599_s1 + $0xb0] sm:$0xf]  ;;  %v191_v43 = vmul.bf16 %v63_v39, %v63_v39 }
  0xbb   :  { %1748 = vmatprep.mubr.bf16.mxu1 %v3854_v42  ;;  %v128_v42 = vld [vmem:[%s6599_s1 + $0xb4] sm:$0xf]  ;;  %v192_v44 = vmul.bf16 %v64_v40, %v64_v40  ;;  %v255_v45 = vmul.bf16 %v127_v41, %v127_v41  ;;  %v3764_v59 = vcombine.low %v63_v39, %v64_v40 }
  0xbc   :  { %v256_v46 = vmul.bf16 %v128_v42, %v128_v42  ;;  %v3828_v60 = vcombine.low %v127_v41, %v128_v42 }
  0xbd   :  { %v3796_v49 = vcombine.low %v191_v43, %v192_v44  ;;  %v4832_v44 = vld [vmem:[%s6598_s0 + $0xd8] sm:$0xf] }
  0xbe   :  { %v3860_v50 = vcombine.low %v255_v45, %v256_v46  ;;  %v74_v45 = vld [vmem:[%s6598_s0 + $0xdc] sm:$0xf] }
  0xc1   :  { %1460 = vmatmul.mubr.bf16.gmra.mxu0 %v3758_v51  ;;  %v65_v51 = vld [vmem:[%s6598_s0 + $0xb8] sm:$0xf] }
  0xc2   :  { %1749 = vmatmul.mubr.bf16.gmra.mxu1 %v3822_v52  ;;  %1467 = vmatprep.mubr.bf16.mxu0 %v3791_v53  ;;  %v66_v52 = vld [vmem:[%s6598_s0 + $0xbc] sm:$0xf]  ;;  %v129_v53 = vld [vmem:[%s6599_s1 + $0xb8] sm:$0xf]  ;;  %v193_v55 = vmul.bf16 %v65_v51, %v65_v51 }
  0xc3   :  { %1756 = vmatprep.mubr.bf16.mxu1 %v3855_v54  ;;  %v130_v54 = vld [vmem:[%s6599_s1 + $0xbc] sm:$0xf]  ;;  %v194_v56 = vmul.bf16 %v66_v52, %v66_v52  ;;  %v257_v57 = vmul.bf16 %v129_v53, %v129_v53  ;;  %v3765_v7 = vcombine.low %v65_v51, %v66_v52  ;;  %v201_v51 = vmul.bf16 %v4832_v44, %v4832_v44 }
  0xc4   :  { %v258_v58 = vmul.bf16 %v130_v54, %v130_v54  ;;  %v3829_v8 = vcombine.low %v129_v53, %v130_v54  ;;  %v202_v52 = vmul.bf16 %v74_v45, %v74_v45 }
  0xc5   :  { %v3797_v61 = vcombine.low %v193_v55, %v194_v56 }
  0xc6   :  { %v3861_v62 = vcombine.low %v257_v57, %v258_v58 }
  0xc9   :  { %1468 = vmatmul.mubr.bf16.gmra.mxu0 %v3759_v63  ;;  %v67_v63 = vld [vmem:[%s6598_s0 + $0xc0] sm:$0xf] }
  0xca   :  { %1757 = vmatmul.mubr.bf16.gmra.mxu1 %v3823_v0  ;;  %1475 = vmatprep.mubr.bf16.mxu0 %v3792_v1  ;;  %v68_v0 = vld [vmem:[%s6598_s0 + $0xc4] sm:$0xf]  ;;  %v131_v1 = vld [vmem:[%s6599_s1 + $0xc0] sm:$0xf]  ;;  %v195_v3 = vmul.bf16 %v67_v63, %v67_v63 }
  0xcb   :  { %1764 = vmatprep.mubr.bf16.mxu1 %v3856_v2  ;;  %v132_v2 = vld [vmem:[%s6599_s1 + $0xc4] sm:$0xf]  ;;  %v196_v4 = vmul.bf16 %v68_v0, %v68_v0  ;;  %v259_v5 = vmul.bf16 %v131_v1, %v131_v1  ;;  %v3766_v19 = vcombine.low %v67_v63, %v68_v0 }
  0xcc   :  { %v260_v6 = vmul.bf16 %v132_v2, %v132_v2  ;;  %v3830_v20 = vcombine.low %v131_v1, %v132_v2  ;;  %v4856_v2 = vld [vmem:[%s6598_s0 + $0xe0] sm:$0xf] }
  0xcd   :  { %v3798_v9 = vcombine.low %v195_v3, %v196_v4  ;;  %v76_v3 = vld [vmem:[%s6598_s0 + $0xe4] sm:$0xf] }
  0xce   :  { %v3862_v10 = vcombine.low %v259_v5, %v260_v6  ;;  %v139_v5 = vld [vmem:[%s6599_s1 + $0xe0] sm:$0xf]  ;;  %v140_v6 = vld [vmem:[%s6599_s1 + $0xe4] sm:$0xf] }
  0xd1   :  { %1476 = vmatmul.mubr.bf16.gmra.mxu0 %v3760_v11  ;;  %v69_v11 = vld [vmem:[%s6598_s0 + $0xc8] sm:$0xf] }
  0xd2   :  { %1765 = vmatmul.mubr.bf16.gmra.mxu1 %v3824_v12  ;;  %1483 = vmatprep.mubr.bf16.mxu0 %v3793_v13  ;;  %v70_v12 = vld [vmem:[%s6598_s0 + $0xcc] sm:$0xf]  ;;  %v133_v13 = vld [vmem:[%s6599_s1 + $0xc8] sm:$0xf]  ;;  %v197_v15 = vmul.bf16 %v69_v11, %v69_v11 }
  0xd3   :  { %1772 = vmatprep.mubr.bf16.mxu1 %v3857_v14  ;;  %v134_v14 = vld [vmem:[%s6599_s1 + $0xcc] sm:$0xf]  ;;  %v198_v16 = vmul.bf16 %v70_v12, %v70_v12  ;;  %v261_v17 = vmul.bf16 %v133_v13, %v133_v13 }
  0xd4   :  { %v262_v18 = vmul.bf16 %v134_v14, %v134_v14  ;;  %v3831_v39 = vcombine.low %v133_v13, %v134_v14  ;;  %v267_v13 = vmul.bf16 %v139_v5, %v139_v5  ;;  %v268_v14 = vmul.bf16 %v140_v6, %v140_v6 }
  0xd5   :  { %v3799_v21 = vcombine.low %v197_v15, %v198_v16 }
  0xd6   :  { %v3863_v22 = vcombine.low %v261_v17, %v262_v18  ;;  %v3769_v17 = vcombine.low %v4832_v44, %v74_v45 }
  0xd9   :  { %1484 = vmatmul.mubr.bf16.gmra.mxu0 %v3761_v23  ;;  %v71_v23 = vld [vmem:[%s6598_s0 + $0xd0] sm:$0xf] }
  0xda   :  { %1773 = vmatmul.mubr.bf16.gmra.mxu1 %v3825_v24  ;;  %1491 = vmatprep.mubr.bf16.mxu0 %v3794_v25  ;;  %v72_v24 = vld [vmem:[%s6598_s0 + $0xd4] sm:$0xf]  ;;  %v135_v25 = vld [vmem:[%s6599_s1 + $0xd0] sm:$0xf]  ;;  %v199_v29 = vmul.bf16 %v71_v23, %v71_v23 }
  0xdb   :  { %1780 = vmatprep.mubr.bf16.mxu1 %v3858_v26  ;;  %v136_v26 = vld [vmem:[%s6599_s1 + $0xd4] sm:$0xf]  ;;  %v200_v30 = vmul.bf16 %v72_v24, %v72_v24  ;;  %v263_v33 = vmul.bf16 %v135_v25, %v135_v25 }
  0xdc   :  { %v264_v34 = vmul.bf16 %v136_v26, %v136_v26 }
  0xdd   :  { %v3800_v40 = vcombine.low %v199_v29, %v200_v30 }
  0xde   :  { %v3864_v43 = vcombine.low %v263_v33, %v264_v34 }
  0xe1   :  { %1492 = vmatmul.mubr.bf16.gmra.mxu0 %v3762_v35 }
  0xe2   :  { %1781 = vmatmul.mubr.bf16.gmra.mxu1 %v3826_v36  ;;  %1499 = vmatprep.mubr.bf16.mxu0 %v3795_v37  ;;  %v3767_v37 = vcombine.low %v69_v11, %v70_v12 }
  0xe3   :  { %1788 = vmatprep.mubr.bf16.mxu1 %v3859_v38 }
  0xe9   :  { %1500 = vmatmul.mubr.bf16.gmra.mxu0 %v3763_v47  ;;  %v137_v47 = vld [vmem:[%s6599_s1 + $0xd8] sm:$0xf] }
  0xea   :  { %1789 = vmatmul.mubr.bf16.gmra.mxu1 %v3827_v48  ;;  %1507 = vmatprep.mubr.bf16.mxu0 %v3796_v49  ;;  %v138_v48 = vld [vmem:[%s6599_s1 + $0xdc] sm:$0xf]  ;;  %v265_v55 = vmul.bf16 %v137_v47, %v137_v47 }
  0xeb   :  { %1796 = vmatprep.mubr.bf16.mxu1 %v3860_v50  ;;  %v266_v56 = vmul.bf16 %v138_v48, %v138_v48 }
  0xed   :  { %v3865_v1 = vcombine.low %v265_v55, %v266_v56 }
  0xf1   :  { %1508 = vmatmul.mubr.bf16.gmra.mxu0 %v3764_v59  ;;  %v3768_v59 = vcombine.low %v71_v23, %v72_v24  ;;  %v3866_v23 = vcombine.low %v267_v13, %v268_v14  ;;  %v4881_v24 = vld [vmem:[%s6598_s0 + $0xe8] sm:$0xf]  ;;  %v146_v13 = vld [vmem:[%s6599_s1 + $0xfc] sm:$0xf] }
  0xf2   :  { %1797 = vmatmul.mubr.bf16.gmra.mxu1 %v3828_v60  ;;  %1515 = vmatprep.mubr.bf16.mxu0 %v3797_v61  ;;  %v3832_v61 = vcombine.low %v135_v25, %v136_v26  ;;  %v78_v25 = vld [vmem:[%s6598_s0 + $0xec] sm:$0xf] }
  0xf3   :  { %1804 = vmatprep.mubr.bf16.mxu1 %v3861_v62  ;;  %v3801_v62 = vcombine.low %v201_v51, %v202_v52  ;;  %v206_v33 = vmul.bf16 %v78_v25, %v78_v25  ;;  %v143_v51 = vld [vmem:[%s6599_s1 + $0xf0] sm:$0xf]  ;;  %v144_v52 = vld [vmem:[%s6599_s1 + $0xf4] sm:$0xf] }
  0xf9   :  { %1516 = vmatmul.mubr.bf16.gmra.mxu0 %v3765_v7 }
  0xfa   :  { %1805 = vmatmul.mubr.bf16.gmra.mxu1 %v3829_v8  ;;  %1523 = vmatprep.mubr.bf16.mxu0 %v3798_v9  ;;  %v203_v9 = vmul.bf16 %v4856_v2, %v4856_v2 }
  0xfb   :  { %1812 = vmatprep.mubr.bf16.mxu1 %v3862_v10  ;;  %v204_v10 = vmul.bf16 %v76_v3, %v76_v3 }
 0x101   :  { %v1333_v27 = vpop.f32.mrf.mxu0  ;;  %1524 = vmatmul.mubr.bf16.gmra.mxu0 %v3766_v19  ;;  %v3833_v19 = vcombine.low %v137_v47, %v138_v48  ;;  %v79_v48 = vld [vmem:[%s6598_s0 + $0xf0] sm:$0xf] }
 0x102   :  { %v1622_v28 = vpop.f32.mrf.mxu1  ;;  %1813 = vmatmul.mubr.bf16.gmra.mxu1 %v3830_v20  ;;  %1531 = vmatprep.mubr.bf16.mxu0 %v3799_v21  ;;  %v3802_v20 = vcombine.low %v203_v9, %v204_v10  ;;  %v207_v56 = vmul.bf16 %v79_v48, %v79_v48  ;;  %v82_v9 = vld [vmem:[%s6598_s0 + $0xfc] sm:$0xf] }
 0x103   :  { %v4823_v31 = vadd.f32 %v1622_v28, %v1333_v27  ;;  %v1335_v32 = vpop.f32.mrf.mxu0  ;;  %1820 = vmatprep.mubr.bf16.mxu1 %v3863_v22  ;;  %v141_v27 = vld [vmem:[%s6599_s1 + $0xe8] sm:$0xf]  ;;  %v142_v28 = vld [vmem:[%s6599_s1 + $0xec] sm:$0xf] }
 0x104   :  { %v1624_v35 = vpop.f32.mrf.mxu1  ;;  %v205_v32 = vmul.bf16 %v4881_v24, %v4881_v24 }
 0x105   :  { %1941 = vrot.lane.b32.xlu0 %v4823_v31, %s4323_s27  ;;  %v1336_v36 = vpop.f32.mrf.mxu0 }
 0x106   :  { %v1625_v38 = vpop.f32.mrf.mxu1  ;;  %v3803_v44 = vcombine.low %v205_v32, %v206_v33 }
 0x107   :  { %v4827_v41 = vadd.f32 %v1625_v38, %v1336_v36  ;;  %v1338_v42 = vpop.f32.mrf.mxu0  ;;  %v269_v36 = vmul.bf16 %v141_v27, %v141_v27 }
 0x108   :  { %v1627_v46 = vpop.f32.mrf.mxu1 }
 0x109   :  { %1943 = vrot.lane.b32.xlu0 %v4827_v41, %s4323_s27  ;;  %v1341_v49 = vpop.f32.mrf.mxu0  ;;  %1532 = vmatmul.mubr.bf16.gmra.mxu0 %v3767_v37  ;;  %v270_v37 = vmul.bf16 %v142_v28, %v142_v28 }
 0x10a   :  { %v1630_v50 = vpop.f32.mrf.mxu1  ;;  %1821 = vmatmul.mubr.bf16.gmra.mxu1 %v3831_v39  ;;  %1539 = vmatprep.mubr.bf16.mxu0 %v3800_v40  ;;  %v3770_v40 = vcombine.low %v4856_v2, %v76_v3  ;;  %v3835_v3 = vcombine.low %v141_v27, %v142_v28  ;;  %v3836_v27 = vcombine.low %v143_v51, %v144_v52 }
 0x10b   :  { %v4847_v53 = vadd.f32 %v1630_v50, %v1341_v49  ;;  %v1343_v54 = vpop.f32.mrf.mxu0  ;;  %1828 = vmatprep.mubr.bf16.mxu1 %v3864_v43  ;;  %v3834_v43 = vcombine.low %v139_v5, %v140_v6  ;;  %v3867_v47 = vcombine.low %v269_v36, %v270_v37  ;;  %v80_v49 = vld [vmem:[%s6598_s0 + $0xf4] sm:$0xf] }
 0x10c   :  { %v1632_v57 = vpop.f32.mrf.mxu1 }
 0x10d   :  { %1945 = vrot.lane.b32.xlu1 %v4847_v53, %s4323_s27  ;;  %v1344_v58 = vpop.f32.mrf.mxu0  ;;  %v208_v57 = vmul.bf16 %v80_v49, %v80_v49 }
 0x10e   :  { %v1633_v60 = vpop.f32.mrf.mxu1 }
 0x10f   :  { %v4851_v63 = vadd.f32 %v1633_v60, %v1344_v58  ;;  %v1346_v0 = vpop.f32.mrf.mxu0  ;;  %v271_v60 = vmul.bf16 %v143_v51, %v143_v51 }
 0x110   :  { %v1635_v4 = vpop.f32.mrf.mxu1 }
 0x111   :  { %1947 = vrot.lane.b32.xlu1 %v4851_v63, %s4323_s27  ;;  %v1349_v7 = vpop.f32.mrf.mxu0  ;;  %1540 = vmatmul.mubr.bf16.gmra.mxu0 %v3768_v59  ;;  %v3804_v4 = vcombine.low %v207_v56, %v208_v57 }
 0x112   :  { %v1638_v8 = vpop.f32.mrf.mxu1  ;;  %1829 = vmatmul.mubr.bf16.gmra.mxu1 %v3832_v61  ;;  %1547 = vmatprep.mubr.bf16.mxu0 %v3801_v62  ;;  %v272_v61 = vmul.bf16 %v144_v52, %v144_v52 }
 0x113   :  { %v4871_v11 = vadd.f32 %v1638_v8, %v1349_v7  ;;  %v1351_v12 = vpop.f32.mrf.mxu0  ;;  %1836 = vmatprep.mubr.bf16.mxu1 %v3865_v1  ;;  %v3771_v1 = vcombine.low %v4881_v24, %v78_v25  ;;  %v81_v8 = vld [vmem:[%s6598_s0 + $0xf8] sm:$0xf]  ;;  %v3772_v25 = vcombine.low %v79_v48, %v80_v49  ;;  %s4324_s0 = smov 127  }
 0x114   :  { %v1640_v15 = vpop.f32.mrf.mxu1  ;;  %v3868_v7 = vcombine.low %v271_v60, %v272_v61  ;;  %v145_v12 = vld [vmem:[%s6599_s1 + $0xf8] sm:$0xf] }
 0x115   :  { %1949 = vrot.lane.b32.xlu0 %v4871_v11, %s4323_s27  ;;  %v1352_v16 = vpop.f32.mrf.mxu0 }
 0x116   :  { %v1641_v18 = vpop.f32.mrf.mxu1 }
 0x117   :  { %v4876_v21 = vadd.f32 %v1641_v18, %v1352_v16  ;;  %v1354_v22 = vpop.f32.mrf.mxu0  ;;  %v209_v16 = vmul.bf16 %v81_v8, %v81_v8 }
 0x118   :  { %v1643_v26 = vpop.f32.mrf.mxu1  ;;  %v274_v22 = vmul.bf16 %v146_v13, %v146_v13 }
 0x119   :  { %1951 = vrot.lane.b32.xlu1 %v4876_v21, %s4323_s27  ;;  %v1357_v29 = vpop.f32.mrf.mxu0  ;;  %1548 = vmatmul.mubr.bf16.gmra.mxu0 %v3769_v17  ;;  %v210_v17 = vmul.bf16 %v82_v9, %v82_v9 }
 0x11a   :  { %v1646_v30 = vpop.f32.mrf.mxu1  ;;  %1837 = vmatmul.mubr.bf16.gmra.mxu1 %v3833_v19  ;;  %1555 = vmatprep.mubr.bf16.mxu0 %v3802_v20  ;;  %v273_v20 = vmul.bf16 %v145_v12, %v145_v12 }
 0x11b   :  { %v4896_v34 = vadd.f32 %v1646_v30, %v1357_v29  ;;  %v1359_v35 = vpop.f32.mrf.mxu0  ;;  %1844 = vmatprep.mubr.bf16.mxu1 %v3866_v23  ;;  %v3805_v28 = vcombine.low %v209_v16, %v210_v17 }
 0x11c   :  { %v1648_v38 = vpop.f32.mrf.mxu1  ;;  %v3869_v32 = vcombine.low %v273_v20, %v274_v22 }
 0x11d   :  { %1953 = vrot.lane.b32.xlu0 %v4896_v34, %s4323_s27  ;;  %v1360_v39 = vpop.f32.mrf.mxu0 }
 0x11e   :  { %v1649_v42 = vpop.f32.mrf.mxu1 }
 0x11f   :  { %v4901_v45 = vadd.f32 %v1649_v42, %v1360_v39  ;;  %v1362_v46 = vpop.f32.mrf.mxu0  ;;  %v3773_v42 = vcombine.low %v81_v8, %v82_v9 }
 0x120   :  { %v1651_v50 = vpop.f32.mrf.mxu1 }
 0x121   :  { %1955 = vrot.lane.b32.xlu1 %v4901_v45, %s4323_s27  ;;  %v1365_v54 = vpop.f32.mrf.mxu0  ;;  %1556 = vmatmul.mubr.bf16.gmra.mxu0 %v3770_v40 }
 0x122   :  { %v1654_v55 = vpop.f32.mrf.mxu1  ;;  %1845 = vmatmul.mubr.bf16.gmra.mxu1 %v3834_v43  ;;  %1563 = vmatprep.mubr.bf16.mxu0 %v3803_v44  ;;  %v3837_v44 = vcombine.low %v145_v12, %v146_v13 }
 0x123   :  { %v4917_v58 = vadd.f32 %v1654_v55, %v1365_v54  ;;  %v1367_v59 = vpop.f32.mrf.mxu0  ;;  %1852 = vmatprep.mubr.bf16.mxu1 %v3867_v47 }
 0x124   :  { %v1656_v62 = vpop.f32.mrf.mxu1 }
 0x125   :  { %1957 = vrot.lane.b32.xlu0 %v4917_v58, %s4323_s27  ;;  %v1368_v0 = vpop.f32.mrf.mxu0 }
 0x126   :  { %v1657_v2 = vpop.f32.mrf.mxu1 }
 0x127   :  { %v4922_v5 = vadd.f32 %v1657_v2, %v1368_v0  ;;  %v1370_v6 = vpop.f32.mrf.mxu0 }
 0x128   :  { %v1659_v10 = vpop.f32.mrf.mxu1 }
 0x129   :  { %1959 = vrot.lane.b32.xlu1 %v4922_v5, %s4323_s27  ;;  %v1373_v14 = vpop.f32.mrf.mxu0  ;;  %1564 = vmatmul.mubr.bf16.gmra.mxu0 %v3771_v1 }
 0x12a   :  { %v1662_v15 = vpop.f32.mrf.mxu1  ;;  %1853 = vmatmul.mubr.bf16.gmra.mxu1 %v3835_v3  ;;  %1571 = vmatprep.mubr.bf16.mxu0 %v3804_v4 }
 0x12b   :  { %v4938_v18 = vadd.f32 %v1662_v15, %v1373_v14  ;;  %v1375_v19 = vpop.f32.mrf.mxu0  ;;  %1860 = vmatprep.mubr.bf16.mxu1 %v3868_v7 }
 0x12c   :  { %v1664_v23 = vpop.f32.mrf.mxu1 }
 0x12d   :  { %1961 = vrot.lane.b32.xlu0 %v4938_v18, %s4323_s27  ;;  %v1376_v24 = vpop.f32.mrf.mxu0 }
 0x12e   :  { %v1665_v26 = vpop.f32.mrf.mxu1 }
 0x12f   :  { %v4942_v29 = vadd.f32 %v1665_v26, %v1376_v24  ;;  %v1378_v30 = vpop.f32.mrf.mxu0 }
 0x130   :  { %v1667_v33 = vpop.f32.mrf.mxu1 }
 0x131   :  { %1963 = vrot.lane.b32.xlu1 %v4942_v29, %s4323_s27  ;;  %v1381_v35 = vpop.f32.mrf.mxu0  ;;  %1572 = vmatmul.mubr.bf16.gmra.mxu0 %v3772_v25 }
 0x132   :  { %v1670_v36 = vpop.f32.mrf.mxu1  ;;  %1861 = vmatmul.mubr.bf16.gmra.mxu1 %v3836_v27  ;;  %1579 = vmatprep.mubr.bf16.mxu0 %v3805_v28 }
 0x133   :  { %v4946_v37 = vadd.f32 %v1670_v36, %v1381_v35  ;;  %v1383_v38 = vpop.f32.mrf.mxu0  ;;  %1868 = vmatprep.mubr.bf16.mxu1 %v3869_v32 }
 0x134   :  { %v1672_v39 = vpop.f32.mrf.mxu1 }
 0x135   :  { %1965 = vrot.lane.b32.xlu0 %v4946_v37, %s4323_s27  ;;  %v1384_v40 = vpop.f32.mrf.mxu0 }
 0x136   :  { %v1673_v43 = vpop.f32.mrf.mxu1 }
 0x137   :  { %v4950_v46 = vadd.f32 %v1673_v43, %v1384_v40  ;;  %v1386_v47 = vpop.f32.mrf.mxu0 }
 0x138   :  { %v1675_v48 = vpop.f32.mrf.mxu1 }
 0x139   :  { %1967 = vrot.lane.b32.xlu1 %v4950_v46, %s4323_s27  ;;  %v1389_v49 = vpop.f32.mrf.mxu0  ;;  %1580 = vmatmul.mubr.bf16.gmra.mxu0 %v3773_v42 }
 0x13a   :  { %v1678_v50 = vpop.f32.mrf.mxu1  ;;  %1869 = vmatmul.mubr.bf16.gmra.mxu1 %v3837_v44 }
 0x13b   :  { %v4954_v51 = vadd.f32 %v1678_v50, %v1389_v49  ;;  %v1391_v52 = vpop.f32.mrf.mxu0 }
 0x13c   :  { %v1680_v54 = vpop.f32.mrf.mxu1 }
 0x13d   :  { %1969 = vrot.lane.b32.xlu0 %v4954_v51, %s4323_s27  ;;  %v1392_v55 = vpop.f32.mrf.mxu0 }
 0x13e   :  { %v1681_v56 = vpop.f32.mrf.mxu1 }
 0x13f   :  { %v4958_v57 = vadd.f32 %v1681_v56, %v1392_v55  ;;  %v1394_v59 = vpop.f32.mrf.mxu0 }
 0x140   :  { %v1683_v60 = vpop.f32.mrf.mxu1 }
 0x141   :  { %1971 = vrot.lane.b32.xlu1 %v4958_v57, %s4323_s27  ;;  %v1397_v61 = vpop.f32.mrf.mxu0 }
 0x142   :  { %v1686_v62 = vpop.f32.mrf.mxu1 }
 0x143   :  { %v4962_v0 = vadd.f32 %v1686_v62, %v1397_v61  ;;  %v1399_v1 = vpop.f32.mrf.mxu0 }
 0x144   :  { %v1688_v2 = vpop.f32.mrf.mxu1 }
 0x145   :  { %1973 = vrot.lane.b32.xlu0 %v4962_v0, %s4323_s27  ;;  %v1400_v3 = vpop.f32.mrf.mxu0 }
 0x146   :  { %v1689_v4 = vpop.f32.mrf.mxu1 }
 0x147   :  { %v4966_v6 = vadd.f32 %v1689_v4, %v1400_v3  ;;  %v1402_v7 = vpop.f32.mrf.mxu0 }
 0x148   :  { %v1691_v8 = vpop.f32.mrf.mxu1 }
 0x149   :  { %1975 = vrot.lane.b32.xlu1 %v4966_v6, %s4323_s27  ;;  %v1405_v9 = vpop.f32.mrf.mxu0 }
 0x14a   :  { %v1694_v10 = vpop.f32.mrf.mxu1 }
 0x14b   :  { %v4970_v12 = vadd.f32 %v1694_v10, %v1405_v9  ;;  %v1407_v13 = vpop.f32.mrf.mxu0 }
 0x14c   :  { %v1696_v14 = vpop.f32.mrf.mxu1 }
 0x14d   :  { %1977 = vrot.lane.b32.xlu0 %v4970_v12, %s4323_s27  ;;  %v1408_v15 = vpop.f32.mrf.mxu0 }
 0x14e   :  { %v1697_v16 = vpop.f32.mrf.mxu1 }
 0x14f   :  { %v4974_v17 = vadd.f32 %v1697_v16, %v1408_v15  ;;  %v1410_v19 = vpop.f32.mrf.mxu0 }
 0x150   :  { %v1699_v20 = vpop.f32.mrf.mxu1 }
 0x151   :  { %1979 = vrot.lane.b32.xlu1 %v4974_v17, %s4323_s27  ;;  %v1413_v22 = vpop.f32.mrf.mxu0 }
 0x152   :  { %v1702_v23 = vpop.f32.mrf.mxu1 }
 0x153   :  { %v4978_v24 = vadd.f32 %v1702_v23, %v1413_v22  ;;  %v1415_v25 = vpop.f32.mrf.mxu0 }
 0x154   :  { %v1704_v26 = vpop.f32.mrf.mxu1 }
 0x155   :  { %1981 = vrot.lane.b32.xlu0 %v4978_v24, %s4323_s27  ;;  %v1416_v27 = vpop.f32.mrf.mxu0 }
 0x156   :  { %v1705_v28 = vpop.f32.mrf.mxu1 }
 0x157   :  { %v4982_v30 = vadd.f32 %v1705_v28, %v1416_v27  ;;  %v1418_v32 = vpop.f32.mrf.mxu0 }
 0x158   :  { %v1707_v33 = vpop.f32.mrf.mxu1 }
 0x159   :  { %1983 = vrot.lane.b32.xlu1 %v4982_v30, %s4323_s27  ;;  %v1421_v35 = vpop.f32.mrf.mxu0 }
 0x15a   :  { %v1710_v36 = vpop.f32.mrf.mxu1 }
 0x15b   :  { %v4986_v38 = vadd.f32 %v1710_v36, %v1421_v35  ;;  %v1423_v39 = vpop.f32.mrf.mxu0 }
 0x15c   :  { %v1712_v40 = vpop.f32.mrf.mxu1 }
 0x15d   :  { %1985 = vrot.lane.b32.xlu0 %v4986_v38, %s4323_s27  ;;  %v1424_v42 = vpop.f32.mrf.mxu0 }
 0x15e   :  { %v1713_v43 = vpop.f32.mrf.mxu1 }
 0x15f   :  { %v4990_v44 = vadd.f32 %v1713_v43, %v1424_v42  ;;  %v1426_v47 = vpop.f32.mrf.mxu0 }
 0x160   :  { %v1715_v48 = vpop.f32.mrf.mxu1 }
 0x161   :  { %1987 = vrot.lane.b32.xlu1 %v4990_v44, %s4323_s27  ;;  %v1429_v49 = vpop.f32.mrf.mxu0 }
 0x162   :  { %v1718_v50 = vpop.f32.mrf.mxu1 }
 0x163   :  { %v4994_v52 = vadd.f32 %v1718_v50, %v1429_v49  ;;  %v1431_v54 = vpop.f32.mrf.mxu0 }
 0x164   :  { %v1720_v55 = vpop.f32.mrf.mxu1 }
 0x165   :  { %1989 = vrot.lane.b32.xlu0 %v4994_v52, %s4323_s27  ;;  %v1432_v56 = vpop.f32.mrf.mxu0 }
 0x166   :  { %v1721_v59 = vpop.f32.mrf.mxu1 }
 0x167   :  { %v4998_v60 = vadd.f32 %v1721_v59, %v1432_v56  ;;  %v1434_v61 = vpop.f32.mrf.mxu0 }
 0x168   :  { %v1723_v62 = vpop.f32.mrf.mxu1 }
 0x169   :  { %1991 = vrot.lane.b32.xlu1 %v4998_v60, %s4323_s27  ;;  %v1437_v1 = vpop.f32.mrf.mxu0 }
 0x16a   :  { %v1726_v2 = vpop.f32.mrf.mxu1 }
 0x16b   :  { %v5002_v3 = vadd.f32 %v1726_v2, %v1437_v1  ;;  %v1439_v4 = vpop.f32.mrf.mxu0 }
 0x16c   :  { %v1728_v7 = vpop.f32.mrf.mxu1 }
 0x16d   :  { %1993 = vrot.lane.b32.xlu0 %v5002_v3, %s4323_s27  ;;  %v1440_v8 = vpop.f32.mrf.mxu0 }
 0x16e   :  { %v1729_v9 = vpop.f32.mrf.mxu1 }
 0x16f   :  { %v5006_v10 = vadd.f32 %v1729_v9, %v1440_v8  ;;  %v1442_v13 = vpop.f32.mrf.mxu0 }
 0x170   :  { %v1731_v14 = vpop.f32.mrf.mxu1 }
 0x171   :  { %1995 = vrot.lane.b32.xlu1 %v5006_v10, %s4323_s27  ;;  %v1445_v15 = vpop.f32.mrf.mxu0 }
 0x172   :  { %v1734_v16 = vpop.f32.mrf.mxu1 }
 0x173   :  { %v5010_v19 = vadd.f32 %v1734_v16, %v1445_v15  ;;  %v1447_v20 = vpop.f32.mrf.mxu0 }
 0x174   :  { %v1736_v22 = vpop.f32.mrf.mxu1 }
 0x175   :  { %1997 = vrot.lane.b32.xlu0 %v5010_v19, %s4323_s27  ;;  %v1448_v23 = vpop.f32.mrf.mxu0 }
 0x176   :  { %v1737_v25 = vpop.f32.mrf.mxu1 }
 0x177   :  { %v5014_v26 = vadd.f32 %v1737_v25, %v1448_v23  ;;  %v1942_v27 = vpop.permute.xlu0 %1941  ;;  %v1450_v28 = vpop.f32.mrf.mxu0 }
 0x178   :  { %v5017_v32 = vadd.f32 %v1942_v27, %v4823_v31  ;;  %v1739_v33 = vpop.f32.mrf.mxu1 }
 0x179   :  { %1999 = vrot.lane.b32.xlu1 %v5014_v26, %s4323_s27  ;;  %v1453_v35 = vpop.f32.mrf.mxu0 }
 0x17a   :  { %v2197_v36 = vmul.f32 %v5017_v32, %v5017_v32  ;;  %v1742_v39 = vpop.f32.mrf.mxu1 }
 0x17b   :  { %v1944_v40 = vpop.permute.xlu0 %1943  ;;  %v1455_v42 = vpop.f32.mrf.mxu0  ;;  %v5023_v43 = vadd.f32 %v1742_v39, %v1453_v35 }
 0x17c   :  { %v5026_v47 = vadd.f32 %v1944_v40, %v4827_v41  ;;  %v1744_v48 = vpop.f32.mrf.mxu1  ;;  %2325 = vrot.lane.b32.xlu0 %v2197_v36, %s4324_s0 }
 0x17d   :  { %v1456_v31 = vpop.f32.mrf.mxu0 }
 0x17e   :  { %v2198_v49 = vmul.f32 %v5026_v47, %v5026_v47  ;;  %v1745_v50 = vpop.f32.mrf.mxu1 }
 0x17f   :  { %v1946_v54 = vpop.permute.xlu1 %1945  ;;  %v1458_v55 = vpop.f32.mrf.mxu0  ;;  %v5037_v61 = vadd.f32 %v1745_v50, %v1456_v31 }
 0x180   :  { %v5032_v56 = vadd.f32 %v1946_v54, %v4847_v53  ;;  %v1747_v59 = vpop.f32.mrf.mxu1  ;;  %2327 = vrot.lane.b32.xlu1 %v2198_v49, %s4324_s0  ;;  %2001 = vrot.lane.b32.xlu0 %v5023_v43, %s4323_s27 }
 0x181   :  { %v1461_v41 = vpop.f32.mrf.mxu0 }
 0x182   :  { %v2199_v62 = vmul.f32 %v5032_v56, %v5032_v56  ;;  %v1750_v1 = vpop.f32.mrf.mxu1 }
 0x183   :  { %v1948_v2 = vpop.permute.xlu1 %1947  ;;  %v1463_v4 = vpop.f32.mrf.mxu0  ;;  %v5041_v7 = vadd.f32 %v1750_v1, %v1461_v41 }
 0x184   :  { %v5044_v53 = vadd.f32 %v1948_v2, %v4851_v63  ;;  %v1752_v8 = vpop.f32.mrf.mxu1  ;;  %2329 = vrot.lane.b32.xlu0 %v2199_v62, %s4324_s0  ;;  %2003 = vrot.lane.b32.xlu1 %v5037_v61, %s4323_s27 }
 0x185   :  { %v1464_v9 = vpop.f32.mrf.mxu0 }
 0x186   :  { %v2200_v13 = vmul.f32 %v5044_v53, %v5044_v53  ;;  %v1753_v14 = vpop.f32.mrf.mxu1 }
 0x187   :  { %v1950_v15 = vpop.permute.xlu0 %1949  ;;  %v1466_v16 = vpop.f32.mrf.mxu0  ;;  %v5057_v23 = vadd.f32 %v1753_v14, %v1464_v9 }
 0x188   :  { %v5052_v20 = vadd.f32 %v1950_v15, %v4871_v11  ;;  %v1755_v22 = vpop.f32.mrf.mxu1  ;;  %2331 = vrot.lane.b32.xlu1 %v2200_v13, %s4324_s0  ;;  %2005 = vrot.lane.b32.xlu0 %v5041_v7, %s4323_s27 }
 0x189   :  { %v1469_v63 = vpop.f32.mrf.mxu0 }
 0x18a   :  { %v2201_v25 = vmul.f32 %v5052_v20, %v5052_v20  ;;  %v1758_v27 = vpop.f32.mrf.mxu1 }
 0x18b   :  { %v1952_v28 = vpop.permute.xlu1 %1951  ;;  %v1471_v33 = vpop.f32.mrf.mxu0  ;;  %v5061_v35 = vadd.f32 %v1758_v27, %v1469_v63 }
 0x18c   :  { %v5064_v11 = vadd.f32 %v1952_v28, %v4876_v21  ;;  %v1760_v36 = vpop.f32.mrf.mxu1  ;;  %2333 = vrot.lane.b32.xlu0 %v2201_v25, %s4324_s0  ;;  %2007 = vrot.lane.b32.xlu1 %v5057_v23, %s4323_s27 }
 0x18d   :  { %v1472_v39 = vpop.f32.mrf.mxu0 }
 0x18e   :  { %v2202_v40 = vmul.f32 %v5064_v11, %v5064_v11  ;;  %v1761_v42 = vpop.f32.mrf.mxu1 }
 0x18f   :  { %v1954_v48 = vpop.permute.xlu0 %1953  ;;  %v1474_v31 = vpop.f32.mrf.mxu0  ;;  %v5077_v54 = vadd.f32 %v1761_v42, %v1472_v39 }
 0x190   :  { %v5072_v49 = vadd.f32 %v1954_v48, %v4896_v34  ;;  %v1763_v50 = vpop.f32.mrf.mxu1  ;;  %2335 = vrot.lane.b32.xlu1 %v2202_v40, %s4324_s0  ;;  %2009 = vrot.lane.b32.xlu0 %v5061_v35, %s4323_s27 }
 0x191   :  { %v1477_v21 = vpop.f32.mrf.mxu0 }
 0x192   :  { %v2203_v55 = vmul.f32 %v5072_v49, %v5072_v49  ;;  %v1766_v59 = vpop.f32.mrf.mxu1 }
 0x193   :  { %v1956_v41 = vpop.permute.xlu1 %1955  ;;  %v1479_v62 = vpop.f32.mrf.mxu0  ;;  %v5081_v1 = vadd.f32 %v1766_v59, %v1477_v21 }
 0x194   :  { %v5084_v34 = vadd.f32 %v1956_v41, %v4901_v45  ;;  %v1768_v2 = vpop.f32.mrf.mxu1  ;;  %2337 = vrot.lane.b32.xlu0 %v2203_v55, %s4324_s0  ;;  %2011 = vrot.lane.b32.xlu1 %v5077_v54, %s4323_s27 }
 0x195   :  { %v1480_v4 = vpop.f32.mrf.mxu0 }
 0x196   :  { %v2204_v8 = vmul.f32 %v5084_v34, %v5084_v34  ;;  %v1769_v9 = vpop.f32.mrf.mxu1 }
 0x197   :  { %v1958_v13 = vpop.permute.xlu0 %1957  ;;  %v1482_v14 = vpop.f32.mrf.mxu0  ;;  %v5097_v22 = vadd.f32 %v1769_v9, %v1480_v4 }
 0x198   :  { %v5092_v15 = vadd.f32 %v1958_v13, %v4917_v58  ;;  %v1771_v16 = vpop.f32.mrf.mxu1  ;;  %2339 = vrot.lane.b32.xlu1 %v2204_v8, %s4324_s0  ;;  %2013 = vrot.lane.b32.xlu0 %v5081_v1, %s4323_s27 }
 0x199   :  { %v1485_v45 = vpop.f32.mrf.mxu0 }
 0x19a   :  { %v2205_v63 = vmul.f32 %v5092_v15, %v5092_v15  ;;  %v1774_v25 = vpop.f32.mrf.mxu1 }
 0x19b   :  { %v1960_v27 = vpop.permute.xlu1 %1959  ;;  %v1487_v28 = vpop.f32.mrf.mxu0  ;;  %v5101_v33 = vadd.f32 %v1774_v25, %v1485_v45 }
 0x19c   :  { %v5104_v58 = vadd.f32 %v1960_v27, %v4922_v5  ;;  %v1776_v36 = vpop.f32.mrf.mxu1  ;;  %2341 = vrot.lane.b32.xlu0 %v2205_v63, %s4324_s0  ;;  %2015 = vrot.lane.b32.xlu1 %v5097_v22, %s4323_s27 }
 0x19d   :  { %v1488_v39 = vpop.f32.mrf.mxu0 }
 0x19e   :  { %v2206_v40 = vmul.f32 %v5104_v58, %v5104_v58  ;;  %v1777_v42 = vpop.f32.mrf.mxu1 }
 0x19f   :  { %v1962_v48 = vpop.permute.xlu0 %1961  ;;  %v1490_v31 = vpop.f32.mrf.mxu0  ;;  %v5117_v55 = vadd.f32 %v1777_v42, %v1488_v39 }
 0x1a0   :  { %v5112_v50 = vadd.f32 %v1962_v48, %v4938_v18  ;;  %v1779_v21 = vpop.f32.mrf.mxu1  ;;  %2343 = vrot.lane.b32.xlu1 %v2206_v40, %s4324_s0  ;;  %2017 = vrot.lane.b32.xlu0 %v5101_v33, %s4323_s27 }
 0x1a1   :  { %v1493_v5 = vpop.f32.mrf.mxu0 }
 0x1a2   :  { %v2207_v59 = vmul.f32 %v5112_v50, %v5112_v50  ;;  %v1782_v41 = vpop.f32.mrf.mxu1 }
 0x1a3   :  { %v1964_v62 = vpop.permute.xlu1 %1963  ;;  %v1495_v2 = vpop.f32.mrf.mxu0  ;;  %v5121_v4 = vadd.f32 %v1782_v41, %v1493_v5 }
 0x1a4   :  { %v5124_v18 = vadd.f32 %v1964_v62, %v4942_v29  ;;  %v1784_v8 = vpop.f32.mrf.mxu1  ;;  %2345 = vrot.lane.b32.xlu0 %v2207_v59, %s4324_s0  ;;  %2019 = vrot.lane.b32.xlu1 %v5117_v55, %s4323_s27 }
 0x1a5   :  { %v1496_v9 = vpop.f32.mrf.mxu0 }
 0x1a6   :  { %v2208_v13 = vmul.f32 %v5124_v18, %v5124_v18  ;;  %v1785_v14 = vpop.f32.mrf.mxu1 }
 0x1a7   :  { %v1966_v16 = vpop.permute.xlu0 %1965  ;;  %v1498_v45 = vpop.f32.mrf.mxu0  ;;  %v5137_v27 = vadd.f32 %v1785_v14, %v1496_v9 }
 0x1a8   :  { %v5132_v63 = vadd.f32 %v1966_v16, %v4946_v37  ;;  %v1787_v25 = vpop.f32.mrf.mxu1  ;;  %2347 = vrot.lane.b32.xlu1 %v2208_v13, %s4324_s0  ;;  %2021 = vrot.lane.b32.xlu0 %v5121_v4, %s4323_s27 }
 0x1a9   :  { %v1501_v29 = vpop.f32.mrf.mxu0 }
 0x1aa   :  { %v2209_v28 = vmul.f32 %v5132_v63, %v5132_v63  ;;  %v1790_v36 = vpop.f32.mrf.mxu1 }
 0x1ab   :  { %v1968_v39 = vpop.permute.xlu1 %1967  ;;  %v1503_v40 = vpop.f32.mrf.mxu0  ;;  %v5141_v42 = vadd.f32 %v1790_v36, %v1501_v29 }
 0x1ac   :  { %v5144_v37 = vadd.f32 %v1968_v39, %v4950_v46  ;;  %v1792_v48 = vpop.f32.mrf.mxu1  ;;  %2349 = vrot.lane.b32.xlu0 %v2209_v28, %s4324_s0  ;;  %2023 = vrot.lane.b32.xlu1 %v5137_v27, %s4323_s27 }
 0x1ad   :  { %v1504_v31 = vpop.f32.mrf.mxu0 }
 0x1ae   :  { %v2210_v21 = vmul.f32 %v5144_v37, %v5144_v37  ;;  %v1793_v5 = vpop.f32.mrf.mxu1 }
 0x1af   :  { %v1970_v59 = vpop.permute.xlu0 %1969  ;;  %v1506_v41 = vpop.f32.mrf.mxu0  ;;  %v5157_v8 = vadd.f32 %v1793_v5, %v1504_v31 }
 0x1b0   :  { %v5152_v62 = vadd.f32 %v1970_v59, %v4954_v51  ;;  %v1795_v2 = vpop.f32.mrf.mxu1  ;;  %2351 = vrot.lane.b32.xlu1 %v2210_v21, %s4324_s0  ;;  %2025 = vrot.lane.b32.xlu0 %v5141_v42, %s4323_s27 }
 0x1b1   :  { %v1509_v46 = vpop.f32.mrf.mxu0 }
 0x1b2   :  { %v2211_v9 = vmul.f32 %v5152_v62, %v5152_v62  ;;  %v1798_v13 = vpop.f32.mrf.mxu1 }
 0x1b3   :  { %v1972_v14 = vpop.permute.xlu1 %1971  ;;  %v1511_v16 = vpop.f32.mrf.mxu0  ;;  %v5161_v45 = vadd.f32 %v1798_v13, %v1509_v46 }
 0x1b4   :  { %v5164_v51 = vadd.f32 %v1972_v14, %v4958_v57  ;;  %v1800_v25 = vpop.f32.mrf.mxu1  ;;  %2353 = vrot.lane.b32.xlu0 %v2211_v9, %s4324_s0  ;;  %2027 = vrot.lane.b32.xlu1 %v5157_v8, %s4323_s27 }
 0x1b5   :  { %v1512_v29 = vpop.f32.mrf.mxu0 }
 0x1b6   :  { %6646 = vst [vmem:[#allocation3_spill] sm:$0xff] %v5164_v51  ;;  %v2212_v28 = vmul.f32 %v5164_v51, %v5164_v51  ;;  %v1801_v36 = vpop.f32.mrf.mxu1 }
 0x1b7   :  { %v1974_v39 = vpop.permute.xlu0 %1973  ;;  %v1514_v40 = vpop.f32.mrf.mxu0  ;;  %v5177_v21 = vadd.f32 %v1801_v36, %v1512_v29 }
 0x1b8   :  { %v5172_v48 = vadd.f32 %v1974_v39, %v4962_v0  ;;  %v1803_v31 = vpop.f32.mrf.mxu1  ;;  %2355 = vrot.lane.b32.xlu1 %v2212_v28, %s4324_s0  ;;  %2029 = vrot.lane.b32.xlu0 %v5161_v45, %s4323_s27 }
 0x1b9   :  { %v1517_v57 = vpop.f32.mrf.mxu0 }
 0x1ba   :  { %6647 = vst [vmem:[#allocation4_spill] sm:$0xff] %v5172_v48  ;;  %v2213_v5 = vmul.f32 %v5172_v48, %v5172_v48  ;;  %v1806_v59 = vpop.f32.mrf.mxu1 }
 0x1bb   :  { %v1976_v41 = vpop.permute.xlu1 %1975  ;;  %v1519_v2 = vpop.f32.mrf.mxu0  ;;  %v5181_v46 = vadd.f32 %v1806_v59, %v1517_v57 }
 0x1bc   :  { %v5184_v0 = vadd.f32 %v1976_v41, %v4966_v6  ;;  %v1808_v9 = vpop.f32.mrf.mxu1  ;;  %2357 = vrot.lane.b32.xlu0 %v2213_v5, %s4324_s0  ;;  %2031 = vrot.lane.b32.xlu1 %v5177_v21, %s4323_s27 }
 0x1bd   :  { %v1520_v13 = vpop.f32.mrf.mxu0 }
 0x1be   :  { %6648 = vst [vmem:[#allocation5_spill] sm:$0xff] %v5184_v0  ;;  %v2214_v14 = vmul.f32 %v5184_v0, %v5184_v0  ;;  %v1809_v16 = vpop.f32.mrf.mxu1 }
 0x1bf   :  { %v1978_v25 = vpop.permute.xlu0 %1977  ;;  %v1522_v29 = vpop.f32.mrf.mxu0  ;;  %v5197_v39 = vadd.f32 %v1809_v16, %v1520_v13 }
 0x1c0   :  { %v5192_v28 = vadd.f32 %v1978_v25, %v4970_v12  ;;  %v1811_v36 = vpop.f32.mrf.mxu1  ;;  %2359 = vrot.lane.b32.xlu1 %v2214_v14, %s4324_s0  ;;  %2033 = vrot.lane.b32.xlu0 %v5181_v46, %s4323_s27 }
 0x1c1   :  { %v1525_v6 = vpop.f32.mrf.mxu0 }
 0x1c2   :  { %6649 = vst [vmem:[#allocation6_spill] sm:$0xff] %v5192_v28  ;;  %v2215_v40 = vmul.f32 %v5192_v28, %v5192_v28  ;;  %v1814_v31 = vpop.f32.mrf.mxu1 }
 0x1c3   :  { %v1980_v57 = vpop.permute.xlu1 %1979  ;;  %v1527_v5 = vpop.f32.mrf.mxu0  ;;  %v5201_v59 = vadd.f32 %v1814_v31, %v1525_v6 }
 0x1c4   :  { %v5204_v12 = vadd.f32 %v1980_v57, %v4974_v17  ;;  %v1816_v41 = vpop.f32.mrf.mxu1  ;;  %2361 = vrot.lane.b32.xlu0 %v2215_v40, %s4324_s0  ;;  %2035 = vrot.lane.b32.xlu1 %v5197_v39, %s4323_s27 }
 0x1c5   :  { %v1528_v2 = vpop.f32.mrf.mxu0 }
 0x1c6   :  { %6650 = vst [vmem:[#allocation7_spill] sm:$0xff] %v5204_v12  ;;  %v2216_v9 = vmul.f32 %v5204_v12, %v5204_v12  ;;  %v1817_v13 = vpop.f32.mrf.mxu1 }
 0x1c7   :  { %v1982_v14 = vpop.permute.xlu0 %1981  ;;  %v1530_v16 = vpop.f32.mrf.mxu0  ;;  %v5217_v36 = vadd.f32 %v1817_v13, %v1528_v2 }
 0x1c8   :  { %v5212_v25 = vadd.f32 %v1982_v14, %v4978_v24  ;;  %v1819_v29 = vpop.f32.mrf.mxu1  ;;  %2363 = vrot.lane.b32.xlu1 %v2216_v9, %s4324_s0  ;;  %2037 = vrot.lane.b32.xlu0 %v5201_v59, %s4323_s27 }
 0x1c9   :  { %v1533_v17 = vpop.f32.mrf.mxu0 }
 0x1ca   :  { %6651 = vst [vmem:[#allocation8_spill] sm:$0xff] %v5212_v25  ;;  %v2217_v6 = vmul.f32 %v5212_v25, %v5212_v25  ;;  %v1822_v40 = vpop.f32.mrf.mxu1 }
 0x1cb   :  { %v1984_v31 = vpop.permute.xlu1 %1983  ;;  %v1535_v57 = vpop.f32.mrf.mxu0  ;;  %v5221_v5 = vadd.f32 %v1822_v40, %v1533_v17 }
 0x1cc   :  { %v5224_v24 = vadd.f32 %v1984_v31, %v4982_v30  ;;  %v1824_v41 = vpop.f32.mrf.mxu1  ;;  %2365 = vrot.lane.b32.xlu0 %v2217_v6, %s4324_s0  ;;  %2039 = vrot.lane.b32.xlu1 %v5217_v36, %s4323_s27 }
 0x1cd   :  { %v1536_v9 = vpop.f32.mrf.mxu0 }
 0x1ce   :  { %6652 = vst [vmem:[#allocation9_spill] sm:$0xff] %v5224_v24  ;;  %v2218_v2 = vmul.f32 %v5224_v24, %v5224_v24  ;;  %v1825_v13 = vpop.f32.mrf.mxu1 }
 0x1cf   :  { %v1986_v14 = vpop.permute.xlu0 %1985  ;;  %v1538_v16 = vpop.f32.mrf.mxu0  ;;  %v5237_v6 = vadd.f32 %v1825_v13, %v1536_v9 }
 0x1d0   :  { %v5232_v29 = vadd.f32 %v1986_v14, %v4986_v38  ;;  %v1827_v17 = vpop.f32.mrf.mxu1  ;;  %2367 = vrot.lane.b32.xlu1 %v2218_v2, %s4324_s0  ;;  %2041 = vrot.lane.b32.xlu0 %v5221_v5, %s4323_s27 }
 0x1d1   :  { %v1541_v30 = vpop.f32.mrf.mxu0 }
 0x1d2   :  { %6653 = vst [vmem:[#allocation10_spill] sm:$0xff] %v5232_v29  ;;  %v2219_v40 = vmul.f32 %v5232_v29, %v5232_v29  ;;  %v1830_v31 = vpop.f32.mrf.mxu1 }
 0x1d3   :  { %v1988_v57 = vpop.permute.xlu1 %1987  ;;  %v1543_v41 = vpop.f32.mrf.mxu0  ;;  %v5241_v25 = vadd.f32 %v1830_v31, %v1541_v30 }
 0x1d4   :  { %v5244_v38 = vadd.f32 %v1988_v57, %v4990_v44  ;;  %v1832_v14 = vpop.f32.mrf.mxu1  ;;  %2369 = vrot.lane.b32.xlu0 %v2219_v40, %s4324_s0  ;;  %2043 = vrot.lane.b32.xlu1 %v5237_v6, %s4323_s27 }
 0x1d5   :  { %v1544_v2 = vpop.f32.mrf.mxu0 }
 0x1d6   :  { %6654 = vst [vmem:[#allocation11_spill] sm:$0xff] %v5244_v38  ;;  %v2220_v9 = vmul.f32 %v5244_v38, %v5244_v38  ;;  %v1833_v13 = vpop.f32.mrf.mxu1 }
 0x1d7   :  { %v1990_v16 = vpop.permute.xlu0 %1989  ;;  %v1546_v17 = vpop.f32.mrf.mxu0  ;;  %v5257_v40 = vadd.f32 %v1833_v13, %v1544_v2 }
 0x1d8   :  { %v5252_v41 = vadd.f32 %v1990_v16, %v4994_v52  ;;  %v1835_v30 = vpop.f32.mrf.mxu1  ;;  %2371 = vrot.lane.b32.xlu1 %v2220_v9, %s4324_s0  ;;  %2045 = vrot.lane.b32.xlu0 %v5241_v25, %s4323_s27 }
 0x1d9   :  { %v1549_v44 = vpop.f32.mrf.mxu0 }
 0x1da   :  { %6655 = vst [vmem:[#allocation12_spill] sm:$0xff] %v5252_v41  ;;  %v2221_v31 = vmul.f32 %v5252_v41, %v5252_v41  ;;  %v1838_v57 = vpop.f32.mrf.mxu1 }
 0x1db   :  { %v1992_v14 = vpop.permute.xlu1 %1991  ;;  %v1551_v29 = vpop.f32.mrf.mxu0  ;;  %v5261_v38 = vadd.f32 %v1838_v57, %v1549_v44 }
 0x1dc   :  { %v5264_v52 = vadd.f32 %v1992_v14, %v4998_v60  ;;  %v1840_v16 = vpop.f32.mrf.mxu1  ;;  %2373 = vrot.lane.b32.xlu0 %v2221_v31, %s4324_s0  ;;  %2047 = vrot.lane.b32.xlu1 %v5257_v40, %s4323_s27 }
 0x1dd   :  { %v1552_v9 = vpop.f32.mrf.mxu0 }
 0x1de   :  { %6656 = vst [vmem:[#allocation13_spill] sm:$0xff] %v5264_v52  ;;  %v2222_v2 = vmul.f32 %v5264_v52, %v5264_v52  ;;  %v1841_v13 = vpop.f32.mrf.mxu1 }
 0x1df   :  { %v1994_v17 = vpop.permute.xlu0 %1993  ;;  %v1554_v30 = vpop.f32.mrf.mxu0  ;;  %v5277_v31 = vadd.f32 %v1841_v13, %v1552_v9 }
 0x1e0   :  { %v5272_v29 = vadd.f32 %v1994_v17, %v5002_v3  ;;  %v1843_v44 = vpop.f32.mrf.mxu1  ;;  %2375 = vrot.lane.b32.xlu1 %v2222_v2, %s4324_s0  ;;  %2049 = vrot.lane.b32.xlu0 %v5261_v38, %s4323_s27 }
 0x1e1   :  { %v1557_v60 = vpop.f32.mrf.mxu0 }
 0x1e2   :  { %6657 = vst [vmem:[#allocation14_spill] sm:$0xff] %v5272_v29  ;;  %v2223_v57 = vmul.f32 %v5272_v29, %v5272_v29  ;;  %v1846_v14 = vpop.f32.mrf.mxu1 }
 0x1e3   :  { %v1996_v16 = vpop.permute.xlu1 %1995  ;;  %v1559_v41 = vpop.f32.mrf.mxu0  ;;  %v5281_v52 = vadd.f32 %v1846_v14, %v1557_v60 }
 0x1e4   :  { %v5284_v3 = vadd.f32 %v1996_v16, %v5006_v10  ;;  %v1848_v17 = vpop.f32.mrf.mxu1  ;;  %2377 = vrot.lane.b32.xlu0 %v2223_v57, %s4324_s0  ;;  %2051 = vrot.lane.b32.xlu1 %v5277_v31, %s4323_s27 }
 0x1e5   :  { %v1560_v2 = vpop.f32.mrf.mxu0 }
 0x1e6   :  { %6658 = vst [vmem:[#allocation15_spill] sm:$0xff] %v5284_v3  ;;  %v2224_v9 = vmul.f32 %v5284_v3, %v5284_v3  ;;  %v1849_v13 = vpop.f32.mrf.mxu1 }
 0x1e7   :  { %v1998_v30 = vpop.permute.xlu0 %1997  ;;  %v1562_v44 = vpop.f32.mrf.mxu0  ;;  %v5297_v57 = vadd.f32 %v1849_v13, %v1560_v2 }
 0x1e8   :  { %v5292_v41 = vadd.f32 %v1998_v30, %v5010_v19  ;;  %v1851_v60 = vpop.f32.mrf.mxu1  ;;  %2379 = vrot.lane.b32.xlu1 %v2224_v9, %s4324_s0  ;;  %2053 = vrot.lane.b32.xlu0 %v5281_v52, %s4323_s27 }
 0x1e9   :  { %v1565_v10 = vpop.f32.mrf.mxu0 }
 0x1ea   :  { %6659 = vst [vmem:[#allocation16_spill] sm:$0xff] %v5292_v41  ;;  %v2225_v14 = vmul.f32 %v5292_v41, %v5292_v41  ;;  %v1854_v16 = vpop.f32.mrf.mxu1 }
 0x1eb   :  { %v2000_v17 = vpop.permute.xlu1 %1999  ;;  %v1567_v29 = vpop.f32.mrf.mxu0  ;;  %v5301_v3 = vadd.f32 %v1854_v16, %v1565_v10 }
 0x1ec   :  { %v5304_v19 = vadd.f32 %v2000_v17, %v5014_v26  ;;  %v1856_v30 = vpop.f32.mrf.mxu1  ;;  %2381 = vrot.lane.b32.xlu0 %v2225_v14, %s4324_s0  ;;  %2055 = vrot.lane.b32.xlu1 %v5297_v57, %s4323_s27 }
 0x1ed   :  { %v1568_v9 = vpop.f32.mrf.mxu0 }
 0x1ee   :  { %6660 = vst [vmem:[#allocation17_spill] sm:$0xff] %v5304_v19  ;;  %v2226_v2 = vmul.f32 %v5304_v19, %v5304_v19  ;;  %v1857_v13 = vpop.f32.mrf.mxu1  ;;  %v2326_v48 = vpop.permute.xlu0 %2325 }
 0x1ef   :  { %v1570_v44 = vpop.f32.mrf.mxu0  ;;  %v5314_v29 = vadd.f32 %v1857_v13, %v1568_v9 }
 0x1f0   :  { %v1859_v60 = vpop.f32.mrf.mxu1  ;;  %2383 = vrot.lane.b32.xlu1 %v2226_v2, %s4324_s0  ;;  %2057 = vrot.lane.b32.xlu0 %v5301_v3, %s4323_s27 }
 0x1f1   :  { %v1573_v26 = vpop.f32.mrf.mxu0 }
 0x1f2   :  { %v1862_v10 = vpop.f32.mrf.mxu1  ;;  %v2328_v51 = vpop.permute.xlu1 %2327 }
 0x1f3   :  { %v1575_v14 = vpop.f32.mrf.mxu0 }
 0x1f4   :  { %2059 = vrot.lane.b32.xlu1 %v5314_v29, %s4323_s27  ;;  %v1864_v16 = vpop.f32.mrf.mxu1 }
 0x1f5   :  { %v1576_v17 = vpop.f32.mrf.mxu0  ;;  %v2518_v16 = vsel %vm2517_vm0, %v2326_v48, 0.0 }
 0x1f6   :  { %v1865_v30 = vpop.f32.mrf.mxu1 }
 0x1f7   :  { %v1578_v41 = vpop.f32.mrf.mxu0 }
 0x1f8   :  { %v1867_v19 = vpop.f32.mrf.mxu1  ;;  %v2521_v41 = vsel %vm2517_vm0, %v2328_v51, 0.0 }
 0x1f9   :  { %v1581_v44 = vpop.f32.mrf.mxu0  ;;  %v2002_v19 = vpop.permute.xlu0 %2001 }
 0x1fa   :  { %v1870_v60 = vpop.f32.mrf.mxu1 }
 0x1fb   :  { %v1583_v24 = vpop.f32.mrf.mxu0  ;;  %v5318_v2 = vadd.f32 %v1870_v60, %v1581_v44  ;;  %v5325_v44 = vadd.f32 %v2002_v19, %v5023_v43  ;;  %v5332_v60 = vadd.f32 %v1862_v10, %v1573_v26 }
 0x1fc   :  { %v1872_v12 = vpop.f32.mrf.mxu1  ;;  %v2004_v24 = vpop.permute.xlu1 %2003 }
 0x1fd   :  { %v1584_v28 = vpop.f32.mrf.mxu0  ;;  %6661 = vst [vmem:[#allocation18_spill] sm:$0xff] %v5325_v44  ;;  %v2330_v26 = vpop.permute.xlu0 %2329 }
 0x1fe   :  { %v1873_v0 = vpop.f32.mrf.mxu1  ;;  %v2524_v10 = vsel %vm2517_vm0, %v2330_v26, 0.0 }
 0x1ff   :  { %v1586_v9 = vpop.f32.mrf.mxu0  ;;  %v5320_v13 = vadd.f32 %v1873_v0, %v1584_v28  ;;  %v2227_v0 = vmul.f32 %v5325_v44, %v5325_v44  ;;  %v5330_v28 = vadd.f32 %v2004_v24, %v5037_v61 }
 0x200   :  { %v1875_v14 = vpop.f32.mrf.mxu1  ;;  %v2332_v12 = vpop.permute.xlu1 %2331  ;;  %v5343_v9 = vadd.f32 %v1865_v30, %v1576_v17 }
 0x201   :  { %v2228_v51 = vmul.f32 %v5330_v28, %v5330_v28  ;;  %v2006_v14 = vpop.permute.xlu0 %2005 }
 0x204   :  { %v2008_v48 = vpop.permute.xlu1 %2007 }
 0x205   :  { %v5341_v43 = vadd.f32 %v2008_v48, %v5057_v23  ;;  %v5353_v23 = vadd.f32 %v2006_v14, %v5041_v7  ;;  %v2527_v7 = vsel %vm2517_vm0, %v2332_v12, 0.0 }
 0x207   :  { %v2230_v61 = vmul.f32 %v5341_v43, %v5341_v43  ;;  %6662 = vst [vmem:[#allocation19_spill] sm:$0xff] %v5353_v23  ;;  %v2229_v30 = vmul.f32 %v5353_v23, %v5353_v23 }
 0x208   :  { %v2336_v17 = vpop.permute.xlu1 %2335 }
 0x20c   :  { %v2012_v19 = vpop.permute.xlu1 %2011 }
 0x20d   :  { %v5359_v24 = vadd.f32 %v2012_v19, %v5077_v54 }
 0x20f   :  { %2519 = vadd.xlane.f32.xlu0 %v2518_v16  ;;  %v2334_v16 = vpop.permute.xlu0 %2333 }
 0x210   :  { %v2340_v26 = vpop.permute.xlu1 %2339 }
 0x214   :  { %v2016_v14 = vpop.permute.xlu1 %2015 }
 0x215   :  { %v5377_v12 = vadd.f32 %v2016_v14, %v5097_v22 }
 0x218   :  { %2522 = vadd.xlane.f32.xlu1 %v2521_v41  ;;  %v2530_v41 = vsel %vm2517_vm0, %v2334_v16, 0.0  ;;  %v2234_v16 = vmul.f32 %v5377_v12, %v5377_v12 }
 0x225   :  { %2385 = vrot.lane.b32.xlu0 %v2227_v0, %s4324_s0  ;;  %v2232_v0 = vmul.f32 %v5359_v24, %v5359_v24 }
 0x229   :  { %2387 = vrot.lane.b32.xlu1 %v2228_v51, %s4324_s0  ;;  %2061 = vrot.lane.b32.xlu0 %v5332_v60, %s4323_s27  ;;  %v2010_v51 = vpop.permute.xlu0 %2009 }
 0x22a   :  { %v5369_v54 = vadd.f32 %v2010_v51, %v5061_v35  ;;  %v2533_v35 = vsel %vm2517_vm0, %v2336_v17, 0.0 }
 0x22c   :  { %6663 = vst [vmem:[#allocation20_spill] sm:$0xff] %v5369_v54 }
 0x22d   :  { %2063 = vrot.lane.b32.xlu1 %v5343_v9, %s4323_s27  ;;  %v2338_v48 = vpop.permute.xlu0 %2337 }
 0x231   :  { %2391 = vrot.lane.b32.xlu1 %v2230_v61, %s4324_s0  ;;  %v2536_v61 = vsel %vm2517_vm0, %v2338_v48, 0.0 }
 0x248   :  { %2525 = vadd.xlane.f32.xlu0 %v2524_v10  ;;  %v2231_v10 = vmul.f32 %v5369_v54, %v5369_v54 }
 0x255   :  { %2531 = vadd.xlane.f32.xlu1 %v2530_v41  ;;  %v2014_v41 = vpop.permute.xlu0 %2013 }
 0x25e   :  { %2389 = vrot.lane.b32.xlu0 %v2229_v30, %s4324_s0  ;;  %v2342_v30 = vpop.permute.xlu0 %2341 }
 0x25f   :  { %v2542_v19 = vsel %vm2517_vm0, %v2342_v30, 0.0 }
 0x266   :  { %2067 = vrot.lane.b32.xlu1 %v5320_v13, %s4323_s27 }
 0x26a   :  { %2395 = vrot.lane.b32.xlu1 %v2232_v0, %s4324_s0  ;;  %v2344_v0 = vpop.permute.xlu1 %2343 }
 0x26e   :  { %v2020_v51 = vpop.permute.xlu1 %2019 }
 0x26f   :  { %v5391_v48 = vadd.f32 %v2020_v51, %v5117_v55 }
 0x271   :  { %v2236_v17 = vmul.f32 %v5391_v48, %v5391_v48 }
 0x27d   :  { %2528 = vadd.xlane.f32.xlu0 %v2527_v7  ;;  %v5385_v7 = vadd.f32 %v2014_v41, %v5081_v1 }
 0x27f   :  { %6664 = vst [vmem:[#allocation21_spill] sm:$0xff] %v5385_v7  ;;  %v2233_v22 = vmul.f32 %v5385_v7, %v5385_v7 }
 0x28e   :  { %2537 = vadd.xlane.f32.xlu1 %v2536_v61  ;;  %v2539_v61 = vsel %vm2517_vm0, %v2340_v26, 0.0 }
 0x293   :  { %2065 = vrot.lane.b32.xlu0 %v5318_v2, %s4323_s27 }
 0x297   :  { %2393 = vrot.lane.b32.xlu0 %v2231_v10, %s4324_s0  ;;  %v2018_v10 = vpop.permute.xlu0 %2017 }
 0x29b   :  { %v2346_v1 = vpop.permute.xlu0 %2345 }
 0x29c   :  { %v2548_v14 = vsel %vm2517_vm0, %v2346_v1, 0.0 }
 0x29f   :  { %2399 = vrot.lane.b32.xlu1 %v2234_v16, %s4324_s0  ;;  %v2348_v16 = vpop.permute.xlu1 %2347 }
 0x2a3   :  { %v2024_v41 = vpop.permute.xlu1 %2023 }
 0x2a4   :  { %v5405_v30 = vadd.f32 %v2024_v41, %v5137_v27 }
 0x2a6   :  { %6666 = vst [vmem:[#allocation23_spill] sm:$0xff] %v5405_v30  ;;  %v2238_v26 = vmul.f32 %v5405_v30, %v5405_v30 }
 0x2b6   :  { %2534 = vadd.xlane.f32.xlu0 %v2533_v35  ;;  %v5399_v35 = vadd.f32 %v2018_v10, %v5101_v33 }
 0x2b8   :  { %6665 = vst [vmem:[#allocation22_spill] sm:$0xff] %v5399_v35  ;;  %v2235_v55 = vmul.f32 %v5399_v35, %v5399_v35 }
 0x2c3   :  { %2543 = vadd.xlane.f32.xlu1 %v2542_v19  ;;  %v2545_v19 = vsel %vm2517_vm0, %v2344_v0, 0.0 }
 0x2cc   :  { %2397 = vrot.lane.b32.xlu0 %v2233_v22, %s4324_s0  ;;  %v2022_v22 = vpop.permute.xlu0 %2021 }
 0x2d0   :  { %v2350_v33 = vpop.permute.xlu0 %2349 }
 0x2d1   :  { %v2554_v51 = vsel %vm2517_vm0, %v2350_v33, 0.0 }
 0x2d4   :  { %2403 = vrot.lane.b32.xlu1 %v2236_v17, %s4324_s0  ;;  %v2352_v17 = vpop.permute.xlu1 %2351 }
 0x2d8   :  { %v2028_v10 = vpop.permute.xlu1 %2027 }
 0x2d9   :  { %v5419_v1 = vadd.f32 %v2028_v10, %v5157_v8 }
 0x2db   :  { %6668 = vst [vmem:[#allocation25_spill] sm:$0xff] %v5419_v1  ;;  %v2240_v0 = vmul.f32 %v5419_v1, %v5419_v1 }
 0x2eb   :  { %2540 = vadd.xlane.f32.xlu0 %v2539_v61  ;;  %v5413_v61 = vadd.f32 %v2022_v22, %v5121_v4 }
 0x2ed   :  { %6667 = vst [vmem:[#allocation24_spill] sm:$0xff] %v5413_v61  ;;  %v2237_v27 = vmul.f32 %v5413_v61, %v5413_v61 }
 0x2f8   :  { %2549 = vadd.xlane.f32.xlu1 %v2548_v14  ;;  %v2551_v14 = vsel %vm2517_vm0, %v2348_v16, 0.0 }
 0x301   :  { %2401 = vrot.lane.b32.xlu0 %v2235_v55, %s4324_s0  ;;  %v2026_v55 = vpop.permute.xlu0 %2025 }
 0x305   :  { %v2354_v4 = vpop.permute.xlu0 %2353 }
 0x306   :  { %v2560_v41 = vsel %vm2517_vm0, %v2354_v4, 0.0 }
 0x309   :  { %2407 = vrot.lane.b32.xlu1 %v2238_v26, %s4324_s0  ;;  %v2356_v26 = vpop.permute.xlu1 %2355 }
 0x30d   :  { %v2032_v22 = vpop.permute.xlu1 %2031 }
 0x30e   :  { %v5433_v33 = vadd.f32 %v2032_v22, %v5177_v21 }
 0x310   :  { %6670 = vst [vmem:[#allocation27_spill] sm:$0xff] %v5433_v33  ;;  %v2242_v16 = vmul.f32 %v5433_v33, %v5433_v33 }
 0x320   :  { %2546 = vadd.xlane.f32.xlu0 %v2545_v19  ;;  %v5427_v19 = vadd.f32 %v2026_v55, %v5141_v42 }
 0x322   :  { %6669 = vst [vmem:[#allocation26_spill] sm:$0xff] %v5427_v19  ;;  %v2239_v8 = vmul.f32 %v5427_v19, %v5427_v19 }
 0x32d   :  { %2555 = vadd.xlane.f32.xlu1 %v2554_v51  ;;  %v2557_v51 = vsel %vm2517_vm0, %v2352_v17, 0.0 }
 0x336   :  { %2405 = vrot.lane.b32.xlu0 %v2237_v27, %s4324_s0  ;;  %v2030_v27 = vpop.permute.xlu0 %2029 }
 0x33a   :  { %v2358_v42 = vpop.permute.xlu0 %2357 }
 0x33b   :  { %v2566_v10 = vsel %vm2517_vm0, %v2358_v42, 0.0 }
 0x33e   :  { %2411 = vrot.lane.b32.xlu1 %v2240_v0, %s4324_s0  ;;  %v2360_v0 = vpop.permute.xlu1 %2359 }
 0x342   :  { %v2036_v55 = vpop.permute.xlu1 %2035 }
 0x343   :  { %v5447_v4 = vadd.f32 %v2036_v55, %v5197_v39 }
 0x345   :  { %6672 = vst [vmem:[#allocation29_spill] sm:$0xff] %v5447_v4  ;;  %v2244_v17 = vmul.f32 %v5447_v4, %v5447_v4 }
 0x355   :  { %2552 = vadd.xlane.f32.xlu0 %v2551_v14  ;;  %v5441_v14 = vadd.f32 %v2030_v27, %v5161_v45 }
 0x357   :  { %6671 = vst [vmem:[#allocation28_spill] sm:$0xff] %v5441_v14  ;;  %v2241_v21 = vmul.f32 %v5441_v14, %v5441_v14 }
 0x362   :  { %2561 = vadd.xlane.f32.xlu1 %v2560_v41  ;;  %v2563_v41 = vsel %vm2517_vm0, %v2356_v26, 0.0 }
 0x36b   :  { %2409 = vrot.lane.b32.xlu0 %v2239_v8, %s4324_s0  ;;  %v2034_v8 = vpop.permute.xlu0 %2033 }
 0x36f   :  { %v2362_v45 = vpop.permute.xlu0 %2361 }
 0x370   :  { %v2572_v22 = vsel %vm2517_vm0, %v2362_v45, 0.0 }
 0x373   :  { %2415 = vrot.lane.b32.xlu1 %v2242_v16, %s4324_s0  ;;  %v2364_v16 = vpop.permute.xlu1 %2363 }
 0x377   :  { %v2040_v27 = vpop.permute.xlu1 %2039 }
 0x378   :  { %v5461_v42 = vadd.f32 %v2040_v27, %v5217_v36 }
 0x37a   :  { %6674 = vst [vmem:[#allocation31_spill] sm:$0xff] %v5461_v42  ;;  %v2246_v26 = vmul.f32 %v5461_v42, %v5461_v42 }
 0x38a   :  { %2558 = vadd.xlane.f32.xlu0 %v2557_v51  ;;  %v5455_v51 = vadd.f32 %v2034_v8, %v5181_v46 }
 0x38c   :  { %6673 = vst [vmem:[#allocation30_spill] sm:$0xff] %v5455_v51  ;;  %v2243_v39 = vmul.f32 %v5455_v51, %v5455_v51 }
 0x397   :  { %2567 = vadd.xlane.f32.xlu1 %v2566_v10  ;;  %v2569_v10 = vsel %vm2517_vm0, %v2360_v0, 0.0 }
 0x3a0   :  { %2413 = vrot.lane.b32.xlu0 %v2241_v21, %s4324_s0  ;;  %v2038_v21 = vpop.permute.xlu0 %2037 }
 0x3a4   :  { %v2366_v46 = vpop.permute.xlu0 %2365 }
 0x3a5   :  { %v2578_v55 = vsel %vm2517_vm0, %v2366_v46, 0.0 }
 0x3a8   :  { %2419 = vrot.lane.b32.xlu1 %v2244_v17, %s4324_s0  ;;  %v2368_v17 = vpop.permute.xlu1 %2367 }
 0x3ac   :  { %v2044_v8 = vpop.permute.xlu1 %2043 }
 0x3ad   :  { %v5475_v45 = vadd.f32 %v2044_v8, %v5237_v6 }
 0x3af   :  { %6676 = vst [vmem:[#allocation33_spill] sm:$0xff] %v5475_v45  ;;  %v2248_v0 = vmul.f32 %v5475_v45, %v5475_v45 }
 0x3bf   :  { %2564 = vadd.xlane.f32.xlu0 %v2563_v41  ;;  %v5469_v41 = vadd.f32 %v2038_v21, %v5201_v59 }
 0x3c1   :  { %6675 = vst [vmem:[#allocation32_spill] sm:$0xff] %v5469_v41  ;;  %v2245_v36 = vmul.f32 %v5469_v41, %v5469_v41 }
 0x3cc   :  { %2573 = vadd.xlane.f32.xlu1 %v2572_v22  ;;  %v2575_v22 = vsel %vm2517_vm0, %v2364_v16, 0.0 }
 0x3d5   :  { %2417 = vrot.lane.b32.xlu0 %v2243_v39, %s4324_s0  ;;  %v2042_v39 = vpop.permute.xlu0 %2041 }
 0x3d9   :  { %v2370_v59 = vpop.permute.xlu0 %2369 }
 0x3da   :  { %v2584_v27 = vsel %vm2517_vm0, %v2370_v59, 0.0 }
 0x3dd   :  { %2423 = vrot.lane.b32.xlu1 %v2246_v26, %s4324_s0  ;;  %v2372_v26 = vpop.permute.xlu1 %2371 }
 0x3e1   :  { %v2048_v21 = vpop.permute.xlu1 %2047 }
 0x3e2   :  { %v5489_v46 = vadd.f32 %v2048_v21, %v5257_v40 }
 0x3e4   :  { %6678 = vst [vmem:[#allocation35_spill] sm:$0xff] %v5489_v46  ;;  %v2250_v16 = vmul.f32 %v5489_v46, %v5489_v46 }
 0x3f4   :  { %2570 = vadd.xlane.f32.xlu0 %v2569_v10  ;;  %v5483_v10 = vadd.f32 %v2042_v39, %v5221_v5 }
 0x3f6   :  { %6677 = vst [vmem:[#allocation34_spill] sm:$0xff] %v5483_v10  ;;  %v2247_v6 = vmul.f32 %v5483_v10, %v5483_v10 }
 0x401   :  { %2579 = vadd.xlane.f32.xlu1 %v2578_v55  ;;  %v2581_v55 = vsel %vm2517_vm0, %v2368_v17, 0.0 }
 0x40a   :  { %2421 = vrot.lane.b32.xlu0 %v2245_v36, %s4324_s0  ;;  %v2046_v36 = vpop.permute.xlu0 %2045 }
 0x40e   :  { %v2374_v5 = vpop.permute.xlu0 %2373 }
 0x40f   :  { %v2590_v8 = vsel %vm2517_vm0, %v2374_v5, 0.0 }
 0x412   :  { %2427 = vrot.lane.b32.xlu1 %v2248_v0, %s4324_s0  ;;  %v2376_v0 = vpop.permute.xlu1 %2375 }
 0x416   :  { %v2052_v39 = vpop.permute.xlu1 %2051 }
 0x417   :  { %v5503_v59 = vadd.f32 %v2052_v39, %v5277_v31 }
 0x419   :  { %6680 = vst [vmem:[#allocation37_spill] sm:$0xff] %v5503_v59  ;;  %v2252_v17 = vmul.f32 %v5503_v59, %v5503_v59 }
 0x429   :  { %2576 = vadd.xlane.f32.xlu0 %v2575_v22  ;;  %v5497_v22 = vadd.f32 %v2046_v36, %v5241_v25 }
 0x42b   :  { %6679 = vst [vmem:[#allocation36_spill] sm:$0xff] %v5497_v22  ;;  %v2249_v40 = vmul.f32 %v5497_v22, %v5497_v22 }
 0x436   :  { %2585 = vadd.xlane.f32.xlu1 %v2584_v27  ;;  %v2587_v27 = vsel %vm2517_vm0, %v2372_v26, 0.0 }
 0x43f   :  { %2425 = vrot.lane.b32.xlu0 %v2247_v6, %s4324_s0  ;;  %v2050_v6 = vpop.permute.xlu0 %2049 }
 0x443   :  { %v2378_v25 = vpop.permute.xlu0 %2377 }
 0x444   :  { %v2596_v21 = vsel %vm2517_vm0, %v2378_v25, 0.0 }
 0x447   :  { %2431 = vrot.lane.b32.xlu1 %v2250_v16, %s4324_s0  ;;  %v2380_v16 = vpop.permute.xlu1 %2379 }
 0x44b   :  { %v2056_v36 = vpop.permute.xlu1 %2055 }
 0x44c   :  { %v5517_v5 = vadd.f32 %v2056_v36, %v5297_v57 }
 0x44e   :  { %6682 = vst [vmem:[#allocation39_spill] sm:$0xff] %v5517_v5  ;;  %v2254_v26 = vmul.f32 %v5517_v5, %v5517_v5 }
 0x45e   :  { %2582 = vadd.xlane.f32.xlu0 %v2581_v55  ;;  %v5511_v55 = vadd.f32 %v2050_v6, %v5261_v38 }
 0x460   :  { %6681 = vst [vmem:[#allocation38_spill] sm:$0xff] %v5511_v55  ;;  %v2251_v31 = vmul.f32 %v5511_v55, %v5511_v55 }
 0x46b   :  { %2591 = vadd.xlane.f32.xlu1 %v2590_v8  ;;  %v2593_v8 = vsel %vm2517_vm0, %v2376_v0, 0.0 }
 0x474   :  { %2429 = vrot.lane.b32.xlu0 %v2249_v40, %s4324_s0  ;;  %v2054_v40 = vpop.permute.xlu0 %2053 }
 0x478   :  { %v2382_v38 = vpop.permute.xlu0 %2381 }
 0x479   :  { %v2602_v39 = vsel %vm2517_vm0, %v2382_v38, 0.0 }
 0x47c   :  { %2435 = vrot.lane.b32.xlu1 %v2252_v17, %s4324_s0  ;;  %v2384_v17 = vpop.permute.xlu1 %2383 }
 0x480   :  { %v2060_v6 = vpop.permute.xlu1 %2059 }
 0x481   :  { %v5531_v25 = vadd.f32 %v2060_v6, %v5314_v29 }
 0x483   :  { %6684 = vst [vmem:[#allocation41_spill] sm:$0xff] %v5531_v25  ;;  %v2256_v0 = vmul.f32 %v5531_v25, %v5531_v25 }
 0x493   :  { %2588 = vadd.xlane.f32.xlu0 %v2587_v27  ;;  %v5525_v27 = vadd.f32 %v2054_v40, %v5281_v52 }
 0x495   :  { %6683 = vst [vmem:[#allocation40_spill] sm:$0xff] %v5525_v27  ;;  %v2253_v57 = vmul.f32 %v5525_v27, %v5525_v27 }
 0x4a0   :  { %2597 = vadd.xlane.f32.xlu1 %v2596_v21  ;;  %v2058_v21 = vpop.permute.xlu0 %2057 }
 0x4a1   :  { %v5541_v29 = vadd.f32 %v2058_v21, %v5301_v3 }
 0x4a3   :  { %6685 = vst [vmem:[#allocation42_spill] sm:$0xff] %v5541_v29  ;;  %v2255_v38 = vmul.f32 %v5541_v29, %v5541_v29 }
 0x4a4   :  { %v2520_v52 = vpop.xlane.xlu0 %2519 }
 0x4a5   :  { %v2710_v27 = vmul.f32 0.5, %v2520_v52 }
 0x4a8   :  { %v2386_v36 = vpop.permute.xlu0 %2385 }
 0x4a9   :  { %2433 = vrot.lane.b32.xlu0 %v2251_v31, %s4324_s0  ;;  %v2599_v31 = vsel %vm2517_vm0, %v2380_v16, 0.0 }
 0x4ac   :  { %v2062_v6 = vpop.permute.xlu0 %2061 }
 0x4b0   :  { %v5553_v3 = vpop.xlane.xlu0 %2525 }
 0x4b1   :  { %2439 = vrot.lane.b32.xlu1 %v2254_v26, %s4324_s0  ;;  %v5537_v26 = vpop.xlane.xlu1 %2522 }
 0x4b4   :  { %v2390_v21 = vpop.permute.xlu0 %2389 }
 0x4b5   :  { %v2388_v40 = vpop.permute.xlu1 %2387 }
 0x4b6   :  { %v2611_v29 = vsel %vm2517_vm0, %v2388_v40, 0.0 }
 0x4c8   :  { %2594 = vadd.xlane.f32.xlu0 %v2593_v8  ;;  %v2608_v8 = vsel %vm2517_vm0, %v2386_v36, 0.0  ;;  %v2614_v36 = vsel %vm2517_vm0, %v2390_v21, 0.0 }
 0x4d5   :  { %2603 = vadd.xlane.f32.xlu1 %v2602_v39  ;;  %v2064_v39 = vpop.permute.xlu1 %2063 }
 0x4d6   :  { %v5547_v16 = vadd.f32 %v2064_v39, %v5343_v9  ;;  %v5561_v9 = vadd.f32 %v2062_v6, %v5332_v60  ;;  %v5565_v39 = vpop.xlane.xlu0 %2528 }
 0x4d7   :  { %v2713_v19 = vmul.f32 0.5, %v5565_v39 }
 0x4d8   :  { %6686 = vst [vmem:[#allocation43_spill] sm:$0xff] %v5547_v16  ;;  %6687 = vst [vmem:[#allocation44_spill] sm:$0xff] %v5561_v9 }
 0x4de   :  { %2437 = vrot.lane.b32.xlu0 %v2253_v57, %s4324_s0  ;;  %v2258_v57 = vmul.f32 %v5547_v16, %v5547_v16 }
 0x4e6   :  { %2443 = vrot.lane.b32.xlu1 %v2256_v0, %s4324_s0  ;;  %v2605_v0 = vsel %vm2517_vm0, %v2384_v17, 0.0 }
 0x4fd   :  { %2600 = vadd.xlane.f32.xlu0 %v2599_v31  ;;  %v5555_v31 = vpop.permute.xlu1 %2391 }
 0x50a   :  { %2609 = vadd.xlane.f32.xlu1 %v2608_v8  ;;  %v5558_v8 = vpop.xlane.xlu1 %2531 }
 0x50e   :  { %v2068_v17 = vpop.permute.xlu1 %2067 }
 0x513   :  { %2441 = vrot.lane.b32.xlu0 %v2255_v38, %s4324_s0  ;;  %v2257_v38 = vmul.f32 %v5561_v9, %v5561_v9 }
 0x51b   :  { %2447 = vrot.lane.b32.xlu1 %v2258_v57, %s4324_s0  ;;  %v5569_v57 = vadd.f32 %v2068_v17, %v5320_v13  ;;  %v2774_v13 = vadd.f32 %v2710_v27, %v5017_v32  ;;  %v5585_v17 = vstv %s6600_s3  ;;  %s4325_s3 = smov 1  }
 0x51d   :  { %6688 = vst [vmem:[#allocation45_spill] sm:$0xff] %v5569_v57  ;;  %v2260_v21 = vmul.f32 %v5569_v57, %v5569_v57  ;;  %v2840_v57 = vadd.f32 %v5585_v17, %v2774_v13 }
 0x51f   :  { %v3902_v10 = vmul.f32 -1.442695, %v2840_v57 }
 0x521   :  { %4066 = vpow2.f32 %v3902_v10 }
 0x532   :  { %2606 = vadd.xlane.f32.xlu0 %v2605_v0  ;;  %v2066_v0 = vpop.permute.xlu0 %2065 }
 0x533   :  { %v5594_v32 = vadd.f32 %v2066_v0, %v5318_v2 }
 0x535   :  { %6689 = vst [vmem:[#allocation46_spill] sm:$0xff] %v5594_v32  ;;  %v2259_v13 = vmul.f32 %v5594_v32, %v5594_v32 }
 0x53f   :  { %2615 = vadd.xlane.f32.xlu1 %v2614_v36  ;;  %v2394_v36 = vpop.permute.xlu0 %2393 }
 0x540   :  { %v2620_v40 = vsel %vm2517_vm0, %v2394_v36, 0.0 }
 0x543   :  { %v5574_v60 = vpop.xlane.xlu0 %2534 }
 0x547   :  { %v2398_v6 = vpop.permute.xlu0 %2397 }
 0x548   :  { %2445 = vrot.lane.b32.xlu0 %v2257_v38, %s4324_s0 }
 0x54b   :  { %v5576_v16 = vpop.xlane.xlu0 %2540 }
 0x54f   :  { %v2402_v9 = vpop.permute.xlu0 %2401 }
 0x550   :  { %2451 = vrot.lane.b32.xlu1 %v2260_v21, %s4324_s0  ;;  %v2396_v21 = vpop.permute.xlu1 %2395  ;;  %v2632_v57 = vsel %vm2517_vm0, %v2402_v9, 0.0 }
 0x553   :  { %v5579_v38 = vpop.xlane.xlu0 %2546 }
 0x554   :  { %v5588_v22 = vpop.xlane.xlu1 %2537 }
 0x557   :  { %v2406_v55 = vpop.permute.xlu0 %2405 }
 0x558   :  { %v2400_v27 = vpop.permute.xlu1 %2399  ;;  %v2638_v2 = vsel %vm2517_vm0, %v2406_v55, 0.0  ;;  %v2711_v55 = vmul.f32 0.5, %v5537_v26 }
 0x559   :  { %v2629_v35 = vsel %vm2517_vm0, %v2400_v27, 0.0 }
 0x55b   :  { %v5591_v52 = vpop.xlane.xlu0 %2552 }
 0x55c   :  { %v5599_v41 = vpop.xlane.xlu1 %2543 }
 0x55f   :  { %v2410_v25 = vpop.permute.xlu0 %2409 }
 0x560   :  { %v2404_v10 = vpop.permute.xlu1 %2403  ;;  %v2644_v0 = vsel %vm2517_vm0, %v2410_v25, 0.0  ;;  %v2617_v25 = vsel %vm2517_vm0, %v5555_v31, 0.0 }
 0x563   :  { %v5603_v36 = vpop.xlane.xlu0 %2558 }
 0x567   :  { %2612 = vadd.xlane.f32.xlu0 %v2611_v29  ;;  %v2626_v29 = vsel %vm2517_vm0, %v2398_v6, 0.0  ;;  %v4067_v6 = vpop.eup %4066 }
 0x568   :  { %v3096_v32 = vadd.f32 1.0, %v4067_v6  ;;  %v2623_v6 = vsel %vm2517_vm0, %v2396_v21, 0.0 }
 0x56a   :  { %4068 = vrcp.f32 %v3096_v32  ;;  %v2712_v32 = vmul.f32 0.5, %v5553_v3  ;;  %v2777_v3 = vadd.f32 %v2713_v19, %v5044_v53 }
 0x56c   :  { %v2776_v26 = vadd.f32 %v2712_v32, %v5032_v56 }
 0x574   :  { %2621 = vadd.xlane.f32.xlu1 %v2620_v40  ;;  %v2414_v40 = vpop.permute.xlu0 %2413 }
 0x575   :  { %v2650_v51 = vsel %vm2517_vm0, %v2414_v40, 0.0 }
 0x577   :  { %v5612_v14 = vpop.eup %4068 }
 0x578   :  { %2627 = vadd.xlane.f32.xlu1 %v2626_v29  ;;  %v5607_v29 = vpop.xlane.xlu1 %2549  ;;  %v5638_v53 = vpop.xlane.xlu0 %2564 }
 0x57c   :  { %2633 = vadd.xlane.f32.xlu1 %v2632_v57  ;;  %v2408_v9 = vpop.permute.xlu1 %2407 }
 0x57d   :  { %2449 = vrot.lane.b32.xlu0 %v2259_v13, %s4324_s0  ;;  %v2641_v39 = vsel %vm2517_vm0, %v2408_v9, 0.0 }
 0x580   :  { %2639 = vadd.xlane.f32.xlu1 %v2638_v2  ;;  %v5610_v13 = vpop.xlane.xlu1 %2555 }
 0x584   :  { %2645 = vadd.xlane.f32.xlu1 %v2644_v0  ;;  %v2412_v57 = vpop.permute.xlu1 %2411 }
 0x585   :  { %v2647_v32 = vsel %vm2517_vm0, %v2412_v57, 0.0 }
 0x588   :  { %2651 = vadd.xlane.f32.xlu1 %v2650_v51  ;;  %v5615_v2 = vpop.xlane.xlu1 %2561  ;;  %v2775_v51 = vadd.f32 %v2711_v55, %v5026_v47  ;;  %v2842_v47 = vadd.f32 %v5585_v17, %v2776_v26  ;;  %v2635_v55 = vsel %vm2517_vm0, %v2404_v10, 0.0  ;;  %v2418_v26 = vpop.permute.xlu0 %2417 }
 0x58a   :  { %v2841_v40 = vadd.f32 %v5585_v17, %v2775_v51  ;;  %v3904_v21 = vmul.f32 -1.442695, %v2842_v47  ;;  %v2656_v47 = vsel %vm2517_vm0, %v2418_v26, 0.0  ;;  %v2715_v26 = vmul.f32 0.5, %v5574_v60 }
 0x58c   :  { %v2416_v0 = vpop.permute.xlu1 %2415  ;;  %v3903_v31 = vmul.f32 -1.442695, %v2841_v40 }
 0x58d   :  { %v2653_v19 = vsel %vm2517_vm0, %v2416_v0, 0.0 }
 0x58e   :  { %4070 = vpow2.f32 %v3903_v31 }
 0x58f   :  { %4072 = vpow2.f32 %v3904_v21 }
 0x590   :  { %v5627_v61 = vpop.xlane.xlu1 %2567 }
 0x594   :  { %v2420_v56 = vpop.permute.xlu1 %2419 }
 0x598   :  { %v5635_v27 = vpop.xlane.xlu1 %2573 }
 0x599   :  { %3416 = vrot.lane.b32.xlu1 %v5612_v14, %s4325_s3 }
 0x59b   :  { %v4071_v10 = vpop.eup %4070 }
 0x59c   :  { %2618 = vadd.xlane.f32.xlu0 %v2617_v25  ;;  %v2843_v25 = vadd.f32 %v5585_v17, %v2777_v3  ;;  %v3097_v9 = vadd.f32 1.0, %v4071_v10  ;;  %v4073_v40 = vpop.eup %4072 }
 0x59d   :  { %v3098_v31 = vadd.f32 1.0, %v4073_v40 }
 0x59e   :  { %v3905_v51 = vmul.f32 -1.442695, %v2843_v25 }
 0x5a0   :  { %2624 = vadd.xlane.f32.xlu0 %v2623_v6  ;;  %4074 = vpow2.f32 %v3905_v51 }
 0x5a1   :  { %4076 = vrcp.f32 %v3097_v9 }
 0x5a2   :  { %4078 = vrcp.f32 %v3098_v31  ;;  %v5672_v31 = vpop.xlane.xlu0 %2570 }
 0x5a4   :  { %2630 = vadd.xlane.f32.xlu0 %v2629_v35  ;;  %v5640_v35 = vpop.permute.xlu1 %2423 }
 0x5a8   :  { %2636 = vadd.xlane.f32.xlu0 %v2635_v55  ;;  %v5643_v6 = vpop.xlane.xlu1 %2579 }
 0x5a9   :  { %6690 = vst [vmem:[#allocation47_spill] sm:$0xff] %v5643_v6 }
 0x5ac   :  { %2642 = vadd.xlane.f32.xlu0 %v2641_v39  ;;  %v5646_v3 = vpop.permute.xlu1 %2427 }
 0x5ad   :  { %v4075_v57 = vpop.eup %4074 }
 0x5ae   :  { %v3099_v55 = vadd.f32 1.0, %v4075_v57  ;;  %v5652_v25 = vpop.eup %4076  ;;  %v2779_v57 = vadd.f32 %v2715_v26, %v5064_v11 }
 0x5af   :  { %v5658_v51 = vpop.eup %4078  ;;  %v3289_v30 = vsub.f32 1.0, %v5652_v25 }
 0x5b0   :  { %2648 = vadd.xlane.f32.xlu0 %v2647_v32  ;;  %v5648_v21 = vpop.xlane.xlu1 %2585  ;;  %4080 = vrcp.f32 %v3099_v55  ;;  %v2714_v32 = vmul.f32 0.5, %v5558_v8  ;;  %v2422_v55 = vpop.permute.xlu0 %2421 }
 0x5b1   :  { %6691 = vst [vmem:[#allocation48_spill] sm:$0xff] %v5648_v21 }
 0x5b2   :  { %v2778_v10 = vadd.f32 %v2714_v32, %v5052_v20  ;;  %v2845_v20 = vadd.f32 %v5585_v17, %v2779_v57 }
 0x5b4   :  { %2654 = vadd.xlane.f32.xlu0 %v2653_v19  ;;  %v5650_v0 = vpop.permute.xlu1 %2431  ;;  %v2844_v40 = vadd.f32 %v5585_v17, %v2778_v10  ;;  %v5680_v32 = vpop.xlane.xlu0 %2576  ;;  %v3907_v10 = vmul.f32 -1.442695, %v2845_v20 }
 0x5b6   :  { %v3906_v8 = vmul.f32 -1.442695, %v2844_v40  ;;  %v2659_v40 = vsel %vm2517_vm0, %v2420_v56, 0.0  ;;  %v2662_v56 = vsel %vm2517_vm0, %v2422_v55, 0.0 }
 0x5b8   :  { %v5656_v39 = vpop.xlane.xlu1 %2591  ;;  %4082 = vpow2.f32 %v3906_v8  ;;  %v5684_v60 = vpop.permute.xlu0 %2425 }
 0x5b9   :  { %6692 = vst [vmem:[#allocation49_spill] sm:$0xff] %v5656_v39  ;;  %4084 = vpow2.f32 %v3907_v10 }
 0x5bc   :  { %v5666_v9 = vpop.permute.xlu1 %2435  ;;  %v5689_v59 = vpop.xlane.xlu0 %2582 }
 0x5bd   :  { %2657 = vadd.xlane.f32.xlu1 %v2656_v47  ;;  %v5663_v19 = vpop.eup %4080 }
 0x5c0   :  { %v5674_v47 = vpop.xlane.xlu1 %2597  ;;  %v5693_v57 = vpop.permute.xlu0 %2429 }
 0x5c1   :  { %6693 = vst [vmem:[#allocation50_spill] sm:$0xff] %v5674_v47 }
 0x5c4   :  { %v5677_v5 = vpop.permute.xlu1 %2439  ;;  %v5697_v10 = vpop.xlane.xlu0 %2588 }
 0x5c5   :  { %v4083_v26 = vpop.eup %4082 }
 0x5c6   :  { %v3100_v8 = vadd.f32 1.0, %v4083_v26  ;;  %v4085_v20 = vpop.eup %4084 }
 0x5c7   :  { %v3101_v45 = vadd.f32 1.0, %v4085_v20  ;;  %v2716_v20 = vmul.f32 0.5, %v5588_v22 }
 0x5c8   :  { %v5682_v7 = vpop.xlane.xlu1 %2603  ;;  %4086 = vrcp.f32 %v3100_v8  ;;  %v5702_v44 = vpop.permute.xlu0 %2433 }
 0x5c9   :  { %6694 = vst [vmem:[#allocation51_spill] sm:$0xff] %v5682_v7  ;;  %4088 = vrcp.f32 %v3101_v45 }
 0x5ca   :  { %3418 = vrot.lane.b32.xlu0 %v5652_v25, %s4325_s3 }
 0x5cc   :  { %v5686_v54 = vpop.permute.xlu1 %2443  ;;  %v5706_v26 = vpop.xlane.xlu0 %2594 }
 0x5ce   :  { %3420 = vrot.lane.b32.xlu1 %v5658_v51, %s4325_s3 }
 0x5d0   :  { %v5691_v11 = vpop.xlane.xlu1 %2609  ;;  %v5717_v55 = vpop.permute.xlu0 %2437 }
 0x5d1   :  { %6695 = vst [vmem:[#allocation52_spill] sm:$0xff] %v5691_v11 }
 0x5d2   :  { %3422 = vrot.lane.b32.xlu1 %v5663_v19, %s4325_s3 }
 0x5d4   :  { %v5695_v23 = vpop.permute.xlu1 %2447 }
 0x5d5   :  { %v5710_v11 = vpop.eup %4086 }
 0x5d8   :  { %v5699_v46 = vpop.xlane.xlu1 %2615 }
 0x5d9   :  { %6696 = vst [vmem:[#allocation53_spill] sm:$0xff] %v5699_v46  ;;  %v5724_v46 = vpop.xlane.xlu0 %2600 }
 0x5dd   :  { %v5732_v22 = vpop.permute.xlu0 %2441 }
 0x5e1   :  { %v5737_v47 = vpop.xlane.xlu0 %2606 }
 0x5e5   :  { %v5744_v39 = vpop.permute.xlu0 %2445 }
 0x5e9   :  { %2660 = vadd.xlane.f32.xlu0 %v2659_v40  ;;  %v5704_v40 = vpop.permute.xlu1 %2451 }
 0x5ea   :  { %6697 = vst [vmem:[#allocation54_spill] sm:$0xff] %v5704_v40  ;;  %v2780_v40 = vadd.f32 %v2716_v20, %v5072_v49 }
 0x5ec   :  { %v2846_v4 = vadd.f32 %v5585_v17, %v2780_v40 }
 0x5f6   :  { %2663 = vadd.xlane.f32.xlu1 %v2662_v56  ;;  %v5721_v56 = vpop.eup %4088 }
 0x5fd   :  { %v5708_v42 = vpop.xlane.xlu1 %2621 }
 0x5fe   :  { %6698 = vst [vmem:[#allocation55_spill] sm:$0xff] %v5708_v42 }
 0x5ff   :  { %3424 = vrot.lane.b32.xlu0 %v5710_v11, %s4325_s3 }
 0x601   :  { %v5714_v8 = vpop.xlane.xlu1 %2627 }
 0x602   :  { %6699 = vst [vmem:[#allocation56_spill] sm:$0xff] %v5714_v8  ;;  %v2717_v8 = vmul.f32 0.5, %v5576_v16 }
 0x604   :  { %v2781_v33 = vadd.f32 %v2717_v8, %v5084_v34  ;;  %v5750_v34 = vpop.xlane.xlu0 %2612 }
 0x605   :  { %v5719_v45 = vpop.xlane.xlu1 %2633 }
 0x606   :  { %6700 = vst [vmem:[#allocation57_spill] sm:$0xff] %v5719_v45  ;;  %v3908_v45 = vmul.f32 -1.442695, %v2846_v4  ;;  %v2847_v20 = vadd.f32 %v5585_v17, %v2781_v33  ;;  %v2665_v33 = vsel %vm2517_vm0, %v5640_v35, 0.0 }
 0x607   :  { %3426 = vrot.lane.b32.xlu1 %v5721_v56, %s4325_s3 }
 0x608   :  { %4090 = vpow2.f32 %v3908_v45  ;;  %v3909_v16 = vmul.f32 -1.442695, %v2847_v20  ;;  %v5754_v4 = vpop.permute.xlu0 %2449 }
 0x609   :  { %v5728_v42 = vpop.xlane.xlu1 %2639 }
 0x60a   :  { %6701 = vst [vmem:[#allocation58_spill] sm:$0xff] %v5728_v42  ;;  %v3288_v42 = vsub.f32 1.0, %v5612_v14  ;;  %4092 = vpow2.f32 %v3909_v16 }
 0x60d   :  { %v5734_v7 = vpop.xlane.xlu1 %2645 }
 0x60e   :  { %6702 = vst [vmem:[#allocation59_spill] sm:$0xff] %v5734_v7  ;;  %v2719_v7 = vmul.f32 0.5, %v5579_v38  ;;  %v3290_v38 = vsub.f32 1.0, %v5658_v51 }
 0x611   :  { %v5739_v49 = vpop.xlane.xlu1 %2651 }
 0x612   :  { %6703 = vst [vmem:[#allocation60_spill] sm:$0xff] %v5739_v49 }
 0x615   :  { %v3417_v40 = vpop.permute.xlu1 %3416  ;;  %v4091_v14 = vpop.eup %4090 }
 0x616   :  { %v3609_v1 = vsel %vm3608_vm1, %v3288_v42, %v3417_v40  ;;  %v3102_v8 = vadd.f32 1.0, %v4091_v14 }
 0x617   :  { %3674 = vst.msk [vmem:[%s6601_s4] sm:$0xff] %vm3673_vm2, %v3609_v1  ;;  %v4093_v42 = vpop.eup %4092  ;;  %v2668_v1 = vsel %vm2517_vm0, %v5684_v60, 0.0 }
 0x618   :  { %4094 = vrcp.f32 %v3102_v8  ;;  %v3103_v40 = vadd.f32 1.0, %v4093_v42  ;;  %v2718_v8 = vmul.f32 0.5, %v5599_v41 }
 0x61a   :  { %4096 = vrcp.f32 %v3103_v40  ;;  %v2782_v60 = vadd.f32 %v2718_v8, %v5092_v15 }
 0x61e   :  { %2666 = vadd.xlane.f32.xlu0 %v2665_v33 }
 0x625   :  { %v5756_v45 = vpop.xlane.xlu0 %2618  ;;  %v5766_v33 = vpop.eup %4094 }
 0x627   :  { %v5775_v42 = vpop.eup %4096 }
 0x629   :  { %v5758_v20 = vpop.xlane.xlu0 %2624 }
 0x62b   :  { %2669 = vadd.xlane.f32.xlu1 %v2668_v1  ;;  %v2848_v1 = vadd.f32 %v5585_v17, %v2782_v60 }
 0x62d   :  { %v5762_v16 = vpop.xlane.xlu0 %2630  ;;  %v3910_v6 = vmul.f32 -1.442695, %v2848_v1 }
 0x62f   :  { %4098 = vpow2.f32 %v3910_v6  ;;  %v2671_v6 = vsel %vm2517_vm0, %v5646_v3, 0.0 }
 0x631   :  { %v5764_v35 = vpop.xlane.xlu0 %2636 }
 0x634   :  { %3428 = vrot.lane.b32.xlu0 %v5766_v33, %s4325_s3 }
 0x635   :  { %v5770_v14 = vpop.xlane.xlu0 %2642 }
 0x639   :  { %v5773_v49 = vpop.xlane.xlu0 %2648 }
 0x63a   :  { %6704 = vst [vmem:[#allocation61_spill] sm:$0xff] %v5773_v49  ;;  %v2783_v49 = vadd.f32 %v2719_v7, %v5104_v58  ;;  %v3291_v58 = vsub.f32 1.0, %v5663_v19  ;;  %v2674_v19 = vsel %vm2517_vm0, %v5693_v57, 0.0 }
 0x63c   :  { %3430 = vrot.lane.b32.xlu1 %v5775_v42, %s4325_s3  ;;  %v2849_v8 = vadd.f32 %v5585_v17, %v2783_v49 }
 0x63d   :  { %v5780_v40 = vpop.xlane.xlu0 %2654 }
 0x63e   :  { %6705 = vst [vmem:[#allocation62_spill] sm:$0xff] %v5780_v40  ;;  %v3911_v25 = vmul.f32 -1.442695, %v2849_v8 }
 0x640   :  { %4100 = vpow2.f32 %v3911_v25  ;;  %v3292_v25 = vsub.f32 1.0, %v5710_v11 }
 0x641   :  { %v3419_v21 = vpop.permute.xlu0 %3418 }
 0x642   :  { %v3610_v41 = vsel %vm3608_vm1, %v3289_v30, %v3419_v21  ;;  %v4099_v21 = vpop.eup %4098 }
 0x643   :  { %3675 = vst.msk [vmem:[%s6601_s4 + $0x8] sm:$0xff] %vm3673_vm2, %v3610_v41  ;;  %v3104_v51 = vadd.f32 1.0, %v4099_v21  ;;  %v2720_v41 = vmul.f32 0.5, %v5607_v29 }
 0x645   :  { %4102 = vrcp.f32 %v3104_v51  ;;  %v2784_v3 = vadd.f32 %v2720_v41, %v5112_v50 }
 0x646   :  { %v5791_v15 = vpop.xlane.xlu1 %2657 }
 0x647   :  { %v2850_v57 = vadd.f32 %v5585_v17, %v2784_v3 }
 0x64a   :  { %v3421_v60 = vpop.permute.xlu1 %3420 }
 0x64b   :  { %v3611_v40 = vsel %vm3608_vm1, %v3290_v38, %v3421_v60  ;;  %v2721_v60 = vmul.f32 0.5, %v5591_v52  ;;  %v3293_v52 = vsub.f32 1.0, %v5721_v56  ;;  %v2680_v56 = vsel %vm2517_vm0, %v5702_v44, 0.0 }
 0x64c   :  { %3676 = vst.msk [vmem:[%s6601_s4 + $0x10] sm:$0xff] %vm3673_vm2, %v3611_v40 }
 0x64d   :  { %v4101_v49 = vpop.eup %4100  ;;  %v2785_v29 = vadd.f32 %v2721_v60, %v5124_v18  ;;  %v2677_v18 = vsel %vm2517_vm0, %v5650_v0, 0.0 }
 0x64e   :  { %v3423_v7 = vpop.permute.xlu1 %3422  ;;  %v3105_v40 = vadd.f32 1.0, %v4101_v49 }
 0x64f   :  { %v3612_v30 = vsel %vm3608_vm1, %v3291_v58, %v3423_v7  ;;  %v2851_v50 = vadd.f32 %v5585_v17, %v2785_v29 }
 0x650   :  { %3677 = vst.msk [vmem:[%s6601_s4 + $0x18] sm:$0xff] %vm3673_vm2, %v3612_v30  ;;  %4104 = vrcp.f32 %v3105_v40  ;;  %v3912_v30 = vmul.f32 -1.442695, %v2850_v57  ;;  %v2722_v57 = vmul.f32 0.5, %v5610_v13 }
 0x651   :  { %v3913_v21 = vmul.f32 -1.442695, %v2851_v50 }
 0x652   :  { %v5810_v1 = vpop.eup %4102  ;;  %4106 = vpow2.f32 %v3912_v30  ;;  %v2786_v0 = vadd.f32 %v2722_v57, %v5132_v63 }
 0x653   :  { %2672 = vadd.xlane.f32.xlu0 %v2671_v6  ;;  %4108 = vpow2.f32 %v3913_v21 }
 0x654   :  { %v2852_v44 = vadd.f32 %v5585_v17, %v2786_v0  ;;  %v2725_v0 = vmul.f32 0.5, %v5638_v53 }
 0x656   :  { %v3914_v50 = vmul.f32 -1.442695, %v2852_v44  ;;  %v3296_v44 = vsub.f32 1.0, %v5810_v1 }
 0x65d   :  { %v5815_v8 = vpop.eup %4104 }
 0x65e   :  { %v3297_v53 = vsub.f32 1.0, %v5815_v8 }
 0x65f   :  { %v4107_v49 = vpop.eup %4106 }
 0x660   :  { %2675 = vadd.xlane.f32.xlu1 %v2674_v19  ;;  %v3106_v40 = vadd.f32 1.0, %v4107_v49  ;;  %v4109_v19 = vpop.eup %4108 }
 0x661   :  { %v3107_v41 = vadd.f32 1.0, %v4109_v19 }
 0x662   :  { %4110 = vrcp.f32 %v3106_v40 }
 0x663   :  { %4112 = vrcp.f32 %v3107_v41  ;;  %v2724_v41 = vmul.f32 0.5, %v5615_v2  ;;  %v6706_v2 = vld [vmem:[#allocation3_spill] sm:$0xff] }
 0x664   :  { %4114 = vpow2.f32 %v3914_v50 }
 0x669   :  { %3432 = vrot.lane.b32.xlu0 %v5810_v1, %s4325_s3 }
 0x66f   :  { %v5844_v3 = vpop.eup %4110 }
 0x670   :  { %v5849_v60 = vpop.eup %4112 }
 0x671   :  { %3434 = vrot.lane.b32.xlu1 %v5815_v8, %s4325_s3  ;;  %v2692_v8 = vsel %vm2517_vm0, %v5732_v22, 0.0 }
 0x672   :  { %v5820_v38 = vpop.xlane.xlu0 %2660 }
 0x676   :  { %v3425_v58 = vpop.permute.xlu0 %3424 }
 0x677   :  { %v3613_v7 = vsel %vm3608_vm1, %v3292_v25, %v3425_v58  ;;  %v2723_v58 = vmul.f32 0.5, %v5603_v36  ;;  %v3295_v36 = vsub.f32 1.0, %v5775_v42  ;;  %v2686_v42 = vsel %vm2517_vm0, %v5717_v55, 0.0 }
 0x678   :  { %3678 = vst.msk [vmem:[%s6601_s4 + $0x20] sm:$0xff] %vm3673_vm2, %v3613_v7  ;;  %v3294_v7 = vsub.f32 1.0, %v5766_v33 }
 0x679   :  { %v2787_v13 = vadd.f32 %v2723_v58, %v5144_v37  ;;  %v2683_v37 = vsel %vm2517_vm0, %v5666_v9, 0.0  ;;  %v2788_v9 = vadd.f32 %v2724_v41, %v5152_v62  ;;  %v2727_v41 = vmul.f32 0.5, %v5672_v31 }
 0x67a   :  { %v3299_v31 = vsub.f32 1.0, %v5849_v60 }
 0x67b   :  { %v2853_v63 = vadd.f32 %v5585_v17, %v2787_v13  ;;  %v2854_v55 = vadd.f32 %v5585_v17, %v2788_v9  ;;  %v3298_v9 = vsub.f32 1.0, %v5844_v3 }
 0x67f   :  { %v5832_v6 = vpop.xlane.xlu1 %2663 }
 0x683   :  { %v3427_v11 = vpop.permute.xlu1 %3426 }
 0x684   :  { %v3614_v51 = vsel %vm3608_vm1, %v3293_v52, %v3427_v11  ;;  %v3915_v52 = vmul.f32 -1.442695, %v2853_v63 }
 0x685   :  { %3679 = vst.msk [vmem:[%s6601_s4 + $0x28] sm:$0xff] %vm3673_vm2, %v3614_v51  ;;  %v4115_v51 = vpop.eup %4114 }
 0x686   :  { %4116 = vpow2.f32 %v3915_v52  ;;  %v2689_v52 = vsel %vm2517_vm0, %v5677_v5, 0.0  ;;  %v6707_v5 = vld [vmem:[#allocation4_spill] sm:$0xff] }
 0x688   :  { %2678 = vadd.xlane.f32.xlu0 %v2677_v18  ;;  %v3108_v18 = vadd.f32 1.0, %v4115_v51 }
 0x68a   :  { %4118 = vrcp.f32 %v3108_v18  ;;  %v2726_v18 = vmul.f32 0.5, %v5627_v61  ;;  %v6708_v61 = vld [vmem:[#allocation5_spill] sm:$0xff] }
 0x693   :  { %v4117_v49 = vpop.eup %4116 }
 0x694   :  { %v3109_v40 = vadd.f32 1.0, %v4117_v49 }
 0x695   :  { %2681 = vadd.xlane.f32.xlu1 %v2680_v56 }
 0x696   :  { %4120 = vrcp.f32 %v3109_v40  ;;  %v2790_v40 = vadd.f32 %v2726_v18, %v6707_v5  ;;  %v6710_v5 = vld [vmem:[#allocation7_spill] sm:$0xff] }
 0x697   :  { %v5878_v19 = vpop.eup %4118 }
 0x698   :  { %v2856_v22 = vadd.f32 %v5585_v17, %v2790_v40  ;;  %v3300_v18 = vsub.f32 1.0, %v5878_v19 }
 0x69e   :  { %3436 = vrot.lane.b32.xlu0 %v5844_v3, %s4325_s3 }
 0x6a3   :  { %v5883_v56 = vpop.eup %4120 }
 0x6a6   :  { %3438 = vrot.lane.b32.xlu1 %v5849_v60, %s4325_s3  ;;  %v2698_v60 = vsel %vm2517_vm0, %v5744_v39, 0.0 }
 0x6a7   :  { %v5854_v25 = vpop.xlane.xlu0 %2666 }
 0x6ab   :  { %v3429_v30 = vpop.permute.xlu0 %3428 }
 0x6ac   :  { %v3615_v29 = vsel %vm3608_vm1, %v3294_v7, %v3429_v30  ;;  %v3916_v30 = vmul.f32 -1.442695, %v2854_v55 }
 0x6ad   :  { %3680 = vst.msk [vmem:[%s6601_s4 + $0x30] sm:$0xff] %vm3673_vm2, %v3615_v29  ;;  %v2789_v29 = vadd.f32 %v2725_v0, %v6706_v2 }
 0x6ae   :  { %4122 = vpow2.f32 %v3916_v30 }
 0x6af   :  { %v2855_v62 = vadd.f32 %v5585_v17, %v2789_v29 }
 0x6b1   :  { %v3917_v13 = vmul.f32 -1.442695, %v2855_v62  ;;  %v2695_v62 = vsel %vm2517_vm0, %v5686_v54, 0.0  ;;  %v6709_v54 = vld [vmem:[#allocation6_spill] sm:$0xff] }
 0x6b3   :  { %4124 = vpow2.f32 %v3917_v13 }
 0x6b4   :  { %v5866_v21 = vpop.xlane.xlu1 %2669 }
 0x6b8   :  { %v3431_v33 = vpop.permute.xlu1 %3430 }
 0x6b9   :  { %v3616_v11 = vsel %vm3608_vm1, %v3295_v36, %v3431_v33 }
 0x6ba   :  { %3681 = vst.msk [vmem:[%s6601_s4 + $0x38] sm:$0xff] %vm3673_vm2, %v3616_v11 }
 0x6bb   :  { %v4123_v36 = vpop.eup %4122 }
 0x6bc   :  { %v3110_v33 = vadd.f32 1.0, %v4123_v36  ;;  %v2728_v36 = vmul.f32 0.5, %v5635_v27 }
 0x6bd   :  { %2684 = vadd.xlane.f32.xlu0 %v2683_v37 }
 0x6be   :  { %4126 = vrcp.f32 %v3110_v33 }
 0x6c0   :  { %v4125_v11 = vpop.eup %4124 }
 0x6c1   :  { %v3111_v37 = vadd.f32 1.0, %v4125_v11  ;;  %v2792_v11 = vadd.f32 %v2728_v36, %v6709_v54  ;;  %v2701_v54 = vsel %vm2517_vm0, %v5695_v23, 0.0  ;;  %v2743_v23 = vmul.f32 0.5, %v5756_v45 }
 0x6c3   :  { %4128 = vrcp.f32 %v3111_v37  ;;  %v2729_v37 = vmul.f32 0.5, %v5680_v32  ;;  %v2858_v39 = vadd.f32 %v5585_v17, %v2792_v11 }
 0x6c5   :  { %v2793_v40 = vadd.f32 %v2729_v37, %v6710_v5 }
 0x6c7   :  { %v2859_v32 = vadd.f32 %v5585_v17, %v2793_v40  ;;  %v2741_v40 = vmul.f32 0.5, %v5750_v34  ;;  %v2807_v34 = vadd.f32 %v2743_v23, %v5341_v43  ;;  %v6723_v23 = vld [vmem:[#allocation25_spill] sm:$0xff] }
 0x6c9   :  { %v2873_v45 = vadd.f32 %v5585_v17, %v2807_v34 }
 0x6ca   :  { %2687 = vadd.xlane.f32.xlu1 %v2686_v42 }
 0x6cb   :  { %v5912_v51 = vpop.eup %4126  ;;  %v3935_v43 = vmul.f32 -1.442695, %v2873_v45  ;;  %v6725_v45 = vld [vmem:[#allocation12_spill] sm:$0xff] }
 0x6d0   :  { %v5917_v49 = vpop.eup %4128 }
 0x6d3   :  { %3440 = vrot.lane.b32.xlu0 %v5878_v19, %s4325_s3  ;;  %v3921_v19 = vmul.f32 -1.442695, %v2859_v32 }
 0x6db   :  { %3442 = vrot.lane.b32.xlu1 %v5883_v56, %s4325_s3 }
 0x6dc   :  { %v5888_v57 = vpop.xlane.xlu0 %2672 }
 0x6e0   :  { %v3433_v58 = vpop.permute.xlu0 %3432 }
 0x6e1   :  { %v3617_v7 = vsel %vm3608_vm1, %v3296_v44, %v3433_v58  ;;  %v3918_v44 = vmul.f32 -1.442695, %v2856_v22  ;;  %v2791_v58 = vadd.f32 %v2727_v41, %v6708_v61  ;;  %v2731_v22 = vmul.f32 0.5, %v5689_v59  ;;  %v6712_v59 = vld [vmem:[#allocation11_spill] sm:$0xff] }
 0x6e2   :  { %3682 = vst.msk [vmem:[%s6601_s4 + $0x40] sm:$0xff] %vm3673_vm2, %v3617_v7 }
 0x6e3   :  { %4130 = vpow2.f32 %v3918_v44  ;;  %v2857_v7 = vadd.f32 %v5585_v17, %v2791_v58  ;;  %v2733_v44 = vmul.f32 0.5, %v5697_v10  ;;  %v2737_v10 = vmul.f32 0.5, %v5724_v46 }
 0x6e5   :  { %v3919_v2 = vmul.f32 -1.442695, %v2857_v7  ;;  %v2797_v58 = vadd.f32 %v2733_v44, %v6712_v59  ;;  %v2735_v7 = vmul.f32 0.5, %v5706_v26  ;;  %v2704_v44 = vsel %vm2517_vm0, %v5754_v4, 0.0 }
 0x6e7   :  { %4132 = vpow2.f32 %v3919_v2 }
 0x6e9   :  { %v5900_v50 = vpop.xlane.xlu1 %2675 }
 0x6ed   :  { %v3435_v1 = vpop.permute.xlu1 %3434 }
 0x6ee   :  { %v3618_v63 = vsel %vm3608_vm1, %v3297_v53, %v3435_v1 }
 0x6ef   :  { %3683 = vst.msk [vmem:[%s6601_s4 + $0x48] sm:$0xff] %vm3673_vm2, %v3618_v63 }
 0x6f0   :  { %v4131_v13 = vpop.eup %4130 }
 0x6f1   :  { %v3112_v53 = vadd.f32 1.0, %v4131_v13 }
 0x6f2   :  { %2690 = vadd.xlane.f32.xlu0 %v2689_v52 }
 0x6f3   :  { %4134 = vrcp.f32 %v3112_v53 }
 0x6f4   :  { %v4133_v1 = vpop.eup %4132 }
 0x6f5   :  { %v3113_v63 = vadd.f32 1.0, %v4133_v1 }
 0x6f7   :  { %4136 = vrcp.f32 %v3113_v63 }
 0x6ff   :  { %2693 = vadd.xlane.f32.xlu1 %v2692_v8 }
 0x700   :  { %v5946_v52 = vpop.eup %4134 }
 0x704   :  { %v5951_v33 = vpop.eup %4136 }
 0x708   :  { %3444 = vrot.lane.b32.xlu0 %v5912_v51, %s4325_s3 }
 0x710   :  { %3446 = vrot.lane.b32.xlu1 %v5917_v49, %s4325_s3 }
 0x711   :  { %v5922_v42 = vpop.xlane.xlu0 %2678 }
 0x715   :  { %v3437_v55 = vpop.permute.xlu0 %3436 }
 0x716   :  { %v3619_v0 = vsel %vm3608_vm1, %v3298_v9, %v3437_v55  ;;  %v3920_v9 = vmul.f32 -1.442695, %v2858_v39  ;;  %v6711_v55 = vld [vmem:[#allocation9_spill] sm:$0xff] }
 0x717   :  { %3684 = vst.msk [vmem:[%s6601_s4 + $0x50] sm:$0xff] %vm3673_vm2, %v3619_v0  ;;  %v2795_v0 = vadd.f32 %v2731_v22, %v6711_v55  ;;  %v6715_v39 = vld [vmem:[#allocation17_spill] sm:$0xff] }
 0x718   :  { %4138 = vpow2.f32 %v3920_v9 }
 0x719   :  { %v2861_v61 = vadd.f32 %v5585_v17, %v2795_v0  ;;  %4140 = vpow2.f32 %v3921_v19  ;;  %v2745_v19 = vmul.f32 0.5, %v5758_v20 }
 0x71e   :  { %v5934_v30 = vpop.xlane.xlu1 %2681 }
 0x722   :  { %v3439_v3 = vpop.permute.xlu1 %3438 }
 0x723   :  { %v3620_v29 = vsel %vm3608_vm1, %v3299_v31, %v3439_v3  ;;  %v3923_v31 = vmul.f32 -1.442695, %v2861_v61  ;;  %v2863_v3 = vadd.f32 %v5585_v17, %v2797_v58  ;;  %v2809_v58 = vadd.f32 %v2745_v19, %v5359_v24 }
 0x724   :  { %3685 = vst.msk [vmem:[%s6601_s4 + $0x58] sm:$0xff] %vm3673_vm2, %v3620_v29  ;;  %v3301_v29 = vsub.f32 1.0, %v5883_v56  ;;  %v2739_v56 = vmul.f32 0.5, %v5737_v47  ;;  %v2805_v47 = vadd.f32 %v2741_v40, %v5330_v28 }
 0x725   :  { %4142 = vpow2.f32 %v3923_v31  ;;  %v3925_v26 = vmul.f32 -1.442695, %v2863_v3  ;;  %v4139_v46 = vpop.eup %4138  ;;  %v2749_v31 = vmul.f32 0.5, %v5764_v35  ;;  %v2875_v20 = vadd.f32 %v5585_v17, %v2809_v58 }
 0x726   :  { %v3114_v5 = vadd.f32 1.0, %v4139_v46  ;;  %v4141_v22 = vpop.eup %4140  ;;  %v2871_v0 = vadd.f32 %v5585_v17, %v2805_v47 }
 0x727   :  { %2696 = vadd.xlane.f32.xlu0 %v2695_v62  ;;  %v6713_v62 = vld [vmem:[#allocation13_spill] sm:$0xff]  ;;  %4144 = vpow2.f32 %v3925_v26  ;;  %v3115_v9 = vadd.f32 1.0, %v4141_v22  ;;  %v3937_v35 = vmul.f32 -1.442695, %v2875_v20 }
 0x728   :  { %v2799_v13 = vadd.f32 %v2735_v7, %v6713_v62  ;;  %v3933_v59 = vmul.f32 -1.442695, %v2871_v0  ;;  %v2747_v7 = vmul.f32 0.5, %v5762_v16  ;;  %v6722_v22 = vld [vmem:[#allocation49_spill] sm:$0xff] }
 0x72a   :  { %v2865_v63 = vadd.f32 %v5585_v17, %v2799_v13  ;;  %v2813_v13 = vadd.f32 %v2749_v31, %v5391_v48 }
 0x72c   :  { %v3927_v11 = vmul.f32 -1.442695, %v2865_v63  ;;  %v6717_v63 = vld [vmem:[#allocation48_spill] sm:$0xff] }
 0x72e   :  { %4146 = vpow2.f32 %v3927_v11 }
 0x72f   :  { %4148 = vrcp.f32 %v3114_v5  ;;  %v6721_v5 = vld [vmem:[#allocation10_spill] sm:$0xff] }
 0x732   :  { %v4143_v32 = vpop.eup %4142 }
 0x733   :  { %v3117_v61 = vadd.f32 1.0, %v4143_v32  ;;  %v6724_v32 = vld [vmem:[#allocation62_spill] sm:$0xff] }
 0x734   :  { %2699 = vadd.xlane.f32.xlu1 %v2698_v60  ;;  %v6714_v60 = vld [vmem:[#allocation15_spill] sm:$0xff]  ;;  %v4145_v28 = vpop.eup %4144 }
 0x735   :  { %v2801_v36 = vadd.f32 %v2737_v10, %v6714_v60  ;;  %v3119_v4 = vadd.f32 1.0, %v4145_v28  ;;  %v2751_v10 = vmul.f32 0.5, %v5770_v14  ;;  %v2879_v60 = vadd.f32 %v5585_v17, %v2813_v13 }
 0x737   :  { %v2867_v37 = vadd.f32 %v5585_v17, %v2801_v36  ;;  %v6718_v36 = vld [vmem:[#allocation23_spill] sm:$0xff] }
 0x738   :  { %v2815_v48 = vadd.f32 %v2751_v10, %v6718_v36 }
 0x73a   :  { %v2881_v47 = vadd.f32 %v5585_v17, %v2815_v48  ;;  %v6730_v48 = vld [vmem:[#allocation29_spill] sm:$0xff] }
 0x73b   :  { %v4147_v3 = vpop.eup %4146 }
 0x73c   :  { %v6007_v62 = vpop.eup %4148  ;;  %v3121_v24 = vadd.f32 1.0, %v4147_v3 }
 0x73d   :  { %3448 = vrot.lane.b32.xlu0 %v5946_v52, %s4325_s3 }
 0x745   :  { %3450 = vrot.lane.b32.xlu1 %v5951_v33, %s4325_s3 }
 0x746   :  { %v5957_v8 = vpop.xlane.xlu0 %2684 }
 0x74a   :  { %v3441_v27 = vpop.permute.xlu0 %3440 }
 0x74b   :  { %v3621_v41 = vsel %vm3608_vm1, %v3300_v18, %v3441_v27  ;;  %v2803_v18 = vadd.f32 %v2739_v56, %v6715_v39  ;;  %v3929_v27 = vmul.f32 -1.442695, %v2867_v37  ;;  %v6720_v39 = vld [vmem:[#allocation8_spill] sm:$0xff] }
 0x74c   :  { %3686 = vst.msk [vmem:[%s6601_s4 + $0x60] sm:$0xff] %vm3673_vm2, %v3621_v41 }
 0x74d   :  { %v2869_v41 = vadd.f32 %v5585_v17, %v2803_v18  ;;  %4150 = vpow2.f32 %v3929_v27  ;;  %v2734_v27 = vmul.f32 0.5, %v6722_v22  ;;  %v6732_v22 = vld [vmem:[#allocation52_spill] sm:$0xff] }
 0x74e   :  { %4152 = vrcp.f32 %v3115_v9 }
 0x74f   :  { %v3931_v55 = vmul.f32 -1.442695, %v2869_v41  ;;  %v3941_v41 = vmul.f32 -1.442695, %v2879_v60  ;;  %v2798_v58 = vadd.f32 %v2734_v27, %v6725_v45  ;;  %v2740_v27 = vmul.f32 0.5, %v6732_v22 }
 0x751   :  { %4154 = vpow2.f32 %v3931_v55  ;;  %v2755_v55 = vmul.f32 0.5, %v6724_v32 }
 0x752   :  { %4156 = vrcp.f32 %v3117_v61 }
 0x753   :  { %v5974_v2 = vpop.xlane.xlu1 %2687  ;;  %4158 = vpow2.f32 %v3933_v59  ;;  %v3302_v59 = vsub.f32 1.0, %v5912_v51 }
 0x754   :  { %4160 = vrcp.f32 %v3119_v4  ;;  %v3943_v4 = vmul.f32 -1.442695, %v2881_v47  ;;  %v6733_v47 = vld [vmem:[#allocation31_spill] sm:$0xff] }
 0x755   :  { %4162 = vpow2.f32 %v3935_v43  ;;  %v6727_v43 = vld [vmem:[#allocation27_spill] sm:$0xff] }
 0x756   :  { %4164 = vrcp.f32 %v3121_v24  ;;  %v2819_v20 = vadd.f32 %v2755_v55, %v6727_v43  ;;  %v2761_v55 = vmul.f32 0.5, %v5888_v57 }
 0x757   :  { %v3443_v53 = vpop.permute.xlu1 %3442  ;;  %4166 = vpow2.f32 %v3937_v35 }
 0x758   :  { %v3622_v1 = vsel %vm3608_vm1, %v3301_v29, %v3443_v53  ;;  %v2811_v29 = vadd.f32 %v2747_v7, %v5377_v12  ;;  %v2732_v12 = vmul.f32 0.5, %v6717_v63  ;;  %v6726_v7 = vld [vmem:[#allocation50_spill] sm:$0xff]  ;;  %v2864_v63 = vadd.f32 %v5585_v17, %v2798_v58 }
 0x759   :  { %3687 = vst.msk [vmem:[%s6601_s4 + $0x68] sm:$0xff] %vm3673_vm2, %v3622_v1  ;;  %v6716_v1 = vld [vmem:[#allocation47_spill] sm:$0xff]  ;;  %v2736_v31 = vmul.f32 0.5, %v6726_v7  ;;  %v2885_v36 = vadd.f32 %v5585_v17, %v2819_v20  ;;  %v2763_v20 = vmul.f32 0.5, %v5922_v42  ;;  %v6737_v42 = vld [vmem:[#allocation54_spill] sm:$0xff] }
 0x75a   :  { %v4151_v16 = vpop.eup %4150  ;;  %v2877_v53 = vadd.f32 %v5585_v17, %v2811_v29  ;;  %v2730_v26 = vmul.f32 0.5, %v6716_v1  ;;  %v2796_v40 = vadd.f32 %v2732_v12, %v6721_v5  ;;  %v2757_v29 = vmul.f32 0.5, %v5820_v38  ;;  %v6729_v38 = vld [vmem:[#allocation14_spill] sm:$0xff] }
 0x75b   :  { %v6018_v56 = vpop.eup %4152  ;;  %v3123_v14 = vadd.f32 1.0, %v4151_v16  ;;  %v2800_v12 = vadd.f32 %v2736_v31, %v6729_v38  ;;  %v3926_v5 = vmul.f32 -1.442695, %v2864_v63 }
 0x75c   :  { %2702 = vadd.xlane.f32.xlu0 %v2701_v54  ;;  %v6719_v54 = vld [vmem:[#allocation61_spill] sm:$0xff]  ;;  %v3939_v37 = vmul.f32 -1.442695, %v2877_v53  ;;  %v2794_v18 = vadd.f32 %v2730_v26, %v6720_v39  ;;  %v2862_v28 = vadd.f32 %v5585_v17, %v2796_v40  ;;  %v6728_v53 = vld [vmem:[#allocation51_spill] sm:$0xff]  ;;  %v6731_v39 = vld [vmem:[#allocation16_spill] sm:$0xff] }
 0x75d   :  { %v2753_v46 = vmul.f32 0.5, %v6719_v54  ;;  %4168 = vrcp.f32 %v3123_v14  ;;  %v2738_v1 = vmul.f32 0.5, %v6728_v53  ;;  %v2821_v14 = vadd.f32 %v2757_v29, %v6730_v48 }
 0x75e   :  { %v4155_v11 = vpop.eup %4154  ;;  %4170 = vpow2.f32 %v3939_v37  ;;  %v2860_v61 = vadd.f32 %v5585_v17, %v2794_v18  ;;  %v3924_v26 = vmul.f32 -1.442695, %v2862_v28  ;;  %v2759_v54 = vmul.f32 0.5, %v5854_v25 }
 0x75f   :  { %v2817_v9 = vadd.f32 %v2753_v46, %v6723_v23  ;;  %v3125_v34 = vadd.f32 1.0, %v4155_v11  ;;  %4172 = vpow2.f32 %v3941_v41  ;;  %v2802_v18 = vadd.f32 %v2738_v1, %v6731_v39 }
 0x760   :  { %v3922_v35 = vmul.f32 -1.442695, %v2860_v61  ;;  %v2866_v40 = vadd.f32 %v5585_v17, %v2800_v12  ;;  %v3947_v41 = vmul.f32 -1.442695, %v2885_v36  ;;  %v2887_v25 = vadd.f32 %v5585_v17, %v2821_v14  ;;  %v6738_v12 = vld [vmem:[#allocation35_spill] sm:$0xff] }
 0x761   :  { %v2883_v3 = vadd.f32 %v5585_v17, %v2817_v9  ;;  %4174 = vrcp.f32 %v3125_v34  ;;  %v2823_v23 = vadd.f32 %v2759_v54, %v6733_v47  ;;  %v2868_v61 = vadd.f32 %v5585_v17, %v2802_v18  ;;  %v6739_v14 = vld [vmem:[#allocation19_spill] sm:$0xff]  ;;  %v6742_v47 = vld [vmem:[#allocation37_spill] sm:$0xff] }
 0x762   :  { %4176 = vpow2.f32 %v3943_v4  ;;  %v3928_v28 = vmul.f32 -1.442695, %v2866_v40  ;;  %v3949_v7 = vmul.f32 -1.442695, %v2887_v25  ;;  %v3303_v4 = vsub.f32 1.0, %v5917_v49 }
 0x763   :  { %v3945_v60 = vmul.f32 -1.442695, %v2883_v3  ;;  %v2889_v31 = vadd.f32 %v5585_v17, %v2823_v23  ;;  %v6735_v3 = vld [vmem:[#allocation33_spill] sm:$0xff]  ;;  %v2765_v36 = vmul.f32 0.5, %v5957_v8 }
 0x764   :  { %v2825_v43 = vadd.f32 %v2761_v55, %v6735_v3 }
 0x765   :  { %v3951_v63 = vmul.f32 -1.442695, %v2889_v31  ;;  %v2829_v23 = vadd.f32 %v2765_v36, %v6742_v47  ;;  %v6747_v36 = vld [vmem:[#allocation22_spill] sm:$0xff]  ;;  %v6750_v47 = vld [vmem:[#allocation24_spill] sm:$0xff] }
 0x766   :  { %v2891_v38 = vadd.f32 %v5585_v17, %v2825_v43  ;;  %v6745_v43 = vld [vmem:[#allocation39_spill] sm:$0xff] }
 0x767   :  { %v2895_v3 = vadd.f32 %v5585_v17, %v2829_v23 }
 0x769   :  { %2705 = vadd.xlane.f32.xlu1 %v2704_v44  ;;  %v6031_v44 = vpop.eup %4156 }
 0x76a   :  { %v4159_v19 = vpop.eup %4158 }
 0x76b   :  { %v6043_v10 = vpop.eup %4160  ;;  %v3127_v51 = vadd.f32 1.0, %v4159_v19 }
 0x76c   :  { %v4163_v16 = vpop.eup %4162 }
 0x76d   :  { %v6058_v46 = vpop.eup %4164  ;;  %4178 = vrcp.f32 %v3127_v51  ;;  %v3129_v11 = vadd.f32 1.0, %v4163_v16  ;;  %v3930_v51 = vmul.f32 -1.442695, %v2868_v61 }
 0x76e   :  { %v4167_v37 = vpop.eup %4166  ;;  %4180 = vpow2.f32 %v3922_v35 }
 0x76f   :  { %4182 = vpow2.f32 %v3924_v26  ;;  %v6067_v9 = vpop.eup %4168  ;;  %v3131_v32 = vadd.f32 1.0, %v4167_v37  ;;  %v2707_v26 = vsel %vm2517_vm0, %v6737_v42, 0.0 }
 0x770   :  { %4184 = vpow2.f32 %v3945_v60  ;;  %v4171_v19 = vpop.eup %4170  ;;  %v2827_v60 = vadd.f32 %v2763_v20, %v6738_v12 }
 0x771   :  { %4186 = vrcp.f32 %v3129_v11  ;;  %v4173_v58 = vpop.eup %4172  ;;  %v3133_v57 = vadd.f32 1.0, %v4171_v19  ;;  %v6740_v11 = vld [vmem:[#allocation55_spill] sm:$0xff] }
 0x772   :  { %3452 = vrot.lane.b32.xlu0 %v6007_v62, %s4325_s3  ;;  %4188 = vpow2.f32 %v3926_v5  ;;  %v3135_v1 = vadd.f32 1.0, %v4173_v58  ;;  %v2744_v37 = vmul.f32 0.5, %v6740_v11  ;;  %v6741_v5 = vld [vmem:[#allocation56_spill] sm:$0xff]  ;;  %v2893_v25 = vadd.f32 %v5585_v17, %v2827_v60  ;;  %v6744_v58 = vld [vmem:[#allocation21_spill] sm:$0xff] }
 0x773   :  { %4190 = vpow2.f32 %v3947_v41  ;;  %v2746_v40 = vmul.f32 0.5, %v6741_v5  ;;  %v3953_v41 = vmul.f32 -1.442695, %v2891_v38  ;;  %v6749_v5 = vld [vmem:[#allocation59_spill] sm:$0xff] }
 0x774   :  { %4192 = vrcp.f32 %v3131_v32 }
 0x775   :  { %4194 = vpow2.f32 %v3928_v28  ;;  %v6743_v28 = vld [vmem:[#allocation20_spill] sm:$0xff] }
 0x776   :  { %4196 = vpow2.f32 %v3949_v7  ;;  %v2810_v7 = vadd.f32 %v2746_v40, %v6744_v58  ;;  %v2752_v40 = vmul.f32 0.5, %v6749_v5 }
 0x777   :  { %4198 = vrcp.f32 %v3133_v57 }
 0x778   :  { %4200 = vpow2.f32 %v3930_v51 }
 0x779   :  { %4202 = vrcp.f32 %v3135_v1  ;;  %v2876_v1 = vadd.f32 %v5585_v17, %v2810_v7 }
 0x77a   :  { %3454 = vrot.lane.b32.xlu1 %v6018_v56, %s4325_s3  ;;  %4204 = vpow2.f32 %v3951_v63  ;;  %v3957_v63 = vmul.f32 -1.442695, %v2895_v3 }
 0x77b   :  { %v6029_v0 = vpop.xlane.xlu0 %2690 }
 0x77c   :  { %v2767_v32 = vmul.f32 0.5, %v6029_v0  ;;  %v3955_v0 = vmul.f32 -1.442695, %v2893_v25 }
 0x77e   :  { %3458 = vrot.lane.b32.xlu1 %v6031_v44, %s4325_s3  ;;  %v2831_v20 = vadd.f32 %v2767_v32, %v6745_v43 }
 0x77f   :  { %v3445_v13 = vpop.permute.xlu0 %3444 }
 0x780   :  { %v3623_v24 = vsel %vm3608_vm1, %v3302_v59, %v3445_v13  ;;  %v6734_v59 = vld [vmem:[#allocation18_spill] sm:$0xff]  ;;  %v6080_v13 = vpop.eup %4174  ;;  %v2897_v38 = vadd.f32 %v5585_v17, %v2831_v20 }
 0x781   :  { %3688 = vst.msk [vmem:[%s6601_s4 + $0x70] sm:$0xff] %vm3673_vm2, %v3623_v24  ;;  %v2804_v45 = vadd.f32 %v2740_v27, %v6734_v59  ;;  %v6736_v24 = vld [vmem:[#allocation53_spill] sm:$0xff]  ;;  %v4177_v49 = vpop.eup %4176  ;;  %v2808_v59 = vadd.f32 %v2744_v37, %v6743_v28 }
 0x782   :  { %3462 = vrot.lane.b32.xlu1 %v6043_v10, %s4325_s3  ;;  %v2742_v16 = vmul.f32 0.5, %v6736_v24  ;;  %v6096_v48 = vpop.eup %4178  ;;  %v3137_v27 = vadd.f32 1.0, %v4177_v49 }
 0x783   :  { %v2870_v53 = vadd.f32 %v5585_v17, %v2804_v45  ;;  %v4181_v39 = vpop.eup %4180  ;;  %v2874_v24 = vadd.f32 %v5585_v17, %v2808_v59  ;;  %v6752_v59 = vld [vmem:[#allocation60_spill] sm:$0xff] }
 0x784   :  { %v2806_v54 = vadd.f32 %v2742_v16, %v6739_v14  ;;  %v4183_v22 = vpop.eup %4182  ;;  %v3116_v19 = vadd.f32 1.0, %v4181_v39  ;;  %v6746_v16 = vld [vmem:[#allocation57_spill] sm:$0xff]  ;;  %v3938_v39 = vmul.f32 -1.442695, %v2876_v1 }
 0x785   :  { %v3932_v18 = vmul.f32 -1.442695, %v2870_v53  ;;  %v4185_v8 = vpop.eup %4184  ;;  %v3118_v45 = vadd.f32 1.0, %v4183_v22  ;;  %v3936_v60 = vmul.f32 -1.442695, %v2874_v24 }
 0x786   :  { %3466 = vrot.lane.b32.xlu1 %v6058_v46, %s4325_s3  ;;  %v6106_v55 = vpop.eup %4186  ;;  %v2872_v61 = vadd.f32 %v5585_v17, %v2806_v54  ;;  %v6748_v54 = vld [vmem:[#allocation58_spill] sm:$0xff] }
 0x787   :  { %4206 = vpow2.f32 %v3932_v18  ;;  %v4189_v31 = vpop.eup %4188  ;;  %v2750_v11 = vmul.f32 0.5, %v6748_v54 }
 0x788   :  { %v6070_v34 = vpop.xlane.xlu1 %2693  ;;  %4208 = vrcp.f32 %v3137_v27  ;;  %v4191_v57 = vpop.eup %4190  ;;  %v3934_v51 = vmul.f32 -1.442695, %v2872_v61  ;;  %v3120_v53 = vadd.f32 1.0, %v4189_v31  ;;  %v6751_v61 = vld [vmem:[#allocation26_spill] sm:$0xff] }
 0x789   :  { %4210 = vpow2.f32 %v3953_v41  ;;  %v3141_v42 = vadd.f32 1.0, %v4191_v57  ;;  %v2814_v23 = vadd.f32 %v2750_v11, %v6750_v47  ;;  %v2816_v28 = vadd.f32 %v2752_v40, %v6751_v61 }
 0x78a   :  { %3470 = vrot.lane.b32.xlu1 %v6067_v9, %s4325_s3  ;;  %4212 = vrcp.f32 %v3116_v19 }
 0x78b   :  { %4214 = vrcp.f32 %v3118_v45  ;;  %v2754_v45 = vmul.f32 0.5, %v6752_v59  ;;  %v2880_v57 = vadd.f32 %v5585_v17, %v2814_v23  ;;  %v2882_v20 = vadd.f32 %v5585_v17, %v2816_v28 }
 0x78c   :  { %v3447_v29 = vpop.permute.xlu1 %3446 }
 0x78d   :  { %v3624_v35 = vsel %vm3608_vm1, %v3303_v4, %v3447_v29  ;;  %v3139_v4 = vadd.f32 1.0, %v4185_v8  ;;  %v6115_v29 = vpop.eup %4192  ;;  %v3959_v8 = vmul.f32 -1.442695, %v2897_v38  ;;  %v6754_v38 = vld [vmem:[#allocation30_spill] sm:$0xff] }
 0x78e   :  { %3689 = vst.msk [vmem:[%s6601_s4 + $0x78] sm:$0xff] %vm3673_vm2, %v3624_v35  ;;  %3474 = vrot.lane.b32.xlu1 %v6080_v13, %s4325_s3  ;;  %v2748_v35 = vmul.f32 0.5, %v6746_v16  ;;  %v4195_v49 = vpop.eup %4194  ;;  %v2756_v16 = vmul.f32 0.5, %v5791_v15 }
 0x78f   :  { %4216 = vrcp.f32 %v3139_v4  ;;  %v3122_v41 = vadd.f32 1.0, %v4195_v49  ;;  %v3942_v49 = vmul.f32 -1.442695, %v2880_v57  ;;  %v6757_v57 = vld [vmem:[#allocation34_spill] sm:$0xff] }
 0x790   :  { %4218 = vpow2.f32 %v3955_v0  ;;  %v2812_v14 = vadd.f32 %v2748_v35, %v6747_v36 }
 0x791   :  { %2708 = vadd.xlane.f32.xlu0 %v2707_v26  ;;  %v4197_v26 = vpop.eup %4196  ;;  %4220 = vpow2.f32 %v3934_v51  ;;  %v6753_v51 = vld [vmem:[#allocation28_spill] sm:$0xff] }
 0x792   :  { %3478 = vrot.lane.b32.xlu1 %v6096_v48, %s4325_s3  ;;  %v6123_v12 = vpop.eup %4198  ;;  %4222 = vrcp.f32 %v3120_v53  ;;  %v3143_v22 = vadd.f32 1.0, %v4197_v26  ;;  %v2878_v25 = vadd.f32 %v5585_v17, %v2812_v14  ;;  %v2818_v24 = vadd.f32 %v2754_v45, %v6753_v51 }
 0x793   :  { %v4201_v37 = vpop.eup %4200  ;;  %4224 = vrcp.f32 %v3141_v42  ;;  %v2758_v14 = vmul.f32 0.5, %v5832_v6  ;;  %v6755_v6 = vld [vmem:[#allocation32_spill] sm:$0xff] }
 0x794   :  { %v6129_v18 = vpop.eup %4202  ;;  %4226 = vpow2.f32 %v3957_v63  ;;  %v3124_v32 = vadd.f32 1.0, %v4201_v37  ;;  %v3940_v4 = vmul.f32 -1.442695, %v2878_v25  ;;  %v3944_v63 = vmul.f32 -1.442695, %v2882_v20 }
 0x795   :  { %v4205_v27 = vpop.eup %4204  ;;  %4228 = vpow2.f32 %v3936_v60  ;;  %v2884_v15 = vadd.f32 %v5585_v17, %v2818_v24  ;;  %v2820_v60 = vadd.f32 %v2756_v16, %v6754_v38  ;;  %v2762_v16 = vmul.f32 0.5, %v5900_v50 }
 0x796   :  { %3482 = vrot.lane.b32.xlu1 %v6106_v55, %s4325_s3  ;;  %4230 = vpow2.f32 %v3938_v39  ;;  %v4207_v19 = vpop.eup %4206  ;;  %v3145_v7 = vadd.f32 1.0, %v4205_v27 }
 0x797   :  { %4232 = vrcp.f32 %v3143_v22  ;;  %v6138_v58 = vpop.eup %4208  ;;  %v3126_v43 = vadd.f32 1.0, %v4207_v19  ;;  %v3946_v40 = vmul.f32 -1.442695, %v2884_v15  ;;  %v2886_v22 = vadd.f32 %v5585_v17, %v2820_v60 }
 0x798   :  { %4234 = vpow2.f32 %v3959_v8  ;;  %v4211_v31 = vpop.eup %4210  ;;  %v2822_v8 = vadd.f32 %v2758_v14, %v6755_v6  ;;  %v2764_v15 = vmul.f32 0.5, %v5934_v30  ;;  %v6758_v14 = vld [vmem:[#allocation36_spill] sm:$0xff] }
 0x799   :  { %4236 = vrcp.f32 %v3122_v41  ;;  %v6141_v0 = vpop.eup %4212  ;;  %v3147_v53 = vadd.f32 1.0, %v4211_v31  ;;  %v2760_v41 = vmul.f32 0.5, %v5866_v21  ;;  %v3948_v45 = vmul.f32 -1.442695, %v2886_v22 }
 0x79a   :  { %3486 = vrot.lane.b32.xlu1 %v6115_v29, %s4325_s3  ;;  %4238 = vrcp.f32 %v3124_v32  ;;  %v6145_v3 = vpop.eup %4214  ;;  %v3304_v21 = vsub.f32 1.0, %v5946_v52 }
 0x79b   :  { %4240 = vrcp.f32 %v3145_v7  ;;  %v6756_v7 = vld [vmem:[#allocation41_spill] sm:$0xff] }
 0x79c   :  { %v6152_v35 = vpop.eup %4216  ;;  %4242 = vpow2.f32 %v3940_v4  ;;  %v2888_v4 = vadd.f32 %v5585_v17, %v2822_v8  ;;  %v2766_v8 = vmul.f32 0.5, %v5974_v2 }
 0x79d   :  { %v4219_v1 = vpop.eup %4218  ;;  %4244 = vrcp.f32 %v3126_v43  ;;  %v2824_v43 = vadd.f32 %v2760_v41, %v6757_v57 }
 0x79e   :  { %3490 = vrot.lane.b32.xlu1 %v6123_v12, %s4325_s3  ;;  %v4221_v42 = vpop.eup %4220  ;;  %4246 = vrcp.f32 %v3147_v53  ;;  %v3149_v54 = vadd.f32 1.0, %v4219_v1 }
 0x79f   :  { %v6156_v26 = vpop.eup %4222  ;;  %v3128_v37 = vadd.f32 1.0, %v4221_v42  ;;  %4248 = vpow2.f32 %v3942_v49  ;;  %v3950_v42 = vmul.f32 -1.442695, %v2888_v4 }
 0x7a0   :  { %v6162_v36 = vpop.eup %4224  ;;  %4250 = vpow2.f32 %v3944_v63  ;;  %v2890_v63 = vadd.f32 %v5585_v17, %v2824_v43 }
 0x7a1   :  { %v4227_v11 = vpop.eup %4226  ;;  %4252 = vrcp.f32 %v3149_v54  ;;  %v2826_v54 = vadd.f32 %v2762_v16, %v6758_v14 }
 0x7a2   :  { %3494 = vrot.lane.b32.xlu1 %v6129_v18, %s4325_s3  ;;  %v4229_v39 = vpop.eup %4228  ;;  %v3151_v25 = vadd.f32 1.0, %v4227_v11  ;;  %4254 = vrcp.f32 %v3128_v37 }
 0x7a3   :  { %v4231_v5 = vpop.eup %4230  ;;  %v3130_v32 = vadd.f32 1.0, %v4229_v39  ;;  %4256 = vpow2.f32 %v3946_v40  ;;  %v3952_v39 = vmul.f32 -1.442695, %v2890_v63  ;;  %v2892_v6 = vadd.f32 %v5585_v17, %v2826_v54  ;;  %v6762_v54 = vld [vmem:[#allocation44_spill] sm:$0xff] }
 0x7a4   :  { %v6170_v27 = vpop.eup %4232  ;;  %v3132_v28 = vadd.f32 1.0, %v4231_v5  ;;  %4258 = vrcp.f32 %v3151_v25  ;;  %v6759_v5 = vld [vmem:[#allocation38_spill] sm:$0xff] }
 0x7a5   :  { %v4235_v23 = vpop.eup %4234  ;;  %4260 = vrcp.f32 %v3130_v32  ;;  %v2828_v40 = vadd.f32 %v2764_v15, %v6759_v5  ;;  %v3954_v2 = vmul.f32 -1.442695, %v2892_v6 }
 0x7a6   :  { %3498 = vrot.lane.b32.xlu1 %v6138_v58, %s4325_s3  ;;  %v6174_v61 = vpop.eup %4236  ;;  %v3153_v20 = vadd.f32 1.0, %v4235_v23  ;;  %4262 = vrcp.f32 %v3132_v28 }
 0x7a7   :  { %3456 = vrot.lane.b32.xlu0 %v6141_v0, %s4325_s3  ;;  %v6178_v59 = vpop.eup %4238  ;;  %4264 = vpow2.f32 %v3948_v45  ;;  %v2894_v32 = vadd.f32 %v5585_v17, %v2828_v40  ;;  %v6760_v45 = vld [vmem:[#allocation40_spill] sm:$0xff] }
 0x7a8   :  { %v6186_v24 = vpop.eup %4240  ;;  %4266 = vrcp.f32 %v3153_v20 }
 0x7a9   :  { %v4243_v49 = vpop.eup %4242 }
 0x7aa   :  { %3502 = vrot.lane.b32.xlu1 %v6152_v35, %s4325_s3  ;;  %v6199_v50 = vpop.eup %4244  ;;  %v3134_v60 = vadd.f32 1.0, %v4243_v49 }
 0x7ab   :  { %3460 = vrot.lane.b32.xlu0 %v6145_v3, %s4325_s3  ;;  %v6203_v38 = vpop.eup %4246 }
 0x7ac   :  { %v4249_v11 = vpop.eup %4248 }
 0x7ad   :  { %v4251_v37 = vpop.eup %4250  ;;  %v3136_v22 = vadd.f32 1.0, %v4249_v11 }
 0x7ae   :  { %3506 = vrot.lane.b32.xlu1 %v6162_v36, %s4325_s3  ;;  %v6211_v30 = vpop.eup %4252  ;;  %v3138_v23 = vadd.f32 1.0, %v4251_v37 }
 0x7af   :  { %3464 = vrot.lane.b32.xlu0 %v6156_v26, %s4325_s3  ;;  %v6215_v25 = vpop.eup %4254 }
 0x7b0   :  { %v2697_v47 = vpop.xlane.xlu0 %2696 }
 0x7b1   :  { %v2769_v19 = vmul.f32 0.5, %v2697_v47  ;;  %v4257_v47 = vpop.eup %4256 }
 0x7b2   :  { %3510 = vrot.lane.b32.xlu1 %v6170_v27, %s4325_s3  ;;  %v6223_v28 = vpop.eup %4258  ;;  %v3140_v20 = vadd.f32 1.0, %v4257_v47 }
 0x7b3   :  { %v2833_v31 = vadd.f32 %v2769_v19, %v6756_v7  ;;  %3468 = vrot.lane.b32.xlu0 %v6174_v61, %s4325_s3  ;;  %v3305_v19 = vsub.f32 1.0, %v5951_v33  ;;  %v2830_v7 = vadd.f32 %v2766_v8, %v6760_v45  ;;  %v6227_v4 = vpop.eup %4260 }
 0x7b4   :  { %v3449_v51 = vpop.permute.xlu0 %3448  ;;  %v6232_v43 = vpop.eup %4262 }
 0x7b5   :  { %v2899_v53 = vadd.f32 %v5585_v17, %v2833_v31  ;;  %v3625_v1 = vsel %vm3608_vm1, %v3304_v21, %v3449_v51  ;;  %v2768_v31 = vmul.f32 0.5, %v6070_v34  ;;  %v4265_v33 = vpop.eup %4264  ;;  %v3956_v34 = vmul.f32 -1.442695, %v2894_v32 }
 0x7b6   :  { %3690 = vst.msk [vmem:[%s6601_s4 + $0x80] sm:$0xff] %vm3673_vm2, %v3625_v1  ;;  %3514 = vrot.lane.b32.xlu1 %v6186_v24, %s4325_s3  ;;  %v6240_v51 = vpop.eup %4266  ;;  %v2896_v16 = vadd.f32 %v5585_v17, %v2830_v7  ;;  %v3142_v63 = vadd.f32 1.0, %v4265_v33 }
 0x7b7   :  { %v3961_v52 = vmul.f32 -1.442695, %v2899_v53  ;;  %3472 = vrot.lane.b32.xlu0 %v6178_v59, %s4325_s3  ;;  %v6761_v53 = vld [vmem:[#allocation42_spill] sm:$0xff] }
 0x7b8   :  { %v2832_v1 = vadd.f32 %v2768_v31, %v6761_v53 }
 0x7b9   :  { %4268 = vpow2.f32 %v3961_v52 }
 0x7ba   :  { %3518 = vrot.lane.b32.xlu1 %v6203_v38, %s4325_s3  ;;  %4270 = vpow2.f32 %v3950_v42  ;;  %v2898_v14 = vadd.f32 %v5585_v17, %v2832_v1 }
 0x7bb   :  { %3476 = vrot.lane.b32.xlu0 %v6199_v50, %s4325_s3  ;;  %4272 = vrcp.f32 %v3134_v60  ;;  %v3958_v60 = vmul.f32 -1.442695, %v2896_v16 }
 0x7bc   :  { %4274 = vpow2.f32 %v3952_v39  ;;  %v3960_v40 = vmul.f32 -1.442695, %v2898_v14 }
 0x7bd   :  { %v2700_v41 = vpop.xlane.xlu1 %2699  ;;  %4276 = vrcp.f32 %v3136_v22 }
 0x7be   :  { %3522 = vrot.lane.b32.xlu1 %v6211_v30, %s4325_s3  ;;  %4278 = vrcp.f32 %v3138_v23  ;;  %v2770_v49 = vmul.f32 0.5, %v2700_v41 }
 0x7bf   :  { %3480 = vrot.lane.b32.xlu0 %v6215_v25, %s4325_s3  ;;  %4280 = vpow2.f32 %v3954_v2 }
 0x7c0   :  { %4282 = vrcp.f32 %v3140_v20  ;;  %v2834_v11 = vadd.f32 %v2770_v49, %v6762_v54 }
 0x7c1   :  { %v3451_v21 = vpop.permute.xlu1 %3450  ;;  %4284 = vpow2.f32 %v3956_v34 }
 0x7c2   :  { %v3626_v57 = vsel %vm3608_vm1, %v3305_v19, %v3451_v21  ;;  %3526 = vrot.lane.b32.xlu1 %v6223_v28, %s4325_s3  ;;  %v2900_v22 = vadd.f32 %v5585_v17, %v2834_v11 }
 0x7c3   :  { %3691 = vst.msk [vmem:[%s6601_s4 + $0x88] sm:$0xff] %vm3673_vm2, %v3626_v57  ;;  %3484 = vrot.lane.b32.xlu0 %v6227_v4, %s4325_s3 }
 0x7c4   :  { %v3962_v47 = vmul.f32 -1.442695, %v2900_v22 }
 0x7c6   :  { %v4269_v52 = vpop.eup %4268  ;;  %3530 = vrot.lane.b32.xlu1 %v6240_v51, %s4325_s3 }
 0x7c7   :  { %v3155_v42 = vadd.f32 1.0, %v4269_v52  ;;  %3488 = vrot.lane.b32.xlu0 %v6232_v43, %s4325_s3  ;;  %v4271_v15 = vpop.eup %4270 }
 0x7c8   :  { %v6250_v37 = vpop.eup %4272  ;;  %v3144_v39 = vadd.f32 1.0, %v4271_v15 }
 0x7c9   :  { %4286 = vrcp.f32 %v3155_v42  ;;  %v4275_v5 = vpop.eup %4274 }
 0x7ca   :  { %4288 = vrcp.f32 %v3142_v63  ;;  %v6255_v6 = vpop.eup %4276  ;;  %v3146_v8 = vadd.f32 1.0, %v4275_v5  ;;  %v6763_v63 = vld [vmem:[#allocation43_spill] sm:$0xff] }
 0x7cb   :  { %3492 = vrot.lane.b32.xlu0 %v6250_v37, %s4325_s3  ;;  %4290 = vpow2.f32 %v3958_v60  ;;  %v6259_v41 = vpop.eup %4278  ;;  %v3306_v60 = vsub.f32 1.0, %v6007_v62 }
 0x7cc   :  { %4292 = vrcp.f32 %v3144_v39  ;;  %v4281_v23 = vpop.eup %4280 }
 0x7cd   :  { %4294 = vpow2.f32 %v3960_v40  ;;  %v6263_v32 = vpop.eup %4282  ;;  %v3148_v2 = vadd.f32 1.0, %v4281_v23 }
 0x7ce   :  { %4296 = vrcp.f32 %v3146_v8  ;;  %v4285_v19 = vpop.eup %4284 }
 0x7cf   :  { %3496 = vrot.lane.b32.xlu0 %v6255_v6, %s4325_s3  ;;  %4298 = vpow2.f32 %v3962_v47  ;;  %v3150_v31 = vadd.f32 1.0, %v4285_v19  ;;  %v6764_v47 = vld [vmem:[#allocation46_spill] sm:$0xff]  ;;  %v3307_v19 = vsub.f32 1.0, %v6018_v56 }
 0x7d0   :  { %4300 = vrcp.f32 %v3148_v2 }
 0x7d1   :  { %4302 = vrcp.f32 %v3150_v31 }
 0x7d3   :  { %3500 = vrot.lane.b32.xlu0 %v6259_v41, %s4325_s3 }
 0x7d6   :  { %v6265_v45 = vpop.eup %4286 }
 0x7d7   :  { %3534 = vrot.lane.b32.xlu1 %v6265_v45, %s4325_s3  ;;  %3504 = vrot.lane.b32.xlu0 %v6263_v32, %s4325_s3  ;;  %v6271_v7 = vpop.eup %4288 }
 0x7d8   :  { %v4291_v21 = vpop.eup %4290 }
 0x7d9   :  { %v6275_v57 = vpop.eup %4292  ;;  %v3152_v20 = vadd.f32 1.0, %v4291_v21 }
 0x7da   :  { %v4295_v33 = vpop.eup %4294 }
 0x7db   :  { %3508 = vrot.lane.b32.xlu0 %v6271_v7, %s4325_s3  ;;  %v6279_v34 = vpop.eup %4296  ;;  %4304 = vrcp.f32 %v3152_v20  ;;  %v3154_v16 = vadd.f32 1.0, %v4295_v33 }
 0x7dc   :  { %v4299_v53 = vpop.eup %4298 }
 0x7dd   :  { %4306 = vrcp.f32 %v3154_v16  ;;  %v3156_v1 = vadd.f32 1.0, %v4299_v53  ;;  %v6283_v52 = vpop.eup %4300  ;;  %v3309_v16 = vsub.f32 1.0, %v6031_v44  ;;  %v3313_v44 = vsub.f32 1.0, %v6058_v46 }
 0x7de   :  { %v6289_v54 = vpop.eup %4302 }
 0x7df   :  { %3512 = vrot.lane.b32.xlu0 %v6275_v57, %s4325_s3  ;;  %4308 = vrcp.f32 %v3156_v1 }
 0x7e3   :  { %3516 = vrot.lane.b32.xlu0 %v6279_v34, %s4325_s3 }
 0x7e5   :  { %v2703_v49 = vpop.xlane.xlu0 %2702 }
 0x7e6   :  { %v2771_v42 = vmul.f32 0.5, %v2703_v49 }
 0x7e7   :  { %3520 = vrot.lane.b32.xlu0 %v6283_v52, %s4325_s3 }
 0x7e8   :  { %v2835_v15 = vadd.f32 %v2771_v42, %v6763_v63  ;;  %v6299_v40 = vpop.eup %4304  ;;  %v3311_v42 = vsub.f32 1.0, %v6043_v10  ;;  %v3315_v10 = vsub.f32 1.0, %v6067_v9  ;;  %v3319_v9 = vsub.f32 1.0, %v6096_v48 }
 0x7e9   :  { %v3453_v14 = vpop.permute.xlu0 %3452  ;;  %v3323_v48 = vsub.f32 1.0, %v6115_v29 }
 0x7ea   :  { %v2901_v11 = vadd.f32 %v5585_v17, %v2835_v15  ;;  %v3627_v39 = vsel %vm3608_vm1, %v3306_v60, %v3453_v14  ;;  %v6303_v62 = vpop.eup %4306 }
 0x7eb   :  { %3692 = vst.msk [vmem:[%s6601_s4 + $0x90] sm:$0xff] %vm3673_vm2, %v3627_v39  ;;  %3524 = vrot.lane.b32.xlu0 %v6289_v54, %s4325_s3 }
 0x7ec   :  { %v3963_v5 = vmul.f32 -1.442695, %v2901_v11  ;;  %v6309_v2 = vpop.eup %4308 }
 0x7ee   :  { %4310 = vpow2.f32 %v3963_v5 }
 0x7ef   :  { %3528 = vrot.lane.b32.xlu0 %v6299_v40, %s4325_s3 }
 0x7f2   :  { %v2706_v22 = vpop.xlane.xlu1 %2705 }
 0x7f3   :  { %v2772_v8 = vmul.f32 0.5, %v2706_v22  ;;  %3532 = vrot.lane.b32.xlu0 %v6303_v62, %s4325_s3  ;;  %v3317_v22 = vsub.f32 1.0, %v6080_v13  ;;  %v3321_v13 = vsub.f32 1.0, %v6106_v55  ;;  %v3325_v55 = vsub.f32 1.0, %v6123_v12 }
 0x7f5   :  { %v2836_v23 = vadd.f32 %v2772_v8, %v6764_v47 }
 0x7f6   :  { %v3455_v31 = vpop.permute.xlu1 %3454 }
 0x7f7   :  { %v2902_v21 = vadd.f32 %v5585_v17, %v2836_v23  ;;  %v3628_v20 = vsel %vm3608_vm1, %v3307_v19, %v3455_v31  ;;  %3536 = vrot.lane.b32.xlu0 %v6309_v2, %s4325_s3 }
 0x7f8   :  { %3693 = vst.msk [vmem:[%s6601_s4 + $0x98] sm:$0xff] %vm3673_vm2, %v3628_v20 }
 0x7f9   :  { %v3964_v33 = vmul.f32 -1.442695, %v2902_v21 }
 0x7fa   :  { %v3459_v53 = vpop.permute.xlu1 %3458 }
 0x7fb   :  { %v4311_v56 = vpop.eup %4310  ;;  %4312 = vpow2.f32 %v3964_v33  ;;  %v3630_v1 = vsel %vm3608_vm1, %v3309_v16, %v3459_v53 }
 0x7fc   :  { %v3157_v49 = vadd.f32 1.0, %v4311_v56  ;;  %3695 = vst.msk [vmem:[%s6601_s4 + $0xa8] sm:$0xff] %vm3673_vm2, %v3630_v1 }
 0x7fe   :  { %4314 = vrcp.f32 %v3157_v49  ;;  %v3463_v63 = vpop.permute.xlu1 %3462 }
 0x7ff   :  { %v3632_v15 = vsel %vm3608_vm1, %v3311_v42, %v3463_v63  ;;  %v6765_v42 = vld [vmem:[#allocation45_spill] sm:$0xff] }
 0x800   :  { %3697 = vst.msk [vmem:[%s6601_s4 + $0xb8] sm:$0xff] %vm3673_vm2, %v3632_v15  ;;  %v3308_v15 = vsub.f32 1.0, %v6141_v0 }
 0x802   :  { %v3467_v60 = vpop.permute.xlu1 %3466 }
 0x803   :  { %v3634_v14 = vsel %vm3608_vm1, %v3313_v44, %v3467_v60  ;;  %v3327_v44 = vsub.f32 1.0, %v6129_v18  ;;  %v3310_v18 = vsub.f32 1.0, %v6145_v3  ;;  %v3312_v3 = vsub.f32 1.0, %v6156_v26 }
 0x804   :  { %3699 = vst.msk [vmem:[%s6601_s4 + $0xc8] sm:$0xff] %vm3673_vm2, %v3634_v14  ;;  %v3314_v26 = vsub.f32 1.0, %v6174_v61  ;;  %v3316_v61 = vsub.f32 1.0, %v6178_v59 }
 0x806   :  { %v3471_v11 = vpop.permute.xlu1 %3470 }
 0x807   :  { %v3636_v39 = vsel %vm3608_vm1, %v3315_v10, %v3471_v11 }
 0x808   :  { %v4313_v5 = vpop.eup %4312  ;;  %3701 = vst.msk [vmem:[%s6601_s4 + $0xd8] sm:$0xff] %vm3673_vm2, %v3636_v39  ;;  %v3329_v39 = vsub.f32 1.0, %v6138_v58  ;;  %v3331_v58 = vsub.f32 1.0, %v6152_v35  ;;  %v3333_v35 = vsub.f32 1.0, %v6162_v36  ;;  %v3335_v36 = vsub.f32 1.0, %v6170_v27 }
 0x809   :  { %v3158_v46 = vadd.f32 1.0, %v4313_v5  ;;  %v3318_v27 = vsub.f32 1.0, %v6199_v50  ;;  %v3320_v50 = vsub.f32 1.0, %v6215_v25  ;;  %v3322_v25 = vsub.f32 1.0, %v6227_v4 }
 0x80a   :  { %v3475_v8 = vpop.permute.xlu1 %3474  ;;  %v3324_v4 = vsub.f32 1.0, %v6232_v43  ;;  %v3345_v43 = vsub.f32 1.0, %v6240_v51 }
 0x80b   :  { %v6344_v47 = vpop.eup %4314  ;;  %4316 = vrcp.f32 %v3158_v46  ;;  %v3638_v23 = vsel %vm3608_vm1, %v3317_v22, %v3475_v8 }
 0x80c   :  { %3703 = vst.msk [vmem:[%s6601_s4 + $0xe8] sm:$0xff] %vm3673_vm2, %v3638_v23  ;;  %3538 = vrot.lane.b32.xlu1 %v6344_v47, %s4325_s3 }
 0x80e   :  { %v3479_v19 = vpop.permute.xlu1 %3478 }
 0x80f   :  { %v3640_v31 = vsel %vm3608_vm1, %v3319_v9, %v3479_v19 }
 0x810   :  { %3705 = vst.msk [vmem:[%s6601_s4 + $0xf8] sm:$0xff] %vm3673_vm2, %v3640_v31 }
 0x812   :  { %v3483_v21 = vpop.permute.xlu1 %3482 }
 0x813   :  { %v3642_v20 = vsel %vm3608_vm1, %v3321_v13, %v3483_v21 }
 0x814   :  { %3707 = vst.msk [vmem:[%s6601_s4 + $0x108] sm:$0xff] %vm3673_vm2, %v3642_v20 }
 0x816   :  { %v3487_v33 = vpop.permute.xlu1 %3486 }
 0x817   :  { %v3644_v16 = vsel %vm3608_vm1, %v3323_v48, %v3487_v33 }
 0x818   :  { %v6367_v53 = vpop.eup %4316  ;;  %3709 = vst.msk [vmem:[%s6601_s4 + $0x118] sm:$0xff] %vm3673_vm2, %v3644_v16 }
 0x819   :  { %3540 = vrot.lane.b32.xlu0 %v6367_v53, %s4325_s3 }
 0x81a   :  { %v2709_v56 = vpop.xlane.xlu0 %2708  ;;  %v3491_v1 = vpop.permute.xlu1 %3490 }
 0x81b   :  { %v2773_v49 = vmul.f32 0.5, %v2709_v56  ;;  %v3646_v29 = vsel %vm3608_vm1, %v3325_v55, %v3491_v1  ;;  %v3337_v1 = vsub.f32 1.0, %v6186_v24  ;;  %v3339_v24 = vsub.f32 1.0, %v6203_v38 }
 0x81c   :  { %3711 = vst.msk [vmem:[%s6601_s4 + $0x128] sm:$0xff] %vm3673_vm2, %v3646_v29  ;;  %v3341_v38 = vsub.f32 1.0, %v6211_v30  ;;  %v3343_v30 = vsub.f32 1.0, %v6223_v28  ;;  %v3326_v28 = vsub.f32 1.0, %v6250_v37  ;;  %v3328_v37 = vsub.f32 1.0, %v6255_v6 }
 0x81d   :  { %v2837_v63 = vadd.f32 %v2773_v49, %v6765_v42 }
 0x81e   :  { %v3457_v60 = vpop.permute.xlu0 %3456  ;;  %v3495_v14 = vpop.permute.xlu1 %3494 }
 0x81f   :  { %v2903_v12 = vadd.f32 %v5585_v17, %v2837_v63  ;;  %v3629_v10 = vsel %vm3608_vm1, %v3308_v15, %v3457_v60  ;;  %v3648_v11 = vsel %vm3608_vm1, %v3327_v44, %v3495_v14 }
 0x820   :  { %3694 = vst.msk [vmem:[%s6601_s4 + $0xa0] sm:$0xff] %vm3673_vm2, %v3629_v10  ;;  %3713 = vst.msk [vmem:[%s6601_s4 + $0x138] sm:$0xff] %vm3673_vm2, %v3648_v11 }
 0x821   :  { %v3965_v0 = vmul.f32 -1.442695, %v2903_v12 }
 0x822   :  { %v3461_v17 = vpop.permute.xlu0 %3460  ;;  %v3499_v5 = vpop.permute.xlu1 %3498 }
 0x823   :  { %4318 = vpow2.f32 %v3965_v0  ;;  %v3631_v46 = vsel %vm3608_vm1, %v3310_v18, %v3461_v17  ;;  %v3650_v22 = vsel %vm3608_vm1, %v3329_v39, %v3499_v5 }
 0x824   :  { %3696 = vst.msk [vmem:[%s6601_s4 + $0xb0] sm:$0xff] %vm3673_vm2, %v3631_v46  ;;  %3715 = vst.msk [vmem:[%s6601_s4 + $0x148] sm:$0xff] %vm3673_vm2, %v3650_v22 }
 0x826   :  { %v3465_v8 = vpop.permute.xlu0 %3464  ;;  %v3503_v23 = vpop.permute.xlu1 %3502 }
 0x827   :  { %v3633_v9 = vsel %vm3608_vm1, %v3312_v3, %v3465_v8  ;;  %v3652_v19 = vsel %vm3608_vm1, %v3331_v58, %v3503_v23 }
 0x828   :  { %3698 = vst.msk [vmem:[%s6601_s4 + $0xc0] sm:$0xff] %vm3673_vm2, %v3633_v9  ;;  %3717 = vst.msk [vmem:[%s6601_s4 + $0x158] sm:$0xff] %vm3673_vm2, %v3652_v19  ;;  %v3347_v9 = vsub.f32 1.0, %v6265_v45  ;;  %v3332_v45 = vsub.f32 1.0, %v6263_v32  ;;  %v3336_v32 = vsub.f32 1.0, %v6275_v57  ;;  %v3340_v57 = vsub.f32 1.0, %v6283_v52 }
 0x829   :  { %v3344_v52 = vsub.f32 1.0, %v6299_v40  ;;  %v3348_v40 = vsub.f32 1.0, %v6309_v2  ;;  %v3350_v2 = vsub.f32 1.0, %v6367_v53 }
 0x82a   :  { %v3469_v31 = vpop.permute.xlu0 %3468  ;;  %v3507_v13 = vpop.permute.xlu1 %3506 }
 0x82b   :  { %v3635_v21 = vsel %vm3608_vm1, %v3314_v26, %v3469_v31  ;;  %v3654_v20 = vsel %vm3608_vm1, %v3333_v35, %v3507_v13  ;;  %v3330_v26 = vsub.f32 1.0, %v6259_v41 }
 0x82c   :  { %3700 = vst.msk [vmem:[%s6601_s4 + $0xd0] sm:$0xff] %vm3673_vm2, %v3635_v21  ;;  %3719 = vst.msk [vmem:[%s6601_s4 + $0x168] sm:$0xff] %vm3673_vm2, %v3654_v20  ;;  %v3334_v21 = vsub.f32 1.0, %v6271_v7  ;;  %v3338_v7 = vsub.f32 1.0, %v6279_v34  ;;  %v3342_v34 = vsub.f32 1.0, %v6289_v54  ;;  %v3346_v54 = vsub.f32 1.0, %v6303_v62 }
 0x82d   :  { %v3349_v62 = vsub.f32 1.0, %v6344_v47 }
 0x82e   :  { %v3473_v48 = vpop.permute.xlu0 %3472  ;;  %v3511_v33 = vpop.permute.xlu1 %3510 }
 0x82f   :  { %v3637_v16 = vsel %vm3608_vm1, %v3316_v61, %v3473_v48  ;;  %v3656_v55 = vsel %vm3608_vm1, %v3335_v36, %v3511_v33 }
 0x830   :  { %v4319_v56 = vpop.eup %4318  ;;  %3702 = vst.msk [vmem:[%s6601_s4 + $0xe0] sm:$0xff] %vm3673_vm2, %v3637_v16  ;;  %3721 = vst.msk [vmem:[%s6601_s4 + $0x178] sm:$0xff] %vm3673_vm2, %v3656_v55 }
 0x831   :  { %v3159_v59 = vadd.f32 1.0, %v4319_v56 }
 0x832   :  { %v3477_v49 = vpop.permute.xlu0 %3476  ;;  %v3515_v29 = vpop.permute.xlu1 %3514 }
 0x833   :  { %4320 = vrcp.f32 %v3159_v59  ;;  %v3639_v42 = vsel %vm3608_vm1, %v3318_v27, %v3477_v49  ;;  %v3658_v63 = vsel %vm3608_vm1, %v3337_v1, %v3515_v29 }
 0x834   :  { %3704 = vst.msk [vmem:[%s6601_s4 + $0xf0] sm:$0xff] %vm3673_vm2, %v3639_v42  ;;  %3723 = vst.msk [vmem:[%s6601_s4 + $0x188] sm:$0xff] %vm3673_vm2, %v3658_v63 }
 0x836   :  { %v3481_v15 = vpop.permute.xlu0 %3480  ;;  %v3519_v44 = vpop.permute.xlu1 %3518 }
 0x837   :  { %v3641_v60 = vsel %vm3608_vm1, %v3320_v50, %v3481_v15  ;;  %v3660_v14 = vsel %vm3608_vm1, %v3339_v24, %v3519_v44 }
 0x838   :  { %3706 = vst.msk [vmem:[%s6601_s4 + $0x100] sm:$0xff] %vm3673_vm2, %v3641_v60  ;;  %3725 = vst.msk [vmem:[%s6601_s4 + $0x198] sm:$0xff] %vm3673_vm2, %v3660_v14 }
 0x83a   :  { %v3485_v12 = vpop.permute.xlu0 %3484  ;;  %v3523_v10 = vpop.permute.xlu1 %3522 }
 0x83b   :  { %v3643_v11 = vsel %vm3608_vm1, %v3322_v25, %v3485_v12  ;;  %v3662_v0 = vsel %vm3608_vm1, %v3341_v38, %v3523_v10 }
 0x83c   :  { %3708 = vst.msk [vmem:[%s6601_s4 + $0x110] sm:$0xff] %vm3673_vm2, %v3643_v11  ;;  %3727 = vst.msk [vmem:[%s6601_s4 + $0x1a8] sm:$0xff] %vm3673_vm2, %v3662_v0 }
 0x83e   :  { %v3489_v18 = vpop.permute.xlu0 %3488  ;;  %v3527_v39 = vpop.permute.xlu1 %3526 }
 0x83f   :  { %v3645_v17 = vsel %vm3608_vm1, %v3324_v4, %v3489_v18  ;;  %v3664_v5 = vsel %vm3608_vm1, %v3343_v30, %v3527_v39 }
 0x840   :  { %v6483_v46 = vpop.eup %4320  ;;  %3710 = vst.msk [vmem:[%s6601_s4 + $0x120] sm:$0xff] %vm3673_vm2, %v3645_v17  ;;  %3729 = vst.msk [vmem:[%s6601_s4 + $0x1b8] sm:$0xff] %vm3673_vm2, %v3664_v5 }
 0x841   :  { %3542 = vrot.lane.b32.xlu1 %v6483_v46, %s4325_s3  ;;  %v3351_v47 = vsub.f32 1.0, %v6483_v46 }
 0x842   :  { %v3493_v22 = vpop.permute.xlu0 %3492  ;;  %v3531_v3 = vpop.permute.xlu1 %3530 }
 0x843   :  { %v3647_v58 = vsel %vm3608_vm1, %v3326_v28, %v3493_v22  ;;  %v3666_v8 = vsel %vm3608_vm1, %v3345_v43, %v3531_v3 }
 0x844   :  { %3712 = vst.msk [vmem:[%s6601_s4 + $0x130] sm:$0xff] %vm3673_vm2, %v3647_v58  ;;  %3731 = vst.msk [vmem:[%s6601_s4 + $0x1c8] sm:$0xff] %vm3673_vm2, %v3666_v8 }
 0x846   :  { %v3497_v23 = vpop.permute.xlu0 %3496 }
 0x847   :  { %v3649_v51 = vsel %vm3608_vm1, %v3328_v37, %v3497_v23 }
 0x848   :  { %3714 = vst.msk [vmem:[%s6601_s4 + $0x140] sm:$0xff] %vm3673_vm2, %v3649_v51 }
 0x849   :  { %v3535_v19 = vpop.permute.xlu1 %3534 }
 0x84a   :  { %v3668_v35 = vsel %vm3608_vm1, %v3347_v9, %v3535_v19  ;;  %v3501_v31 = vpop.permute.xlu0 %3500 }
 0x84b   :  { %3733 = vst.msk [vmem:[%s6601_s4 + $0x1d8] sm:$0xff] %vm3673_vm2, %v3668_v35  ;;  %v3651_v6 = vsel %vm3608_vm1, %v3330_v26, %v3501_v31 }
 0x84c   :  { %3716 = vst.msk [vmem:[%s6601_s4 + $0x150] sm:$0xff] %vm3673_vm2, %v3651_v6 }
 0x84e   :  { %v3505_v13 = vpop.permute.xlu0 %3504 }
 0x84f   :  { %v3653_v41 = vsel %vm3608_vm1, %v3332_v45, %v3505_v13 }
 0x850   :  { %3718 = vst.msk [vmem:[%s6601_s4 + $0x160] sm:$0xff] %vm3673_vm2, %v3653_v41 }
 0x852   :  { %v3509_v20 = vpop.permute.xlu0 %3508 }
 0x853   :  { %v3655_v61 = vsel %vm3608_vm1, %v3334_v21, %v3509_v20 }
 0x854   :  { %3720 = vst.msk [vmem:[%s6601_s4 + $0x170] sm:$0xff] %vm3673_vm2, %v3655_v61 }
 0x856   :  { %v3513_v36 = vpop.permute.xlu0 %3512 }
 0x857   :  { %v3657_v48 = vsel %vm3608_vm1, %v3336_v32, %v3513_v36 }
 0x858   :  { %3722 = vst.msk [vmem:[%s6601_s4 + $0x180] sm:$0xff] %vm3673_vm2, %v3657_v48 }
 0x85a   :  { %v3517_v33 = vpop.permute.xlu0 %3516 }
 0x85b   :  { %v3659_v16 = vsel %vm3608_vm1, %v3338_v7, %v3517_v33 }
 0x85c   :  { %3724 = vst.msk [vmem:[%s6601_s4 + $0x190] sm:$0xff] %vm3673_vm2, %v3659_v16 }
 0x85e   :  { %v3521_v55 = vpop.permute.xlu0 %3520 }
 0x85f   :  { %v3661_v56 = vsel %vm3608_vm1, %v3340_v57, %v3521_v55 }
 0x860   :  { %3726 = vst.msk [vmem:[%s6601_s4 + $0x1a0] sm:$0xff] %vm3673_vm2, %v3661_v56 }
 0x862   :  { %v3525_v59 = vpop.permute.xlu0 %3524 }
 0x863   :  { %v3663_v27 = vsel %vm3608_vm1, %v3342_v34, %v3525_v59 }
 0x864   :  { %3728 = vst.msk [vmem:[%s6601_s4 + $0x1b0] sm:$0xff] %vm3673_vm2, %v3663_v27 }
 0x866   :  { %v3529_v1 = vpop.permute.xlu0 %3528 }
 0x867   :  { %v3665_v49 = vsel %vm3608_vm1, %v3344_v52, %v3529_v1 }
 0x868   :  { %3730 = vst.msk [vmem:[%s6601_s4 + $0x1c0] sm:$0xff] %vm3673_vm2, %v3665_v49 }
 0x86a   :  { %v3533_v29 = vpop.permute.xlu0 %3532 }
 0x86b   :  { %v3667_v42 = vsel %vm3608_vm1, %v3346_v54, %v3533_v29 }
 0x86c   :  { %3732 = vst.msk [vmem:[%s6601_s4 + $0x1d0] sm:$0xff] %vm3673_vm2, %v3667_v42 }
 0x86e   :  { %v3537_v63 = vpop.permute.xlu0 %3536 }
 0x86f   :  { %v3669_v50 = vsel %vm3608_vm1, %v3348_v40, %v3537_v63 }
 0x870   :  { %3734 = vst.msk [vmem:[%s6601_s4 + $0x1e0] sm:$0xff] %vm3673_vm2, %v3669_v50 }
 0x87e   :  { %v3539_v24 = vpop.permute.xlu1 %3538 }
 0x87f   :  { %v3670_v15 = vsel %vm3608_vm1, %v3349_v62, %v3539_v24 }
 0x880   :  { %3735 = vst.msk [vmem:[%s6601_s4 + $0x1e8] sm:$0xff] %vm3673_vm2, %v3670_v15 }
 0x88b   :  { %v3541_v44 = vpop.permute.xlu0 %3540 }
 0x88c   :  { %v3671_v60 = vsel %vm3608_vm1, %v3350_v2, %v3541_v44 }
 0x88d   :  { %3736 = vst.msk [vmem:[%s6601_s4 + $0x1f0] sm:$0xff] %vm3673_vm2, %v3671_v60 }
 0x8b3   :  { %v3543_v14 = vpop.permute.xlu1 %3542 }
 0x8b4   :  { %v3672_v25 = vsel %vm3608_vm1, %v3351_v47, %v3543_v14 }
 0x8b5   :  { %3737 = vst.msk [vmem:[%s6601_s4 + $0x1f8] sm:$0xff] %vm3673_vm2, %v3672_v25 }

</bundles_post_ra>
